<compile_context>
chip_gen: v5e
topology: v5e:2x2
jax: 0.10.0
libtpu: 0.0.40
codegen_flags: <defaults>
</compile_context>

<pallas_src>
import functools
import re

import jax
import jax.numpy as jnp
import numpy as np
from jax import lax
from jax.experimental import pallas as pl
from jax.experimental.pallas import tpu as pltpu

ODE_UNFOLDS = 6  # LiquidNet._ode_solver_unfolds


def _round_up(x, m):
    return ((x + m - 1) // m) * m


def _tpu_generation():
    """Best-effort TPU generation (5, 6, 7, ...); 0 if unknown / not TPU."""
    try:
        d = jax.devices()[0]
        if d.platform != "tpu":
            return 0
        m = re.search(r"(\d+)", d.device_kind)
        return int(m.group(1)) if m else 0
    except Exception:
        return 0


def _has_buffered_blockspec():
    if not hasattr(pl, "Buffered"):
        return False
    try:
        pl.BlockSpec((8, 128), lambda i: (0, 0), pipeline_mode=pl.Buffered(1))
        return True
    except TypeError:
        return False


_HAS_BUFFERED = _has_buffered_blockspec()


def _liquid_kernel(x_ref, s_ref, in_w_ref, in_b_ref,
                   hssig_ref, hssigmu_ref, sWh_ref, sWEh_ref,
                   hsig_ref, hsigmu_ref, Wh_ref, WEh_ref,
                   cm_ref, num_base_ref, den_base_ref,
                   out_ref, *, gate_dtype):
    f32 = jnp.float32
    gd = gate_dtype

    # ---- Affine input mapping: inputs * w + b ----
    x = x_ref[...] * in_w_ref[...] + in_b_ref[...]                    # [TB, F] f32

    # ---- sensory synapses (computed once per grid step) ----
    # scale/offset of the sigmoid is folded into sWh/sWEh and num_base/den_base.
    xb = x.astype(gd)[:, :, None]                                     # [TB, F, 1]
    t_s = jnp.tanh(hssig_ref[...].astype(gd) * xb - hssigmu_ref[...].astype(gd))
    num_c = num_base_ref[...] + jnp.sum(t_s * sWEh_ref[...].astype(gd), axis=1, dtype=f32)
    den_c = den_base_ref[...] + jnp.sum(t_s * sWh_ref[...].astype(gd), axis=1, dtype=f32)

    cm = cm_ref[...]                                                  # [1, N] f32
    v0 = s_ref[...]                                                   # [TB, N] f32

    n_lanes = v0.shape[-1]
    # postsynaptic lane-column tile: caps [TB, N, ct] gate temporaries for large N.
    if n_lanes <= 256:
        ct = n_lanes
    elif n_lanes % 256 == 0:
        ct = 256
    else:
        ct = 128
    n_col = n_lanes // ct

    # Loop-invariant recurrent params. If stored narrower than the compute dtype
    # (bf16 storage on v5e), upcast once; otherwise slice the resident refs lazily.
    if jnp.dtype(hsig_ref.dtype) == jnp.dtype(gd):
        hsig, hsigmu, Wh, WEh = hsig_ref, hsigmu_ref, Wh_ref, WEh_ref
    else:
        hsig = hsig_ref[...].astype(gd)
        hsigmu = hsigmu_ref[...].astype(gd)
        Wh = Wh_ref[...].astype(gd)
        WEh = WEh_ref[...].astype(gd)

    def unfold(_, v):
        vb = v.astype(gd)[:, :, None]                                 # [TB, N, 1]
        nums, dens = [], []
        for c in range(n_col):
            j0 = c * ct
            t = jnp.tanh(hsig[:, j0:j0 + ct] * vb - hsigmu[:, j0:j0 + ct])   # [TB,N,ct]
            # presynaptic (sublane) reduction, f32 accumulation even on the bf16 path.
            nums.append(jnp.sum(t * WEh[:, j0:j0 + ct], axis=1, dtype=f32))  # [TB,ct]
            dens.append(jnp.sum(t * Wh[:, j0:j0 + ct], axis=1, dtype=f32))
        w_num = num_c + (nums[0] if n_col == 1 else jnp.concatenate(nums, axis=-1))
        w_den = den_c + (dens[0] if n_col == 1 else jnp.concatenate(dens, axis=-1))
        # EUP approx reciprocal + one Newton step: near-exact divide, still off the VALU.
        r = pl.reciprocal(w_den, approx=True)
        r = r * (2.0 - w_den * r)
        return (cm * v + w_num) * r

    v = lax.fori_loop(0, ODE_UNFOLDS, unfold, v0)
    out_ref[...] = v.astype(out_ref.dtype)


def liquidnet_forward(inputs, state, params, *, gate_dtype=None, param_dtype=None,
                      batch_tile=32):
    """Pallas-backed LiquidNet.forward: returns (outputs, next_state).

    gate_dtype:  compute dtype of the [TB,N,N]/[TB,F,N] gate math.
                 None -> bf16 on v6e/v7x, f32 otherwise.
    param_dtype: storage dtype of the [N,N]/[F,N] synapse params.
                 None -> bf16 on v5e+ (halves resident VMEM / HBM DMA), else gate_dtype.
    """
    f32 = jnp.float32
    gen = _tpu_generation()
    if gate_dtype is None:
        gate_dtype = jnp.bfloat16 if gen >= 6 else jnp.float32
    if param_dtype is None:
        param_dtype = jnp.bfloat16 if gen >= 5 else gate_dtype

    B, F = inputs.shape
    N = state.shape[-1]

    # ---- fold sigmoid affine + loop invariants into parameters (all in f32) ----
    W = params["W"].astype(f32)
    erev = params["erev"].astype(f32)
    sigma = params["sigma"].astype(f32)
    mu = params["mu"].astype(f32)
    sW = params["sensory_W"].astype(f32)
    serev = params["sensory_erev"].astype(f32)
    ssig = params["sensory_sigma"].astype(f32)
    smu = params["sensory_mu"].astype(f32)
    gleak = params["gleak"].astype(f32)
    vleak = params["vleak"].astype(f32)
    cm_t = params["cm_t"].astype(f32)

    Wh = 0.5 * W
    WEh = Wh * erev
    sWh = 0.5 * sW
    sWEh = sWh * serev
    hsig = 0.5 * sigma
    hsigmu = hsig * mu
    hssig = 0.5 * ssig
    hssigmu = hssig * smu
    num_base = (gleak * vleak + jnp.sum(WEh, axis=0, keepdims=True)
                + jnp.sum(sWEh, axis=0, keepdims=True))                       # [1, N]
    den_base = (cm_t + gleak + jnp.sum(Wh, axis=0, keepdims=True)
                + jnp.sum(sWh, axis=0, keepdims=True))                        # [1, N]

    # ---- lane/sublane-dense padding ----
    N_pad = _round_up(N, 128)           # lanes
    F_pad = _round_up(F, 8)             # sublanes of the [B, F, N] sensory block
    B8 = _round_up(B, 8)
    TB = max(8, min(_round_up(batch_tile, 8), B8))
    if gen >= 7 and B8 >= 16 and (B8 + TB - 1) // TB < 2:
        TB = _round_up((B8 + 1) // 2, 8)    # keep both v7x TensorCores busy
    B_pad = _round_up(B8, TB)
    grid_b = B_pad // TB

    def pad2(a, r, c, cval=0.0):
        return jnp.pad(a, ((0, r - a.shape[0]), (0, c - a.shape[1])),
                       constant_values=cval)

    pdt = param_dtype
    # Padding chosen so padded rows/cols contribute exactly 0 and padded state lanes
    # stay finite: weights padded with 0, cm/den_base padded with 1 (no div-by-zero).
    x_p = pad2(inputs.astype(f32), B_pad, F_pad)
    s_p = pad2(state.astype(f32), B_pad, N_pad)
    in_w = pad2(params["in_w"].astype(f32), 1, F_pad, cval=1.0)
    in_b = pad2(params["in_b"].astype(f32), 1, F_pad)
    hssig_p = pad2(hssig, F_pad, N_pad).astype(pdt)
    hssigmu_p = pad2(hssigmu, F_pad, N_pad).astype(pdt)
    sWh_p = pad2(sWh, F_pad, N_pad).astype(pdt)
    sWEh_p = pad2(sWEh, F_pad, N_pad).astype(pdt)
    hsig_p = pad2(hsig, N_pad, N_pad).astype(pdt)
    hsigmu_p = pad2(hsigmu, N_pad, N_pad).astype(pdt)
    Wh_p = pad2(Wh, N_pad, N_pad).astype(pdt)
    WEh_p = pad2(WEh, N_pad, N_pad).astype(pdt)
    cm_p = pad2(cm_t, 1, N_pad, cval=1.0)
    num_base_p = pad2(num_base, 1, N_pad)
    den_base_p = pad2(den_base, 1, N_pad, cval=1.0)

    args = (x_p, s_p, in_w, in_b, hssig_p, hssigmu_p, sWh_p, sWEh_p,
            hsig_p, hsigmu_p, Wh_p, WEh_p, cm_p, num_base_p, den_base_p)

    row_map = lambda i: (i, 0)       # batch-tiled arrays
    const_map = lambda i: (0, 0)     # parameters, resident across the whole grid

    def const_spec(shape):
        if _HAS_BUFFERED:
            # Block index never changes: single-buffer to halve resident-param VMEM.
            return pl.BlockSpec(shape, const_map, pipeline_mode=pl.Buffered(1))
        return pl.BlockSpec(shape, const_map)

    in_specs = [
        pl.BlockSpec((TB, F_pad), row_map),        # inputs
        pl.BlockSpec((TB, N_pad), row_map),        # state
        const_spec((1, F_pad)),                    # in_w
        const_spec((1, F_pad)),                    # in_b
        const_spec((F_pad, N_pad)),                # 0.5*sensory_sigma
        const_spec((F_pad, N_pad)),                # 0.5*sensory_sigma*sensory_mu
        const_spec((F_pad, N_pad)),                # 0.5*sensory_W
        const_spec((F_pad, N_pad)),                # 0.5*sensory_W*sensory_erev
        const_spec((N_pad, N_pad)),                # 0.5*sigma
        const_spec((N_pad, N_pad)),                # 0.5*sigma*mu
        const_spec((N_pad, N_pad)),                # 0.5*W
        const_spec((N_pad, N_pad)),                # 0.5*W*erev
        const_spec((1, N_pad)),                    # cm_t
        const_spec((1, N_pad)),                    # num_base
        const_spec((1, N_pad)),                    # den_base
    ]
    out_spec = pl.BlockSpec((TB, N_pad), row_map)

    # ---- generation-aware VMEM budget ----
    gdb = jnp.dtype(gate_dtype).itemsize
    pdb = jnp.dtype(param_dtype).itemsize
    if N_pad <= 256:
        col_tile = N_pad
    elif N_pad % 256 == 0:
        col_tile = 256
    else:
        col_tile = 128
    const_bytes = sum(int(a.size) * a.dtype.itemsize for a in args[2:])
    resident = const_bytes * (1 if _HAS_BUFFERED else 2)
    io_bytes = 2 * (TB * F_pad * 4 + 2 * TB * N_pad * 4)
    upcast_bytes = (4 * (N_pad * N_pad + F_pad * N_pad) * gdb) if pdb < gdb else 0
    tmp_bytes = (2 * TB * F_pad * N_pad * gdb
                 + 3 * TB * N_pad * col_tile * gdb
                 + 6 * TB * N_pad * 4)
    cap = (48 << 20) if gen >= 7 else (100 << 20)
    vmem_limit = int(min(max(int(1.25 * (resident + io_bytes + upcast_bytes + tmp_bytes)),
                             32 << 20), cap))

    # ---- advisory cost estimate (transcendental-heavy, MXU-free kernel) ----
    e_rec = ODE_UNFOLDS * B_pad * N_pad * N_pad
    e_sen = B_pad * F_pad * N_pad
    cost = pl.CostEstimate(
        flops=6 * (e_rec + e_sen) + 10 * ODE_UNFOLDS * B_pad * N_pad,
        transcendentals=e_rec + e_sen,
        bytes_accessed=sum(int(a.size) * a.dtype.itemsize for a in args)
        + B_pad * N_pad * 4,
    )

    out_p = pl.pallas_call(
        functools.partial(_liquid_kernel, gate_dtype=gate_dtype),
        out_shape=jax.ShapeDtypeStruct((B_pad, N_pad), f32),
        grid_spec=pltpu.PrefetchScalarGridSpec(
            num_scalar_prefetch=0,
            grid=(grid_b,),
            in_specs=in_specs,
            out_specs=out_spec,
        ),
        input_output_aliases={1: 0},   # alias the (padded) state buffer to the output
        compiler_params=pltpu.CompilerParams(
            dimension_semantics=("parallel",),
            vmem_limit_bytes=vmem_limit,
        ),
        cost_estimate=cost,
    )(*args)

    next_state = out_p[:B, :N]
    return next_state, next_state


def make_params(key, input_size, num_units):
    """Deterministic parameter init mirroring LiquidNet._get_variables()."""
    ks = jax.random.split(key, 10)
    f32 = jnp.float32

    def uni(k, shape, lo, hi):
        return jax.random.uniform(k, shape, f32, lo, hi)

    return {
        # _map_inputs (Affine): w = ones, b = zeros
        "in_w": jnp.ones((1, input_size), f32),
        "in_b": jnp.zeros((1, input_size), f32),
        # sensory synapses [F, N]
        "sensory_mu": uni(ks[0], (input_size, num_units), 0.3, 0.8),
        "sensory_sigma": uni(ks[1], (input_size, num_units), 3.0, 8.0),
        "sensory_W": uni(ks[2], (input_size, num_units), 0.01, 1.0),
        "sensory_erev": (2.0 * jax.random.randint(
            ks[3], (input_size, num_units), 0, 2).astype(f32) - 1.0),
        # recurrent synapses [N, N]
        "mu": uni(ks[4], (num_units, num_units), 0.3, 0.8),
        "sigma": uni(ks[5], (num_units, num_units), 3.0, 8.0),
        "W": uni(ks[6], (num_units, num_units), 0.01, 1.0),
        "erev": (2.0 * jax.random.randint(
            ks[7], (num_units, num_units), 0, 2).astype(f32) - 1.0),
        # per-neuron params [1, N]
        "vleak": uni(ks[8], (1, num_units), -0.2, 0.2),
        "gleak": jnp.full((1, num_units), 1.0, f32),   # gleak_init_min == max == 1
        "cm_t": jnp.full((1, num_units), 0.5, f32),    # cm_init_min == max == 0.5
    }


def reference_forward(inputs, state, params):
    """Pure-JAX reference matching the PyTorch SemiImplicit ODE step."""
    x = inputs * params["in_w"][0] + params["in_b"][0]
    v_pre = state

    s_gate = jax.nn.sigmoid(params["sensory_sigma"] * (x[:, :, None] - params["sensory_mu"]))
    s_w_act = params["sensory_W"] * s_gate
    w_num_s = jnp.sum(s_w_act * params["sensory_erev"], axis=1)
    w_den_s = jnp.sum(s_w_act, axis=1)

    cm_t, gleak, vleak = params["cm_t"][0], params["gleak"][0], params["vleak"][0]
    for _ in range(ODE_UNFOLDS):
        gate = jax.nn.sigmoid(params["sigma"] * (v_pre[:, :, None] - params["mu"]))
        w_act = params["W"] * gate
        w_num = jnp.sum(w_act * params["erev"], axis=1) + w_num_s
        w_den = jnp.sum(w_act, axis=1) + w_den_s
        v_pre = (cm_t * v_pre + gleak * vleak + w_num) / (cm_t + gleak + w_den)
    return v_pre


# TODO(synk): Explicit / RungeKutta solver branches of the PyTorch module are not used by
# the default forward (SemiImplicit) and are not implemented here.

if __name__ == "__main__":
    batch = 4
    input_size = 16
    num_units = 32

    key = jax.random.PRNGKey(0)
    k_in, k_state, k_params = jax.random.split(key, 3)

    inputs = jax.random.normal(k_in, (batch, input_size), jnp.float32)
    state = jnp.zeros((batch, num_units), jnp.float32)
    params = make_params(k_params, input_size, num_units)

    ref = reference_forward(inputs, state, params)

    # Full-f32 path (storage + compute): tight tolerance.
    fwd_f32 = jax.jit(functools.partial(liquidnet_forward,
                                        gate_dtype=jnp.float32,
                                        param_dtype=jnp.float32))
    out_f32, _ = fwd_f32(inputs, state, params)
    out_f32 = jax.block_until_ready(out_f32)
    np.testing.assert_allclose(np.asarray(out_f32), np.asarray(ref), rtol=2e-3, atol=2e-3)

    # Platform-default path (bf16 gates on v6e/v7x, bf16 param storage on v5e+). Looser tol.
    fwd_auto = jax.jit(liquidnet_forward)
    out_auto, _ = fwd_auto(inputs, state, params)
    out_auto = jax.block_until_ready(out_auto)
    np.testing.assert_allclose(np.asarray(out_auto), np.asarray(ref), rtol=8e-2, atol=8e-2)

    print("KERNEL_OK")
</pallas_src>

<mosaic_0001>
module attributes {stable_mosaic.version = 11 : i64} {
  func.func @_liquid_kernel(%arg0: i32, %arg1: memref<8x16xf32, #tpu.memory_space<vmem>>, %arg2: memref<8x128xf32, #tpu.memory_space<vmem>>, %arg3: memref<1x16xf32, #tpu.memory_space<vmem>>, %arg4: memref<1x16xf32, #tpu.memory_space<vmem>>, %arg5: memref<16x128xf32, #tpu.memory_space<vmem>>, %arg6: memref<16x128xf32, #tpu.memory_space<vmem>>, %arg7: memref<16x128xf32, #tpu.memory_space<vmem>>, %arg8: memref<16x128xf32, #tpu.memory_space<vmem>>, %arg9: memref<128x128xf32, #tpu.memory_space<vmem>>, %arg10: memref<128x128xf32, #tpu.memory_space<vmem>>, %arg11: memref<128x128xf32, #tpu.memory_space<vmem>>, %arg12: memref<128x128xf32, #tpu.memory_space<vmem>>, %arg13: memref<1x128xf32, #tpu.memory_space<vmem>>, %arg14: memref<1x128xf32, #tpu.memory_space<vmem>>, %arg15: memref<1x128xf32, #tpu.memory_space<vmem>>, %arg16: memref<8x128xf32, #tpu.memory_space<vmem>>) attributes {dimension_semantics = [#tpu.dimension_semantics<parallel>], iteration_bounds = array<i64: 1>, scalar_prefetch = 0 : i64, scratch_operands = 0 : i64, tpu.core_type = #tpu.core_type<tc>, window_params = [{transform_indices = @transform_0, window_bounds = array<i64: 8, 16>}, {transform_indices = @transform_1, window_bounds = array<i64: 8, 128>}, {pipeline_mode = #tpu.pipeline_mode<synchronous>, transform_indices = @transform_2, window_bounds = array<i64: 1, 16>}, {pipeline_mode = #tpu.pipeline_mode<synchronous>, transform_indices = @transform_3, window_bounds = array<i64: 1, 16>}, {pipeline_mode = #tpu.pipeline_mode<synchronous>, transform_indices = @transform_4, window_bounds = array<i64: 16, 128>}, {pipeline_mode = #tpu.pipeline_mode<synchronous>, transform_indices = @transform_5, window_bounds = array<i64: 16, 128>}, {pipeline_mode = #tpu.pipeline_mode<synchronous>, transform_indices = @transform_6, window_bounds = array<i64: 16, 128>}, {pipeline_mode = #tpu.pipeline_mode<synchronous>, transform_indices = @transform_7, window_bounds = array<i64: 16, 128>}, {pipeline_mode = #tpu.pipeline_mode<synchronous>, transform_indices = @transform_8, window_bounds = array<i64: 128, 128>}, {pipeline_mode = #tpu.pipeline_mode<synchronous>, transform_indices = @transform_9, window_bounds = array<i64: 128, 128>}, {pipeline_mode = #tpu.pipeline_mode<synchronous>, transform_indices = @transform_10, window_bounds = array<i64: 128, 128>}, {pipeline_mode = #tpu.pipeline_mode<synchronous>, transform_indices = @transform_11, window_bounds = array<i64: 128, 128>}, {pipeline_mode = #tpu.pipeline_mode<synchronous>, transform_indices = @transform_12, window_bounds = array<i64: 1, 128>}, {pipeline_mode = #tpu.pipeline_mode<synchronous>, transform_indices = @transform_13, window_bounds = array<i64: 1, 128>}, {pipeline_mode = #tpu.pipeline_mode<synchronous>, transform_indices = @transform_14, window_bounds = array<i64: 1, 128>}, {transform_indices = @transform_15, window_bounds = array<i64: 8, 128>}]} {
    %c0 = arith.constant 0 : index
    %c0_0 = arith.constant 0 : index
    %0 = vector.load %arg1[%c0, %c0_0] : memref<8x16xf32, #tpu.memory_space<vmem>>, vector<8x16xf32>
    %c0_1 = arith.constant 0 : index
    %c0_2 = arith.constant 0 : index
    %1 = vector.load %arg3[%c0_1, %c0_2] : memref<1x16xf32, #tpu.memory_space<vmem>>, vector<1x16xf32>
    %2 = vector.broadcast %1 : vector<1x16xf32> to vector<8x16xf32>
    %3 = arith.mulf %0, %2 : vector<8x16xf32>
    %c0_3 = arith.constant 0 : index
    %c0_4 = arith.constant 0 : index
    %4 = vector.load %arg4[%c0_3, %c0_4] : memref<1x16xf32, #tpu.memory_space<vmem>>, vector<1x16xf32>
    %5 = vector.broadcast %4 : vector<1x16xf32> to vector<8x16xf32>
    %6 = arith.addf %3, %5 : vector<8x16xf32>
    %7 = vector.shape_cast %6 : vector<8x16xf32> to vector<8x16x1xf32>
    %c0_5 = arith.constant 0 : index
    %c0_6 = arith.constant 0 : index
    %8 = vector.load %arg5[%c0_5, %c0_6] : memref<16x128xf32, #tpu.memory_space<vmem>>, vector<16x128xf32>
    %9 = vector.shape_cast %8 : vector<16x128xf32> to vector<1x16x128xf32>
    %10 = vector.broadcast %9 : vector<1x16x128xf32> to vector<8x16x128xf32>
    %11 = vector.broadcast %7 : vector<8x16x1xf32> to vector<8x16x128xf32>
    %12 = arith.mulf %10, %11 : vector<8x16x128xf32>
    %c0_7 = arith.constant 0 : index
    %c0_8 = arith.constant 0 : index
    %13 = vector.load %arg6[%c0_7, %c0_8] : memref<16x128xf32, #tpu.memory_space<vmem>>, vector<16x128xf32>
    %14 = vector.shape_cast %13 : vector<16x128xf32> to vector<1x16x128xf32>
    %15 = vector.broadcast %14 : vector<1x16x128xf32> to vector<8x16x128xf32>
    %16 = arith.subf %12, %15 : vector<8x16x128xf32>
    %17 = math.tanh %16 : vector<8x16x128xf32>
    %c0_9 = arith.constant 0 : index
    %c0_10 = arith.constant 0 : index
    %18 = vector.load %arg14[%c0_9, %c0_10] : memref<1x128xf32, #tpu.memory_space<vmem>>, vector<1x128xf32>
    %c0_11 = arith.constant 0 : index
    %c0_12 = arith.constant 0 : index
    %19 = vector.load %arg8[%c0_11, %c0_12] : memref<16x128xf32, #tpu.memory_space<vmem>>, vector<16x128xf32>
    %20 = vector.shape_cast %19 : vector<16x128xf32> to vector<1x16x128xf32>
    %21 = vector.broadcast %20 : vector<1x16x128xf32> to vector<8x16x128xf32>
    %22 = arith.mulf %17, %21 : vector<8x16x128xf32>
    %cst = arith.constant dense<0.000000e+00> : vector<8x128xf32>
    %23 = vector.multi_reduction <add>, %22, %cst [1] : vector<8x16x128xf32> to vector<8x128xf32>
    %24 = vector.broadcast %18 : vector<1x128xf32> to vector<8x128xf32>
    %25 = arith.addf %24, %23 : vector<8x128xf32>
    %c0_13 = arith.constant 0 : index
    %c0_14 = arith.constant 0 : index
    %26 = vector.load %arg15[%c0_13, %c0_14] : memref<1x128xf32, #tpu.memory_space<vmem>>, vector<1x128xf32>
    %c0_15 = arith.constant 0 : index
    %c0_16 = arith.constant 0 : index
    %27 = vector.load %arg7[%c0_15, %c0_16] : memref<16x128xf32, #tpu.memory_space<vmem>>, vector<16x128xf32>
    %28 = vector.shape_cast %27 : vector<16x128xf32> to vector<1x16x128xf32>
    %29 = vector.broadcast %28 : vector<1x16x128xf32> to vector<8x16x128xf32>
    %30 = arith.mulf %17, %29 : vector<8x16x128xf32>
    %cst_17 = arith.constant dense<0.000000e+00> : vector<8x128xf32>
    %31 = vector.multi_reduction <add>, %30, %cst_17 [1] : vector<8x16x128xf32> to vector<8x128xf32>
    %32 = vector.broadcast %26 : vector<1x128xf32> to vector<8x128xf32>
    %33 = arith.addf %32, %31 : vector<8x128xf32>
    %c0_18 = arith.constant 0 : index
    %c0_19 = arith.constant 0 : index
    %34 = vector.load %arg13[%c0_18, %c0_19] : memref<1x128xf32, #tpu.memory_space<vmem>>, vector<1x128xf32>
    %c0_20 = arith.constant 0 : index
    %c0_21 = arith.constant 0 : index
    %35 = vector.load %arg2[%c0_20, %c0_21] : memref<8x128xf32, #tpu.memory_space<vmem>>, vector<8x128xf32>
    %c0_i32 = arith.constant 0 : i32
    %c6_i32 = arith.constant 6 : i32
    %36 = arith.addi %c0_i32, %c6_i32 : i32
    %c1_i32 = arith.constant 1 : i32
    %37 = scf.for %arg17 = %c0_i32 to %36 step %c1_i32 iter_args(%arg18 = %35) -> (vector<8x128xf32>)  : i32 {
      %39 = vector.shape_cast %arg18 : vector<8x128xf32> to vector<8x128x1xf32>
      %c0_24 = arith.constant 0 : index
      %c0_25 = arith.constant 0 : index
      %40 = vector.load %arg9[%c0_24, %c0_25] : memref<128x128xf32, #tpu.memory_space<vmem>>, vector<128x128xf32>
      %41 = vector.shape_cast %40 : vector<128x128xf32> to vector<1x128x128xf32>
      %42 = vector.broadcast %41 : vector<1x128x128xf32> to vector<8x128x128xf32>
      %43 = vector.broadcast %39 : vector<8x128x1xf32> to vector<8x128x128xf32>
      %44 = arith.mulf %42, %43 : vector<8x128x128xf32>
      %c0_26 = arith.constant 0 : index
      %c0_27 = arith.constant 0 : index
      %45 = vector.load %arg10[%c0_26, %c0_27] : memref<128x128xf32, #tpu.memory_space<vmem>>, vector<128x128xf32>
      %46 = vector.shape_cast %45 : vector<128x128xf32> to vector<1x128x128xf32>
      %47 = vector.broadcast %46 : vector<1x128x128xf32> to vector<8x128x128xf32>
      %48 = arith.subf %44, %47 : vector<8x128x128xf32>
      %49 = math.tanh %48 : vector<8x128x128xf32>
      %c0_28 = arith.constant 0 : index
      %c0_29 = arith.constant 0 : index
      %50 = vector.load %arg12[%c0_28, %c0_29] : memref<128x128xf32, #tpu.memory_space<vmem>>, vector<128x128xf32>
      %51 = vector.shape_cast %50 : vector<128x128xf32> to vector<1x128x128xf32>
      %52 = vector.broadcast %51 : vector<1x128x128xf32> to vector<8x128x128xf32>
      %53 = arith.mulf %49, %52 : vector<8x128x128xf32>
      %cst_30 = arith.constant dense<0.000000e+00> : vector<8x128xf32>
      %54 = vector.multi_reduction <add>, %53, %cst_30 [1] : vector<8x128x128xf32> to vector<8x128xf32>
      %c0_31 = arith.constant 0 : index
      %c0_32 = arith.constant 0 : index
      %55 = vector.load %arg11[%c0_31, %c0_32] : memref<128x128xf32, #tpu.memory_space<vmem>>, vector<128x128xf32>
      %56 = vector.shape_cast %55 : vector<128x128xf32> to vector<1x128x128xf32>
      %57 = vector.broadcast %56 : vector<1x128x128xf32> to vector<8x128x128xf32>
      %58 = arith.mulf %49, %57 : vector<8x128x128xf32>
      %cst_33 = arith.constant dense<0.000000e+00> : vector<8x128xf32>
      %59 = vector.multi_reduction <add>, %58, %cst_33 [1] : vector<8x128x128xf32> to vector<8x128xf32>
      %60 = arith.addf %25, %54 : vector<8x128xf32>
      %61 = arith.addf %33, %59 : vector<8x128xf32>
      %62 = tpu.reciprocal %61 {approx = true} : vector<8x128xf32> -> vector<8x128xf32>
      %63 = arith.mulf %61, %62 : vector<8x128xf32>
      %cst_34 = arith.constant 2.000000e+00 : f32
      %64 = vector.broadcast %cst_34 : f32 to vector<8x128xf32>
      %65 = arith.subf %64, %63 : vector<8x128xf32>
      %66 = arith.mulf %62, %65 : vector<8x128xf32>
      %67 = vector.broadcast %34 : vector<1x128xf32> to vector<8x128xf32>
      %68 = arith.mulf %67, %arg18 : vector<8x128xf32>
      %69 = arith.addf %68, %60 : vector<8x128xf32>
      %70 = arith.mulf %69, %66 : vector<8x128xf32>
      scf.yield %70 : vector<8x128xf32>
    }
    %c0_22 = arith.constant 0 : index
    %c0_23 = arith.constant 0 : index
    %38 = vector.load %arg16[%c0_22, %c0_23] : memref<8x128xf32, #tpu.memory_space<vmem>>, vector<8x128xf32>
    tpu.vector_store %arg16[%c0_22, %c0_23], %37 {strides = array<i32>} : memref<8x128xf32, #tpu.memory_space<vmem>>, vector<8x128xf32>,
    return
  }
  func.func @transform_0(%arg0: i32) -> (i32, i32) {
    %c0_i32 = arith.constant 0 : i32
    %c0_i32_0 = arith.constant 0 : i32
    return %arg0, %c0_i32 : i32, i32
  }
  func.func @transform_1(%arg0: i32) -> (i32, i32) {
    %c0_i32 = arith.constant 0 : i32
    %c0_i32_0 = arith.constant 0 : i32
    return %arg0, %c0_i32 : i32, i32
  }
  func.func @transform_2(%arg0: i32) -> (i32, i32) {
    %c0_i32 = arith.constant 0 : i32
    %c0_i32_0 = arith.constant 0 : i32
    %c0_i32_1 = arith.constant 0 : i32
    return %c0_i32, %c0_i32_0 : i32, i32
  }
  func.func @transform_3(%arg0: i32) -> (i32, i32) {
    %c0_i32 = arith.constant 0 : i32
    %c0_i32_0 = arith.constant 0 : i32
    %c0_i32_1 = arith.constant 0 : i32
    return %c0_i32, %c0_i32_0 : i32, i32
  }
  func.func @transform_4(%arg0: i32) -> (i32, i32) {
    %c0_i32 = arith.constant 0 : i32
    %c0_i32_0 = arith.constant 0 : i32
    %c0_i32_1 = arith.constant 0 : i32
    return %c0_i32, %c0_i32_0 : i32, i32
  }
  func.func @transform_5(%arg0: i32) -> (i32, i32) {
    %c0_i32 = arith.constant 0 : i32
    %c0_i32_0 = arith.constant 0 : i32
    %c0_i32_1 = arith.constant 0 : i32
    return %c0_i32, %c0_i32_0 : i32, i32
  }
  func.func @transform_6(%arg0: i32) -> (i32, i32) {
    %c0_i32 = arith.constant 0 : i32
    %c0_i32_0 = arith.constant 0 : i32
    %c0_i32_1 = arith.constant 0 : i32
    return %c0_i32, %c0_i32_0 : i32, i32
  }
  func.func @transform_7(%arg0: i32) -> (i32, i32) {
    %c0_i32 = arith.constant 0 : i32
    %c0_i32_0 = arith.constant 0 : i32
    %c0_i32_1 = arith.constant 0 : i32
    return %c0_i32, %c0_i32_0 : i32, i32
  }
  func.func @transform_8(%arg0: i32) -> (i32, i32) {
    %c0_i32 = arith.constant 0 : i32
    %c0_i32_0 = arith.constant 0 : i32
    %c0_i32_1 = arith.constant 0 : i32
    return %c0_i32, %c0_i32_0 : i32, i32
  }
  func.func @transform_9(%arg0: i32) -> (i32, i32) {
    %c0_i32 = arith.constant 0 : i32
    %c0_i32_0 = arith.constant 0 : i32
    %c0_i32_1 = arith.constant 0 : i32
    return %c0_i32, %c0_i32_0 : i32, i32
  }
  func.func @transform_10(%arg0: i32) -> (i32, i32) {
    %c0_i32 = arith.constant 0 : i32
    %c0_i32_0 = arith.constant 0 : i32
    %c0_i32_1 = arith.constant 0 : i32
    return %c0_i32, %c0_i32_0 : i32, i32
  }
  func.func @transform_11(%arg0: i32) -> (i32, i32) {
    %c0_i32 = arith.constant 0 : i32
    %c0_i32_0 = arith.constant 0 : i32
    %c0_i32_1 = arith.constant 0 : i32
    return %c0_i32, %c0_i32_0 : i32, i32
  }
  func.func @transform_12(%arg0: i32) -> (i32, i32) {
    %c0_i32 = arith.constant 0 : i32
    %c0_i32_0 = arith.constant 0 : i32
    %c0_i32_1 = arith.constant 0 : i32
    return %c0_i32, %c0_i32_0 : i32, i32
  }
  func.func @transform_13(%arg0: i32) -> (i32, i32) {
    %c0_i32 = arith.constant 0 : i32
    %c0_i32_0 = arith.constant 0 : i32
    %c0_i32_1 = arith.constant 0 : i32
    return %c0_i32, %c0_i32_0 : i32, i32
  }
  func.func @transform_14(%arg0: i32) -> (i32, i32) {
    %c0_i32 = arith.constant 0 : i32
    %c0_i32_0 = arith.constant 0 : i32
    %c0_i32_1 = arith.constant 0 : i32
    return %c0_i32, %c0_i32_0 : i32, i32
  }
  func.func @transform_15(%arg0: i32) -> (i32, i32) {
    %c0_i32 = arith.constant 0 : i32
    %c0_i32_0 = arith.constant 0 : i32
    return %arg0, %c0_i32 : i32, i32
  }
}

</mosaic_0001>

<bundles_post_ra>
// kernel: liquidnet_forward.1
= control target key start
LH: loop header
LB: loop body
LE: loop exit
PB: predicated region body
PF: predicated region fallthrough
CT: control target
= control target key end

     0   :  { %v62_v0 = vlaneseq  ;;  %vm303_vm0 = vcmask 1041409   ;;  %vm305_vm1 = vcmask 1042434   ;;  %vm307_vm2 = vcmask 1043459   ;;  %s4918_s0 = inlined_call_operand.vmem [shape: f32[8,16], index: 0, kind: input, shape index: {}]   ;;  %s4919_s2 = inlined_call_operand.vmem [shape: f32[1,16], index: 2, kind: input, shape index: {}]   ;;  %s4920_s3 = inlined_call_operand.vmem [shape: f32[1,16], index: 3, kind: input, shape index: {}]   ;;  %s4921_s13 = inlined_call_operand.vmem [shape: f32[1,128], index: 13, kind: input, shape index: {}]   ;;  %s4922_s14 = inlined_call_operand.vmem [shape: f32[1,128], index: 14, kind: input, shape index: {}]   ;;  %s4923_s8 = inlined_call_operand.vmem [shape: f32[128,128], index: 8, kind: input, shape index: {}]   ;;  %s4924_s9 = inlined_call_operand.vmem [shape: f32[128,128], index: 9, kind: input, shape index: {}]   ;;  %s4925_s10 = inlined_call_operand.vmem [shape: f32[128,128], index: 10, kind: input, shape index: {}]   ;;  %s4926_s11 = inlined_call_operand.vmem [shape: f32[128,128], index: 11, kind: input, shape index: {}]   ;;  %s4927_s15 = inlined_call_operand.vmem [shape: f32[8,128], index: 15, kind: output, shape index: {}, may-alias: {1,15}]   ;;  %s4928_s4 = inlined_call_operand.vmem [shape: f32[16,128], index: 4, kind: input, shape index: {}]   ;;  %s4929_s5 = inlined_call_operand.vmem [shape: f32[16,128], index: 5, kind: input, shape index: {}]   ;;  %s4930_s7 = inlined_call_operand.vmem [shape: f32[16,128], index: 7, kind: input, shape index: {}]   ;;  %s4931_s6 = inlined_call_operand.vmem [shape: f32[16,128], index: 6, kind: input, shape index: {}]   ;;  %s4932_s1 = inlined_call_operand.vmem [shape: f32[8,128], index: 1, kind: input, shape index: {}, may-alias: {1,15}]   ;;  %s4933_s12 = inlined_call_operand.vmem [shape: f32[1,128], index: 12, kind: input, shape index: {}]  }
   0x1   :  { %v50_v1 = vld [vmem:[%s4918_s0] sm:$0xff]  ;;  %v2956_v19 = vld [vmem:[%s4928_s4 + $0x8] sm:$0xff]  ;;  %vm309_vm3 = vcmask 1044484   ;;  %vm311_vm4 = vcmask 1045509   ;;  %vm313_vm5 = vcmask 1046534   ;;  %vm315_vm6 = vcmask 1047559  }
   0x2   :  { %v2323_v2 = vld [vmem:[%s4919_s2] ss:$0 sm:$0xff]  ;;  %v2934_v3 = vshrl.u32 %v62_v0, 7  ;;  %v2968_v24 = vld [vmem:[%s4929_s5 + $0x8] sm:$0xff] }
   0x3   :  { %v2324_v4 = vld [vmem:[%s4920_s3] ss:$0 sm:$0xff]  ;;  %v55_v5 = vmul.f32 %v2323_v2, %v50_v1  ;;  %v2982_v37 = vld [vmem:[%s4930_s7 + $0x8] sm:$0xff] }
   0x4   :  { %5104 = vst [vmem:[#allocation2_spill] sm:$0xff] %v2934_v3  ;;  %2313 = vset.pattern.permute.xlu1 %v2934_v3  ;;  %2312 = vset.pattern.permute.xlu0 %v2934_v3  ;;  %v2943_v10 = vadd.s32 8, %v2934_v3  ;;  %v2961_v20 = vld [vmem:[%s4928_s4] sm:$0xff]  ;;  %v2998_v46 = vld [vmem:[%s4931_s6 + $0x8] sm:$0xff] }
   0x5   :  { %v60_v6 = vadd.f32 %v2324_v4, %v55_v5  ;;  %2314 = vset.pattern.permute.xlu2 %v2934_v3  ;;  %v2973_v26 = vld [vmem:[%s4929_s5] sm:$0xff] }
   0x6   :  { %5105 = vst [vmem:[#allocation3_spill] sm:$0xff] %v2943_v10  ;;  %v2989_v41 = vld [vmem:[%s4930_s7] sm:$0xff] }
   0x7   :  { %v74_v7 = vperm.slane %v60_v6, 1  ;;  %v61_v8 = vperm.slane %v60_v6, 0  ;;  %v87_v9 = vperm.slane %v60_v6, 2  ;;  %v113_v11 = vperm.slane %v60_v6, 4  ;;  %v3007_v51 = vld [vmem:[%s4931_s6] sm:$0xff] }
   0x8   :  { %v100_v12 = vperm.slane %v60_v6, 3  ;;  %v139_v13 = vperm.slane %v60_v6, 6  ;;  %v126_v14 = vperm.slane %v60_v6, 5  ;;  %v152_v15 = vperm.slane %v60_v6, 7 }
   0xc   :  { %79 = vperm.xlu1 %2313, %v74_v7   ;;  %66 = vperm.xlu0 %2312, %v61_v8  }
   0xd   :  { %92 = vperm.xlu2 %2314, %v87_v9  }
  0x14   :  { %2315 = vset.pattern.permute.xlu1 %v2943_v10  ;;  %118 = vperm.xlu0 %2312, %v113_v11  }
  0x15   :  { %2317 = vset.pattern.permute.xlu2 %v2943_v10 }
  0x1c   :  { %85 = vperm.xlu1 %2315, %v74_v7   ;;  %2318 = vset.pattern.permute.xlu0 %v2943_v10 }
  0x1d   :  { %98 = vperm.xlu2 %2317, %v87_v9  }
  0x24   :  { %2316 = vset.pattern.permute.xlu1 %v2934_v3  ;;  %72 = vperm.xlu0 %2318, %v61_v8  }
  0x25   :  { %111 = vperm.xlu2 %2317, %v100_v12  }
  0x2c   :  { %105 = vperm.xlu1 %2316, %v100_v12   ;;  %150 = vperm.xlu0 %2318, %v139_v13  }
  0x2d   :  { %2320 = vset.pattern.permute.xlu2 %v2934_v3 }
  0x34   :  { %2319 = vset.pattern.permute.xlu1 %v2943_v10 }
  0x35   :  { %131 = vperm.xlu2 %2320, %v126_v14  }
  0x3c   :  { %124 = vperm.xlu1 %2319, %v113_v11  }
  0x3d   :  { %144 = vperm.xlu2 %2320, %v139_v13  }
  0x44   :  { %137 = vperm.xlu1 %2319, %v126_v14  }
  0x45   :  { %2322 = vset.pattern.permute.xlu2 %v2943_v10 }
  0x4c   :  { %2321 = vset.pattern.permute.xlu1 %v2934_v3 }
  0x4d   :  { %163 = vperm.xlu2 %2322, %v152_v15  }
  0x54   :  { %157 = vperm.xlu1 %2321, %v152_v15  }
  0x67   :  { %v93_v16 = vpop.permute.xlu2 %92 }
  0x68   :  { %v171_v22 = vmul.f32 %v2961_v20, %v93_v16 }
  0x6a   :  { %v189_v27 = vsub.f32 %v171_v22, %v2973_v26 }
  0x6c   :  { %2327 = vtanh.f32 %v189_v27 }
  0x72   :  { %v2328_v34 = vpop.eup %2327 }
  0x73   :  { %v224_v43 = vmul.f32 %v2328_v34, %v2989_v41  ;;  %v326_v53 = vmul.f32 %v2328_v34, %v3007_v51 }
  0x77   :  { %v99_v18 = vpop.permute.xlu2 %98 }
  0x78   :  { %v172_v23 = vmul.f32 %v2956_v19, %v99_v18 }
  0x7a   :  { %v190_v28 = vsub.f32 %v172_v23, %v2968_v24 }
  0x7c   :  { %2329 = vtanh.f32 %v190_v28 }
  0x7e   :  { %v67_v17 = vpop.permute.xlu0 %66  ;;  %v80_v21 = vpop.permute.xlu1 %79 }
  0x7f   :  { %v112_v29 = vpop.permute.xlu2 %111  ;;  %v167_v32 = vmul.f32 %v2961_v20, %v67_v17  ;;  %v169_v40 = vmul.f32 %v2961_v20, %v80_v21 }
  0x80   :  { %v174_v47 = vmul.f32 %v2956_v19, %v112_v29 }
  0x81   :  { %v185_v42 = vsub.f32 %v167_v32, %v2973_v26  ;;  %v187_v49 = vsub.f32 %v169_v40, %v2973_v26 }
  0x82   :  { %v2330_v36 = vpop.eup %2329  ;;  %v192_v56 = vsub.f32 %v174_v47, %v2968_v24 }
  0x83   :  { %v225_v44 = vmul.f32 %v2330_v36, %v2982_v37  ;;  %2331 = vtanh.f32 %v185_v42  ;;  %v327_v55 = vmul.f32 %v2330_v36, %v2998_v46 }
  0x85   :  { %v250_v54 = vadd.f32 %v225_v44, %v224_v43  ;;  %v352_v1 = vadd.f32 %v327_v55, %v326_v53 }
  0x86   :  { %v119_v25 = vpop.permute.xlu0 %118 }
  0x87   :  { %v175_v50 = vmul.f32 %v2961_v20, %v119_v25  ;;  %v251_v0 = vrot.slane %v250_v54, 4  ;;  %v353_v13 = vrot.slane %v352_v1, 4 }
  0x89   :  { %v193_v60 = vsub.f32 %v175_v50, %v2973_v26  ;;  %v2332_v5 = vpop.eup %2331  ;;  %v252_v12 = vadd.f32 %v251_v0, %v250_v54 }
  0x8a   :  { %v220_v15 = vmul.f32 %v2332_v5, %v2989_v41  ;;  %v322_v16 = vmul.f32 %v2332_v5, %v3007_v51 }
  0x8e   :  { %v86_v30 = vpop.permute.xlu1 %85 }
  0x8f   :  { %v132_v33 = vpop.permute.xlu2 %131  ;;  %v170_v35 = vmul.f32 %v2956_v19, %v86_v30  ;;  %v354_v30 = vadd.f32 %v353_v13, %v352_v1 }
  0x90   :  { %v177_v57 = vmul.f32 %v2961_v20, %v132_v33 }
  0x91   :  { %v188_v45 = vsub.f32 %v170_v35, %v2968_v24  ;;  %v355_v43 = vrot.slane %v354_v30, 2 }
  0x92   :  { %v195_v6 = vsub.f32 %v177_v57, %v2973_v26 }
  0x93   :  { %2333 = vtanh.f32 %v188_v45 }
  0x96   :  { %v73_v31 = vpop.permute.xlu0 %72 }
  0x97   :  { %v168_v38 = vmul.f32 %v2956_v19, %v73_v31  ;;  %v145_v58 = vpop.permute.xlu2 %144 }
  0x98   :  { %v179_v2 = vmul.f32 %v2961_v20, %v145_v58 }
  0x99   :  { %v186_v48 = vsub.f32 %v168_v38, %v2968_v24  ;;  %v2334_v7 = vpop.eup %2333  ;;  %v253_v38 = vrot.slane %v252_v12, 2 }
  0x9a   :  { %v197_v14 = vsub.f32 %v179_v2, %v2973_v26  ;;  %v223_v17 = vmul.f32 %v2334_v7, %v2982_v37  ;;  %v325_v31 = vmul.f32 %v2334_v7, %v2998_v46 }
  0x9b   :  { %2335 = vtanh.f32 %v186_v48  ;;  %v3038_v55 = vadd.f32 %v253_v38, %v252_v12 }
  0x9c   :  { %2337 = vtanh.f32 %v187_v49 }
  0x9d   :  { %2339 = vtanh.f32 %v192_v56 }
  0x9e   :  { %v106_v39 = vpop.permute.xlu1 %105  ;;  %v151_v63 = vpop.permute.xlu0 %150  ;;  %2341 = vtanh.f32 %v193_v60 }
  0x9f   :  { %v173_v52 = vmul.f32 %v2961_v20, %v106_v39  ;;  %v180_v8 = vmul.f32 %v2956_v19, %v151_v63 }
  0xa1   :  { %v191_v62 = vsub.f32 %v173_v52, %v2973_v26  ;;  %v2336_v9 = vpop.eup %2335  ;;  %v198_v23 = vsub.f32 %v180_v8, %v2968_v24 }
  0xa2   :  { %v2338_v11 = vpop.eup %2337  ;;  %v221_v21 = vmul.f32 %v2336_v9, %v2982_v37  ;;  %v323_v22 = vmul.f32 %v2336_v9, %v2998_v46 }
  0xa3   :  { %2343 = vtanh.f32 %v191_v62  ;;  %v2340_v27 = vpop.eup %2339  ;;  %v222_v28 = vmul.f32 %v2338_v11, %v2989_v41  ;;  %v324_v34 = vmul.f32 %v2338_v11, %v3007_v51 }
  0xa4   :  { %v2342_v29 = vpop.eup %2341  ;;  %v236_v39 = vadd.f32 %v221_v21, %v220_v15  ;;  %v338_v40 = vadd.f32 %v323_v22, %v322_v16  ;;  %v227_v50 = vmul.f32 %v2340_v27, %v2982_v37  ;;  %v329_v56 = vmul.f32 %v2340_v27, %v2998_v46  ;;  %v3061_v21 = vld [vmem:[%s4932_s1] sm:$0xff]  }
  0xa5   :  { %v243_v35 = vadd.f32 %v223_v17, %v222_v28  ;;  %v345_v44 = vadd.f32 %v325_v31, %v324_v34  ;;  %v330_v60 = vmul.f32 %v2342_v29, %v3007_v51  ;;  %v356_v28 = vadd.f32 %v355_v43, %v354_v30 }
  0xa6   :  { %v237_v57 = vrot.slane %v236_v39, 4  ;;  %v339_v58 = vrot.slane %v338_v40, 4 }
  0xa7   :  { %v164_v48 = vpop.permute.xlu2 %163  ;;  %v244_v49 = vrot.slane %v243_v35, 4  ;;  %v346_v0 = vrot.slane %v345_v44, 4 }
  0xa8   :  { %v182_v62 = vmul.f32 %v2956_v19, %v164_v48  ;;  %v238_v11 = vadd.f32 %v237_v57, %v236_v39  ;;  %v340_v12 = vadd.f32 %v339_v58, %v338_v40 }
  0xa9   :  { %v2344_v33 = vpop.eup %2343 }
  0xaa   :  { %v226_v45 = vmul.f32 %v2344_v33, %v2989_v41  ;;  %v328_v47 = vmul.f32 %v2344_v33, %v3007_v51  ;;  %v200_v17 = vsub.f32 %v182_v62, %v2968_v24  ;;  %v341_v34 = vrot.slane %v340_v12, 2 }
  0xac   :  { %v257_v1 = vadd.f32 %v227_v50, %v226_v45  ;;  %v359_v2 = vadd.f32 %v329_v56, %v328_v47  ;;  %v357_v50 = vrot.slane %v356_v28, 1  ;;  %v342_v56 = vadd.f32 %v341_v34, %v340_v12 }
  0xae   :  { %v125_v59 = vpop.permute.xlu1 %124  ;;  %v258_v22 = vrot.slane %v257_v1, 4 }
  0xaf   :  { %v176_v61 = vmul.f32 %v2956_v19, %v125_v59  ;;  %v228_v59 = vmul.f32 %v2342_v29, %v2989_v41  ;;  %v347_v29 = vadd.f32 %v346_v0, %v345_v44 }
  0xb0   :  { %v259_v47 = vadd.f32 %v258_v22, %v257_v1 }
  0xb1   :  { %v194_v4 = vsub.f32 %v176_v61, %v2968_v24 }
  0xb3   :  { %2345 = vtanh.f32 %v194_v4 }
  0xb4   :  { %2347 = vtanh.f32 %v195_v6  ;;  %v245_v6 = vadd.f32 %v244_v49, %v243_v35  ;;  %v348_v49 = vrot.slane %v347_v29, 2 }
  0xb5   :  { %2349 = vtanh.f32 %v197_v14 }
  0xb6   :  { %v138_v18 = vpop.permute.xlu1 %137  ;;  %2351 = vtanh.f32 %v198_v23  ;;  %v360_v23 = vrot.slane %v359_v2, 4  ;;  %v246_v45 = vrot.slane %v245_v6, 2  ;;  %v349_v62 = vadd.f32 %v348_v49, %v347_v29 }
  0xb7   :  { %v178_v25 = vmul.f32 %v2956_v19, %v138_v18  ;;  %v3056_v18 = vld [vmem:[%s4933_s12] sm:$0x1] }
  0xb8   :  { %5106 = vst [vmem:[#allocation4_spill] sm:$0xff] %v3056_v18  ;;  %v361_v48 = vadd.f32 %v360_v23, %v359_v2  ;;  %v358_v2 = vadd.f32 %v357_v50, %v356_v28 }
  0xb9   :  { %v196_v32 = vsub.f32 %v178_v25, %v2968_v24  ;;  %v2346_v36 = vpop.eup %2345  ;;  %v239_v24 = vrot.slane %v238_v11, 2 }
  0xba   :  { %v2348_v42 = vpop.eup %2347  ;;  %v229_v52 = vmul.f32 %v2346_v36, %v2982_v37  ;;  %v331_v53 = vmul.f32 %v2346_v36, %v2998_v46 }
  0xbb   :  { %2353 = vtanh.f32 %v196_v32  ;;  %v2350_v54 = vpop.eup %2349  ;;  %v230_v61 = vmul.f32 %v2348_v42, %v2989_v41  ;;  %v332_v4 = vmul.f32 %v2348_v42, %v3007_v51  ;;  %v255_v42 = vrot.slane %v3038_v55, 1 }
  0xbc   :  { %v2352_v63 = vpop.eup %2351  ;;  %v232_v7 = vmul.f32 %v2350_v54, %v2989_v41  ;;  %v264_v8 = vadd.f32 %v229_v52, %v228_v59  ;;  %v366_v9 = vadd.f32 %v331_v53, %v330_v60  ;;  %v334_v19 = vmul.f32 %v2350_v54, %v3007_v51 }
  0xbd   :  { %v233_v15 = vmul.f32 %v2352_v63, %v2982_v37  ;;  %v335_v16 = vmul.f32 %v2352_v63, %v2998_v46  ;;  %2355 = vtanh.f32 %v200_v17  ;;  %v240_v52 = vadd.f32 %v239_v24, %v238_v11 }
  0xbe   :  { %v265_v31 = vrot.slane %v264_v8, 4  ;;  %v367_v32 = vrot.slane %v366_v9, 4  ;;  %v362_v59 = vrot.slane %v361_v48, 2  ;;  %v256_v1 = vadd.f32 %v255_v42, %v3038_v55 }
  0xbf   :  { %v278_v38 = vadd.f32 %v233_v15, %v232_v7  ;;  %v380_v39 = vadd.f32 %v335_v16, %v334_v19  ;;  %v343_v7 = vrot.slane %v342_v56, 1  ;;  %v350_v15 = vrot.slane %v349_v62, 1 }
  0xc0   :  { %v266_v30 = vadd.f32 %v265_v31, %v264_v8  ;;  %v368_v43 = vadd.f32 %v367_v32, %v366_v9  ;;  %v363_v12 = vadd.f32 %v362_v59, %v361_v48 }
  0xc1   :  { %v2354_v5 = vpop.eup %2353  ;;  %v279_v57 = vrot.slane %v278_v38, 4  ;;  %v381_v58 = vrot.slane %v380_v39, 4  ;;  %v344_v28 = vadd.f32 %v343_v7, %v342_v56  ;;  %v351_v34 = vadd.f32 %v350_v15, %v349_v62 }
  0xc2   :  { %v231_v13 = vmul.f32 %v2354_v5, %v2982_v37  ;;  %v333_v14 = vmul.f32 %v2354_v5, %v2998_v46  ;;  %v267_v63 = vrot.slane %v266_v30, 2  ;;  %v369_v0 = vrot.slane %v368_v43, 2 }
  0xc3   :  { %v2356_v60 = vpop.eup %2355  ;;  %v241_v5 = vrot.slane %v240_v52, 1  ;;  %v280_v8 = vadd.f32 %v279_v57, %v278_v38  ;;  %v382_v9 = vadd.f32 %v381_v58, %v380_v39 }
  0xc4   :  { %v271_v25 = vadd.f32 %v231_v13, %v230_v61  ;;  %v373_v27 = vadd.f32 %v333_v14, %v332_v4  ;;  %v247_v61 = vadd.f32 %v246_v45, %v245_v6  ;;  %v235_v13 = vmul.f32 %v2356_v60, %v2982_v37 }
  0xc5   :  { %v337_v14 = vmul.f32 %v2356_v60, %v2998_v46  ;;  %v268_v16 = vadd.f32 %v267_v63, %v266_v30  ;;  %v370_v55 = vadd.f32 %v369_v0, %v368_v43  ;;  %v281_v29 = vrot.slane %v280_v8, 2 }
  0xc6   :  { %v158_v33 = vpop.permute.xlu1 %157  ;;  %v272_v35 = vrot.slane %v271_v25, 4  ;;  %v374_v36 = vrot.slane %v373_v27, 4  ;;  %v248_v19 = vrot.slane %v247_v61, 1  ;;  %v383_v31 = vrot.slane %v382_v9, 2 }
  0xc7   :  { %v181_v40 = vmul.f32 %v2961_v20, %v158_v33  ;;  %v260_v20 = vrot.slane %v259_v47, 2  ;;  %v364_v37 = vrot.slane %v363_v12, 1  ;;  %v282_v45 = vadd.f32 %v281_v29, %v280_v8 }
  0xc8   :  { %v273_v53 = vadd.f32 %v272_v35, %v271_v25  ;;  %v375_v54 = vadd.f32 %v374_v36, %v373_v27  ;;  %v242_v27 = vadd.f32 %v241_v5, %v240_v52  ;;  %v249_v24 = vadd.f32 %v248_v19, %v247_v61 }
  0xc9   :  { %v199_v44 = vsub.f32 %v181_v40, %v2973_v26  ;;  %v261_v11 = vadd.f32 %v260_v20, %v259_v47  ;;  %v269_v35 = vrot.slane %v268_v16, 1  ;;  %v371_v36 = vrot.slane %v370_v55, 1 }
  0xca   :  { %v274_v26 = vrot.slane %v273_v53, 2  ;;  %v376_v4 = vrot.slane %v375_v54, 2  ;;  %v384_v47 = vadd.f32 %v383_v31, %v382_v9  ;;  %v365_v49 = vadd.f32 %v364_v37, %v363_v12  ;;  %v2325_v9 = vld [vmem:[%s4921_s13] ss:$0 sm:$0xff]  ;;  %s3098_s13 = smov 0  }
  0xcb   :  { %2357 = vtanh.f32 %v199_v44  ;;  %v262_v32 = vrot.slane %v261_v11, 1  ;;  %v270_v44 = vadd.f32 %v269_v35, %v268_v16  ;;  %v372_v50 = vadd.f32 %v371_v36, %v370_v55 }
  0xcc   :  { %v275_v17 = vadd.f32 %v274_v26, %v273_v53  ;;  %v377_v22 = vadd.f32 %v376_v4, %v375_v54  ;;  %v283_v20 = vrot.slane %v282_v45, 1  ;;  %v385_v59 = vrot.slane %v384_v47, 1 }
  0xcd   :  { %v263_v48 = vadd.f32 %v262_v32, %v261_v11  ;;  %v2326_v11 = vld [vmem:[%s4922_s14] ss:$0 sm:$0xff] }
  0xce   :  { %v276_v38 = vrot.slane %v275_v17, 1  ;;  %v378_v39 = vrot.slane %v377_v22, 1  ;;  %v386_v8 = vadd.f32 %v385_v59, %v384_v47 }
  0xd0   :  { %v277_v52 = vadd.f32 %v276_v38, %v275_v17  ;;  %v379_v53 = vadd.f32 %v378_v39, %v377_v22 }
  0xd1   :  { %v2358_v6 = vpop.eup %2357 }
  0xd2   :  { %v234_v23 = vmul.f32 %v2358_v6, %v2989_v41  ;;  %v336_v25 = vmul.f32 %v2358_v6, %v3007_v51  ;;  %v304_v41 = vsel %vm303_vm0, %v249_v24, %v242_v27  ;;  %v405_v51 = vsel %vm303_vm0, %v351_v34, %v344_v28 }
  0xd3   :  { %v306_v57 = vsel %vm305_vm1, %v256_v1, %v304_v41  ;;  %v406_v58 = vsel %vm305_vm1, %v358_v2, %v405_v51  ;;  %v284_v2 = vadd.f32 %v283_v20, %v282_v45 }
  0xd4   :  { %v285_v33 = vadd.f32 %v235_v13, %v234_v23  ;;  %v387_v46 = vadd.f32 %v337_v14, %v336_v25  ;;  %v308_v60 = vsel %vm307_vm2, %v263_v48, %v306_v57  ;;  %v407_v61 = vsel %vm307_vm2, %v365_v49, %v406_v58 }
  0xd5   :  { %v310_v0 = vsel %vm309_vm3, %v270_v44, %v308_v60  ;;  %v408_v26 = vsel %vm309_vm3, %v372_v50, %v407_v61 }
  0xd6   :  { %v286_v40 = vrot.slane %v285_v33, 4  ;;  %v388_v42 = vrot.slane %v387_v46, 4  ;;  %v312_v4 = vsel %vm311_vm4, %v277_v52, %v310_v0  ;;  %v409_v5 = vsel %vm311_vm4, %v379_v53, %v408_v26 }
  0xd7   :  { %v314_v14 = vsel %vm313_vm5, %v284_v2, %v312_v4  ;;  %v410_v6 = vsel %vm313_vm5, %v386_v8, %v409_v5 }
  0xd8   :  { %v287_v30 = vadd.f32 %v286_v40, %v285_v33  ;;  %v389_v43 = vadd.f32 %v388_v42, %v387_v46 }
  0xda   :  { %v288_v54 = vrot.slane %v287_v30, 2  ;;  %v390_v56 = vrot.slane %v389_v43, 2 }
  0xdc   :  { %v289_v62 = vadd.f32 %v288_v54, %v287_v30  ;;  %v391_v63 = vadd.f32 %v390_v56, %v389_v43 }
  0xde   :  { %v290_v1 = vrot.slane %v289_v62, 1  ;;  %v392_v7 = vrot.slane %v391_v63, 1 }
  0xe0   :  { %v291_v12 = vadd.f32 %v290_v1, %v289_v62  ;;  %v393_v13 = vadd.f32 %v392_v7, %v391_v63 }
  0xe2   :  { %v316_v19 = vsel %vm315_vm6, %v291_v12, %v314_v14  ;;  %v411_v15 = vsel %vm315_vm6, %v393_v13, %v410_v6 }
  0xe3   :  { %v3091_v16 = vadd.f32 %v2325_v9, %v316_v19  ;;  %v3093_v55 = vadd.f32 %v2326_v11, %v411_v15 }
  0xe5   :  { %5107 = vst [vmem:[#allocation5_spill] sm:$0xff] %v3091_v16 }
  0xe6   :  { %5108 = vst [vmem:[#allocation6_spill] sm:$0xff] %v3093_v55 }
  0xe7 LB: > { %v5109_v10 = vld [vmem:[#allocation3_spill] sm:$0xff]  ;;  %v5110_v3 = vld [vmem:[#allocation2_spill] sm:$0xff]  ;;  %5111 = vst [vmem:[#allocation7_spill] sm:$0xff] %v2842_v21  ;;  %v3116_v23 = vperm.slane %v2842_v21, 0  ;;  %v3122_v25 = vperm.slane %v2842_v21, 2  ;;  %v3170_v24 = vperm.slane %v2842_v21, 3  ;;  %s2846_s13 = sphi %s3098_s13, %s421_s13   ;;  %v2842_v21 = vphi %v3061_v21, %v5368_v21  }
  0xe8   : > { %2359 = vset.pattern.permute.xlu0 %v5109_v10  ;;  %v3108_v17 = vadd.s32 32, %v5110_v3  ;;  %v3111_v22 = vadd.s32 16, %v5110_v3  ;;  %v3125_v27 = vadd.s32 40, %v5110_v3  ;;  %v3128_v28 = vadd.s32 24, %v5110_v3  ;;  %v3230_v47 = vld [vmem:[%s4923_s8 + $0x8] sm:$0xff]  ;;  %v3240_v30 = vld [vmem:[%s4923_s8 + $0x10] sm:$0xff] }
  0xe9   : > { %v3134_v29 = vadd.s32 48, %v5110_v3  ;;  %v3140_v31 = vadd.s32 56, %v5110_v3  ;;  %v3146_v32 = vadd.s32 88, %v5110_v3  ;;  %v3152_v37 = vadd.s32 80, %v5110_v3  ;;  %v3246_v50 = vld [vmem:[%s4924_s9 + $0x8] sm:$0xff]  ;;  %v3251_v52 = vld [vmem:[%s4923_s8 + $0x18] sm:$0xff] }
  0xea   : > { %5112 = vst [vmem:[#allocation8_spill] sm:$0xff] %v3108_v17  ;;  %2362 = vset.pattern.permute.xlu2 %v3108_v17  ;;  %2360 = vset.pattern.permute.xlu1 %v3111_v22  ;;  %v3155_v33 = vadd.s32 72, %v5110_v3  ;;  %v3164_v46 = vadd.s32 96, %v5110_v3  ;;  %v3176_v34 = vadd.s32 120, %v5110_v3  ;;  %v3179_v35 = vadd.s32 112, %v5110_v3  ;;  %v3260_v56 = vld [vmem:[%s4924_s9 + $0x10] sm:$0xff] }
  0xeb   : > { %5113 = vst [vmem:[#allocation9_spill] sm:$0xff] %v3111_v22  ;;  %v3191_v36 = vperm.slane %v2842_v21, 1  ;;  %v3206_v38 = vperm.slane %v2842_v21, 4  ;;  %v3212_v40 = vadd.s32 64, %v5110_v3  ;;  %v3255_v54 = vadd.s32 104, %v5110_v3  ;;  %v3266_v58 = vld [vmem:[%s4923_s8 + $0x20] sm:$0xff] }
  0xec   : > { %5114 = vst [vmem:[#allocation10_spill] sm:$0xff] %v3125_v27  ;;  %v3273_v59 = vld [vmem:[%s4923_s8] sm:$0xff]  ;;  %v3278_v60 = vld [vmem:[%s4924_s9 + $0x18] sm:$0xff]  ;;  %v3284_v62 = vld [vmem:[%s4923_s8 + $0x28] sm:$0xff]  ;;  %s421_s13 = sadd.s32 1, %s2846_s13  }
  0xed   : > { %5115 = vst [vmem:[#allocation11_spill] sm:$0xff] %v3128_v28  ;;  %v3291_v0 = vld [vmem:[%s4924_s9] sm:$0xff]  ;;  %v3304_v2 = vld [vmem:[%s4923_s8 + $0x30] sm:$0xff]  ;;  %v3310_v11 = vld [vmem:[%s4923_s8 + $0x38] sm:$0xff]  ;;  %p418_p0 = scmp.ge.s32.totalorder %s421_s13, 6  }
  0xee   : > { %5116 = vst [vmem:[#allocation12_spill] sm:$0xff] %v3134_v29  ;;  %v3298_v1 = vld [vmem:[%s4924_s9 + $0x20] sm:$0xff]  ;;  %v3316_v13 = vld [vmem:[%s4924_s9 + $0x28] sm:$0xff]  ;;  %v3323_v19 = vld [vmem:[%s4924_s9 + $0x30] sm:$0xff] }
  0xef   : > { %5117 = vst [vmem:[#allocation13_spill] sm:$0xff] %v3140_v31  ;;  %v3385_v16 = vld [vmem:[%s4925_s10 + $0x18] sm:$0xff] }
  0xf0   : > { %434 = vperm.xlu0 %2359, %v3116_v23   ;;  %5118 = vst [vmem:[#allocation14_spill] sm:$0xff] %v3146_v32 }
  0xf1   : > { %5119 = vst [vmem:[#allocation15_spill] sm:$0xff] %v3152_v37 }
  0xf2   : > { %452 = vperm.xlu2 %2362, %v3116_v23   ;;  %440 = vperm.xlu1 %2360, %v3116_v23   ;;  %5120 = vst [vmem:[#allocation16_spill] sm:$0xff] %v3155_v33 }
  0xf3   : > { %5121 = vst [vmem:[#allocation17_spill] sm:$0xff] %v3164_v46 }
  0xf4   : > { %5122 = vst [vmem:[#allocation18_spill] sm:$0xff] %v3176_v34 }
  0xf5   : > { %5123 = vst [vmem:[#allocation19_spill] sm:$0xff] %v3179_v35 }
  0xf6   : > { %5124 = vst [vmem:[#allocation20_spill] sm:$0xff] %v3206_v38 }
  0xf7   : > { %5125 = vst [vmem:[#allocation21_spill] sm:$0xff] %v3212_v40 }
  0xf8   : > { %628 = vperm.xlu0 %2359, %v3122_v25   ;;  %5128 = vst [vmem:[#allocation24_spill] sm:$0xff] %v3255_v54 }
  0xf9   : > { %5129 = vst [vmem:[#allocation25_spill] sm:$0xff] %v3310_v11 }
  0xfa   : > { %2363 = vset.pattern.permute.xlu2 %v3125_v27  ;;  %2361 = vset.pattern.permute.xlu1 %v3128_v28 }
 0x100   : > { %2390 = vset.pattern.permute.xlu0 %v3134_v29 }
 0x102   : > { %458 = vperm.xlu2 %2363, %v3116_v23   ;;  %446 = vperm.xlu1 %2361, %v3116_v23  }
 0x108   : > { %658 = vperm.xlu0 %2390, %v3122_v25  }
 0x10a   : > { %2365 = vset.pattern.permute.xlu2 %v3140_v31  ;;  %2364 = vset.pattern.permute.xlu1 %v3134_v29 }
 0x110   : > { %2395 = vset.pattern.permute.xlu0 %v3146_v32 }
 0x112   : > { %470 = vperm.xlu2 %2365, %v3116_v23   ;;  %464 = vperm.xlu1 %2364, %v3116_v23  }
 0x118   : > { %688 = vperm.xlu0 %2395, %v3122_v25  }
 0x11a   : > { %2367 = vset.pattern.permute.xlu2 %v3152_v37  ;;  %2366 = vset.pattern.permute.xlu1 %v3155_v33 }
 0x120   : > { %2396 = vset.pattern.permute.xlu0 %v5110_v3 }
 0x122   : > { %488 = vperm.xlu2 %2367, %v3116_v23   ;;  %482 = vperm.xlu1 %2366, %v3116_v23  }
 0x128   : > { %428 = vperm.xlu0 %2396, %v3116_v23  }
 0x12a   : > { %2369 = vset.pattern.permute.xlu2 %v3164_v46  ;;  %2368 = vset.pattern.permute.xlu1 %v3146_v32 }
 0x130   : > { %719 = vperm.xlu0 %2396, %v3170_v24  }
 0x132   : > { %500 = vperm.xlu2 %2369, %v3116_v23   ;;  %494 = vperm.xlu1 %2368, %v3116_v23  }
 0x138   : > { %2405 = vset.pattern.permute.xlu0 %v3125_v27 }
 0x13a   : > { %2371 = vset.pattern.permute.xlu2 %v3176_v34  ;;  %2370 = vset.pattern.permute.xlu1 %v3179_v35 }
 0x140   : > { %749 = vperm.xlu0 %2405, %v3170_v24  }
 0x142   : > { %518 = vperm.xlu2 %2371, %v3116_v23   ;;  %512 = vperm.xlu1 %2370, %v3116_v23  }
 0x148   : > { %2410 = vset.pattern.permute.xlu0 %v3152_v37 }
 0x14a   : > { %2373 = vset.pattern.permute.xlu2 %v5109_v10  ;;  %2372 = vset.pattern.permute.xlu1 %v5110_v3 }
 0x14c   : > { %v453_v51 = vpop.permute.xlu2 %452 }
 0x14d   : > { %v1219_v4 = vmul.f32 %v3266_v58, %v453_v51 }
 0x14f   : > { %v1363_v14 = vsub.f32 %v1219_v4, %v3298_v1 }
 0x150   : > { %779 = vperm.xlu0 %2410, %v3170_v24  }
 0x152   : > { %531 = vperm.xlu2 %2373, %v3191_v36   ;;  %525 = vperm.xlu1 %2372, %v3191_v36  }
 0x158   : > { %2415 = vset.pattern.permute.xlu0 %v3176_v34 }
 0x15a   : > { %2375 = vset.pattern.permute.xlu2 %v3108_v17  ;;  %2374 = vset.pattern.permute.xlu1 %v3128_v28 }
 0x15c   : > { %v459_v49 = vpop.permute.xlu2 %458 }
 0x15d   : > { %v1220_v9 = vmul.f32 %v3284_v62, %v459_v49  ;;  %v3336_v49 = vld [vmem:[%s4925_s10 + $0x8] sm:$0xff] }
 0x15f   : > { %v1364_v51 = vsub.f32 %v1220_v9, %v3316_v13  ;;  %v3372_v9 = vld [vmem:[%s4925_s10 + $0x10] sm:$0xff] }
 0x160   : > { %809 = vperm.xlu0 %2415, %v3170_v24  }
 0x162   : > { %549 = vperm.xlu2 %2375, %v3191_v36   ;;  %543 = vperm.xlu1 %2374, %v3191_v36   ;;  %v435_v39 = vpop.permute.xlu0 %434 }
 0x163   : > { %v1216_v43 = vmul.f32 %v3230_v47, %v435_v39 }
 0x164   : > { %v441_v45 = vpop.permute.xlu1 %440 }
 0x165   : > { %v1217_v53 = vmul.f32 %v3240_v30, %v441_v45  ;;  %v1360_v57 = vsub.f32 %v1216_v43, %v3246_v50  ;;  %v3331_v45 = vld [vmem:[%s4926_s11 + $0x8] sm:$0xff]  ;;  %v3341_v43 = vld [vmem:[%s4924_s9 + $0x38] sm:$0xff] }
 0x166   : > { %5130 = vst [vmem:[#allocation26_spill] sm:$0xff] %v3341_v43 }
 0x167   : > { %v1361_v61 = vsub.f32 %v1217_v53, %v3260_v56  ;;  %2478 = vtanh.f32 %v1360_v57  ;;  %v3351_v57 = vld [vmem:[%s4926_s11] sm:$0xff] }
 0x168   : > { %2420 = vset.pattern.permute.xlu0 %v3108_v17 }
 0x169   : > { %2480 = vtanh.f32 %v1361_v61 }
 0x16a   : > { %2377 = vset.pattern.permute.xlu2 %v3134_v29  ;;  %2376 = vset.pattern.permute.xlu1 %v3125_v27  ;;  %v3217_v42 = vpop.permute.xlu0 %628 }
 0x16c   : > { %v471_v63 = vpop.permute.xlu2 %470 }
 0x16d   : > { %v1222_v15 = vmul.f32 %v3310_v11, %v471_v63  ;;  %v2479_v39 = vpop.eup %2478  ;;  %v3361_v63 = vld [vmem:[%s4926_s11 + $0x10] sm:$0xff] }
 0x16e   : > { %v1944_v4 = vmul.f32 %v2479_v39, %v3336_v49 }
 0x16f   : > { %v2481_v61 = vpop.eup %2480 }
 0x170   : > { %840 = vperm.xlu0 %2420, %v3206_v38  }
 0x172   : > { %561 = vperm.xlu2 %2377, %v3191_v36   ;;  %555 = vperm.xlu1 %2376, %v3191_v36  }
 0x174   : > { %v447_v44 = vpop.permute.xlu1 %446 }
 0x175   : > { %v1218_v20 = vmul.f32 %v3251_v52, %v447_v44 }
 0x177   : > { %v1362_v7 = vsub.f32 %v1218_v20, %v3278_v60  ;;  %v3356_v20 = vld [vmem:[%s4925_s10] sm:$0xff] }
 0x178   : > { %2425 = vset.pattern.permute.xlu0 %v3155_v33 }
 0x17a   : > { %2379 = vset.pattern.permute.xlu2 %v3155_v33  ;;  %2378 = vset.pattern.permute.xlu1 %v3212_v40  ;;  %v3222_v41 = vpop.permute.xlu0 %658 }
 0x17b   : > { %5126 = vst [vmem:[#allocation22_spill] sm:$0xff] %v3222_v41 }
 0x17c   : > { %v3343_v44 = vpop.permute.xlu2 %488 }
 0x17d   : > { %5131 = vst [vmem:[#allocation27_spill] sm:$0xff] %v3343_v44  ;;  %v3397_v44 = vld [vmem:[%s4925_s10 + $0x20] sm:$0xff] }
 0x180   : > { %870 = vperm.xlu0 %2425, %v3206_v38  }
 0x182   : > { %579 = vperm.xlu2 %2379, %v3191_v36   ;;  %573 = vperm.xlu1 %2378, %v3191_v36  }
 0x184   : > { %v465_v8 = vpop.permute.xlu1 %464 }
 0x185   : > { %v1221_v6 = vmul.f32 %v3304_v2, %v465_v8 }
 0x187   : > { %v1365_v53 = vsub.f32 %v1221_v6, %v3323_v19 }
 0x188   : > { %2430 = vset.pattern.permute.xlu0 %v3179_v35 }
 0x18a   : > { %2381 = vset.pattern.permute.xlu2 %v3146_v32  ;;  %2380 = vset.pattern.permute.xlu1 %v3152_v37  ;;  %v3233_v48 = vpop.permute.xlu0 %688  ;;  %v3427_v32 = vld [vmem:[%s4925_s10 + $0x30] sm:$0xff] }
 0x18b   : > { %5127 = vst [vmem:[#allocation23_spill] sm:$0xff] %v3233_v48  ;;  %v3413_v48 = vld [vmem:[%s4925_s10 + $0x28] sm:$0xff] }
 0x18c   : > { %5135 = vst [vmem:[#allocation31_spill] sm:$0xff] %v3413_v48 }
 0x190   : > { %900 = vperm.xlu0 %2430, %v3206_v38  }
 0x192   : > { %591 = vperm.xlu2 %2381, %v3191_v36   ;;  %585 = vperm.xlu1 %2380, %v3191_v36  }
 0x198   : > { %2431 = vset.pattern.permute.xlu0 %v3111_v22 }
 0x19a   : > { %2383 = vset.pattern.permute.xlu2 %v3179_v35  ;;  %2382 = vset.pattern.permute.xlu1 %v3255_v54  ;;  %v429_v26 = vpop.permute.xlu0 %428 }
 0x19b   : > { %v1215_v5 = vmul.f32 %v3273_v59, %v429_v26  ;;  %v1632_v26 = vmul.f32 %v2479_v39, %v3331_v45  ;;  %v1633_v39 = vmul.f32 %v2481_v61, %v3361_v63 }
 0x19d   : > { %v1359_v12 = vsub.f32 %v1215_v5, %v3291_v0  ;;  %v1366_v5 = vsub.f32 %v1222_v15, %v3341_v43 }
 0x19f   : > { %2482 = vtanh.f32 %v1359_v12 }
 0x1a0   : > { %2484 = vtanh.f32 %v1362_v7  ;;  %537 = vperm.xlu0 %2431, %v3191_v36   ;;  %v3367_v7 = vperm.slane %v2842_v21, 6 }
 0x1a1   : > { %2486 = vtanh.f32 %v1363_v14  ;;  %v3377_v14 = vld [vmem:[%s4926_s11 + $0x18] sm:$0xff] }
 0x1a2   : > { %609 = vperm.xlu2 %2383, %v3191_v36   ;;  %603 = vperm.xlu1 %2382, %v3191_v36   ;;  %5132 = vst [vmem:[#allocation28_spill] sm:$0xff] %v3367_v7  ;;  %2488 = vtanh.f32 %v1364_v51  ;;  %v1945_v51 = vmul.f32 %v2481_v61, %v3372_v9 }
 0x1a3   : > { %2490 = vtanh.f32 %v1365_v53 }
 0x1a4   : > { %2492 = vtanh.f32 %v1366_v5 }
 0x1a5   : > { %v2483_v8 = vpop.eup %2482 }
 0x1a6   : > { %v2485_v12 = vpop.eup %2484  ;;  %v1631_v6 = vmul.f32 %v2483_v8, %v3351_v57  ;;  %v1943_v15 = vmul.f32 %v2483_v8, %v3356_v20  ;;  %v3392_v8 = vld [vmem:[%s4926_s11 + $0x20] sm:$0xff] }
 0x1a7   : > { %v2487_v38 = vpop.eup %2486  ;;  %v1634_v53 = vmul.f32 %v2485_v12, %v3377_v14  ;;  %v1946_v61 = vmul.f32 %v2485_v12, %v3385_v16  ;;  %v3417_v12 = vpop.permute.xlu1 %482 }
 0x1a8   : > { %v1759_v18 = vadd.f32 %v1632_v26, %v1631_v6  ;;  %v2071_v55 = vadd.f32 %v1944_v4, %v1943_v15  ;;  %1022 = vperm.xlu0 %2431, %v3367_v7   ;;  %v3401_v4 = vpop.permute.xlu2 %500  ;;  %v2489_v6 = vpop.eup %2488  ;;  %v3408_v15 = vld [vmem:[%s4926_s11 + $0x28] sm:$0xff]  ;;  %5136 = vst [vmem:[#allocation32_spill] sm:$0xff] %v3417_v12 }
 0x1a9   : > { %5133 = vst [vmem:[#allocation29_spill] sm:$0xff] %v3401_v4  ;;  %v3422_v4 = vld [vmem:[%s4926_s11 + $0x30] sm:$0xff]  ;;  %v1636_v29 = vmul.f32 %v2489_v6, %v3408_v15 }
 0x1aa   : > { %v1760_v5 = vadd.f32 %v1759_v18, %v1633_v39  ;;  %v2072_v26 = vadd.f32 %v2071_v55, %v1945_v51  ;;  %2385 = vset.pattern.permute.xlu2 %v5110_v3  ;;  %2384 = vset.pattern.permute.xlu1 %v3176_v34  ;;  %5134 = vst [vmem:[#allocation30_spill] sm:$0xff] %v3408_v15  ;;  %v2491_v3 = vpop.eup %2490 }
 0x1ab   : > { %v1635_v18 = vmul.f32 %v2487_v38, %v3392_v8  ;;  %v1947_v55 = vmul.f32 %v2487_v38, %v3397_v44  ;;  %5137 = vst [vmem:[#allocation33_spill] sm:$0xff] %v3422_v4  ;;  %v2493_v41 = vpop.eup %2492  ;;  %v1948_v38 = vmul.f32 %v2489_v6, %v3413_v48  ;;  %v1637_v12 = vmul.f32 %v2491_v3, %v3422_v4 }
 0x1ac   : > { %v1761_v39 = vadd.f32 %v1760_v5, %v1634_v53  ;;  %v2073_v51 = vadd.f32 %v2072_v26, %v1946_v61  ;;  %v3434_v53 = vld [vmem:[%s4926_s11 + $0x38] sm:$0xff]  ;;  %v1949_v43 = vmul.f32 %v2491_v3, %v3427_v32 }
 0x1ad   : > { %v3439_v26 = vld [vmem:[%s4925_s10 + $0x38] sm:$0xff]  ;;  %v1638_v48 = vmul.f32 %v2493_v41, %v3434_v53 }
 0x1ae   : > { %v1762_v61 = vadd.f32 %v1761_v39, %v1635_v18  ;;  %v2074_v5 = vadd.f32 %v2073_v51, %v1947_v55  ;;  %v1950_v15 = vmul.f32 %v2493_v41, %v3439_v26 }
 0x1af   : > { %v3450_v51 = vpop.permute.xlu1 %494 }
 0x1b0   : > { %2448 = vset.pattern.permute.xlu0 %v3140_v31  ;;  %v1763_v11 = vadd.f32 %v1762_v61, %v1636_v29  ;;  %v2075_v6 = vadd.f32 %v2074_v5, %v1948_v38  ;;  %v3448_v18 = vpop.permute.xlu2 %518  ;;  %5139 = vst [vmem:[#allocation35_spill] sm:$0xff] %v3450_v51  ;;  %v3471_v61 = vpop.permute.xlu0 %719 }
 0x1b1   : > { %5138 = vst [vmem:[#allocation34_spill] sm:$0xff] %v3448_v18 }
 0x1b2   : > { %622 = vperm.xlu2 %2385, %v3122_v25   ;;  %615 = vperm.xlu1 %2384, %v3191_v36   ;;  %v1764_v55 = vadd.f32 %v1763_v11, %v1637_v12  ;;  %v2076_v39 = vadd.f32 %v2075_v6, %v1949_v43  ;;  %5143 = vst [vmem:[#allocation39_spill] sm:$0xff] %v3471_v61 }
 0x1b4   : > { %v3452_v4 = vadd.f32 %v1764_v55, %v1638_v48  ;;  %v3454_v3 = vadd.f32 %v2076_v39, %v1950_v15 }
 0x1b6   : > { %5140 = vst [vmem:[#allocation36_spill] sm:$0xff] %v3452_v4 }
 0x1b7   : > { %5141 = vst [vmem:[#allocation37_spill] sm:$0xff] %v3454_v3  ;;  %v3459_v41 = vpop.permute.xlu1 %512 }
 0x1b8   : > { %567 = vperm.xlu0 %2448, %v3191_v36   ;;  %v532_v29 = vpop.permute.xlu2 %531  ;;  %5142 = vst [vmem:[#allocation38_spill] sm:$0xff] %v3459_v41 }
 0x1b9   : > { %v1232_v38 = vmul.f32 %v3230_v47, %v532_v29 }
 0x1ba   : > { %2387 = vset.pattern.permute.xlu2 %v3128_v28  ;;  %2386 = vset.pattern.permute.xlu1 %v3111_v22 }
 0x1bb   : > { %v1376_v11 = vsub.f32 %v1232_v38, %v3246_v50 }
 0x1bd   : > { %2494 = vtanh.f32 %v1376_v11 }
 0x1c0   : > { %1052 = vperm.xlu0 %2448, %v3367_v7  }
 0x1c2   : > { %640 = vperm.xlu2 %2387, %v3122_v25   ;;  %634 = vperm.xlu1 %2386, %v3122_v25  }
 0x1c3   : > { %v2495_v12 = vpop.eup %2494 }
 0x1c4   : > { %v526_v48 = vpop.permute.xlu1 %525  ;;  %v1648_v5 = vmul.f32 %v2495_v12, %v3331_v45  ;;  %v1960_v6 = vmul.f32 %v2495_v12, %v3336_v49 }
 0x1c5   : > { %v1231_v43 = vmul.f32 %v3273_v59, %v526_v48  ;;  %v3484_v48 = vpop.permute.xlu0 %749 }
 0x1c6   : > { %5144 = vst [vmem:[#allocation40_spill] sm:$0xff] %v3484_v48 }
 0x1c7   : > { %v1375_v15 = vsub.f32 %v1231_v43, %v3291_v0 }
 0x1c8   : > { %2453 = vset.pattern.permute.xlu0 %v3164_v46 }
 0x1c9   : > { %2496 = vtanh.f32 %v1375_v15  ;;  %v3495_v15 = vperm.slane %v2842_v21, 5 }
 0x1ca   : > { %2389 = vset.pattern.permute.xlu2 %v3125_v27  ;;  %2388 = vset.pattern.permute.xlu1 %v3108_v17 }
 0x1cb   : > { %5146 = vst [vmem:[#allocation42_spill] sm:$0xff] %v3495_v15 }
 0x1cd   : > { %v3490_v43 = vpop.permute.xlu0 %779 }
 0x1ce   : > { %5145 = vst [vmem:[#allocation41_spill] sm:$0xff] %v3490_v43 }
 0x1cf   : > { %v2497_v55 = vpop.eup %2496 }
 0x1d0   : > { %v1647_v39 = vmul.f32 %v2497_v55, %v3351_v57  ;;  %v1959_v29 = vmul.f32 %v2497_v55, %v3356_v20  ;;  %597 = vperm.xlu0 %2453, %v3191_v36   ;;  %v550_v36 = vpop.permute.xlu2 %549 }
 0x1d2   : > { %v3478_v38 = vadd.f32 %v1648_v5, %v1647_v39  ;;  %v3480_v11 = vadd.f32 %v1960_v6, %v1959_v29  ;;  %652 = vperm.xlu2 %2389, %v3122_v25   ;;  %646 = vperm.xlu1 %2388, %v3122_v25   ;;  %v3503_v6 = vperm.slane %v2842_v21, 7 }
 0x1d4   : > { %5148 = vst [vmem:[#allocation44_spill] sm:$0xff] %v3503_v6 }
 0x1d5   : > { %v3500_v12 = vpop.permute.xlu0 %809 }
 0x1d6   : > { %5147 = vst [vmem:[#allocation43_spill] sm:$0xff] %v3500_v12 }
 0x1d8   : > { %1082 = vperm.xlu0 %2453, %v3367_v7   ;;  %v562_v5 = vpop.permute.xlu2 %561  ;;  %v544_v7 = vpop.permute.xlu1 %543 }
 0x1d9   : > { %v1234_v61 = vmul.f32 %v3251_v52, %v544_v7 }
 0x1da   : > { %2392 = vset.pattern.permute.xlu2 %v3212_v40  ;;  %2391 = vset.pattern.permute.xlu1 %v3140_v31 }
 0x1e0   : > { %2458 = vset.pattern.permute.xlu0 %v3128_v28  ;;  %v3508_v55 = vpop.permute.xlu2 %579 }
 0x1e2   : > { %670 = vperm.xlu2 %2392, %v3122_v25   ;;  %664 = vperm.xlu1 %2391, %v3122_v25   ;;  %v3510_v39 = vpop.permute.xlu0 %840 }
 0x1e3   : > { %5149 = vst [vmem:[#allocation45_spill] sm:$0xff] %v3510_v39  ;;  %v1248_v39 = vmul.f32 %v3230_v47, %v3217_v42  ;;  %v1235_v42 = vmul.f32 %v3266_v58, %v550_v36  ;;  %v1378_v47 = vsub.f32 %v1234_v61, %v3278_v60 }
 0x1e8   : > { %931 = vperm.xlu0 %2458, %v3495_v15  }
 0x1ea   : > { %2394 = vset.pattern.permute.xlu2 %v3152_v37  ;;  %2393 = vset.pattern.permute.xlu1 %v3155_v33  ;;  %v1392_v37 = vsub.f32 %v1248_v39, %v3246_v50 }
 0x1ec   : > { %v3515_v29 = vpop.permute.xlu2 %591  ;;  %2498 = vtanh.f32 %v1392_v37 }
 0x1f0   : > { %1125 = vperm.xlu0 %2458, %v3503_v6  }
 0x1f2   : > { %682 = vperm.xlu2 %2394, %v3122_v25   ;;  %676 = vperm.xlu1 %2393, %v3122_v25   ;;  %v3517_v21 = vpop.permute.xlu0 %870  ;;  %v2499_v39 = vpop.eup %2498 }
 0x1f3   : > { %5150 = vst [vmem:[#allocation46_spill] sm:$0xff] %v3517_v21  ;;  %v556_v21 = vpop.permute.xlu1 %555  ;;  %v1976_v61 = vmul.f32 %v2499_v39, %v3336_v49 }
 0x1f4   : > { %v1236_v37 = vmul.f32 %v3284_v62, %v556_v21 }
 0x1f8   : > { %2463 = vset.pattern.permute.xlu0 %v3212_v40 }
 0x1fa   : > { %2398 = vset.pattern.permute.xlu2 %v3255_v54  ;;  %2397 = vset.pattern.permute.xlu1 %v3164_v46 }
 0x1fb   : > { %v574_v7 = vpop.permute.xlu1 %573 }
 0x1fc   : > { %v3522_v12 = vpop.permute.xlu2 %609 }
 0x200   : > { %476 = vperm.xlu0 %2463, %v3116_v23  }
 0x202   : > { %700 = vperm.xlu2 %2398, %v3122_v25   ;;  %694 = vperm.xlu1 %2397, %v3122_v25   ;;  %v3527_v43 = vpop.permute.xlu0 %900 }
 0x203   : > { %5151 = vst [vmem:[#allocation47_spill] sm:$0xff] %v3527_v43 }
 0x208   : > { %961 = vperm.xlu0 %2463, %v3495_v15  }
 0x20a   : > { %2400 = vset.pattern.permute.xlu2 %v3176_v34  ;;  %2399 = vset.pattern.permute.xlu1 %v3179_v35 }
 0x20c   : > { %v623_v27 = vpop.permute.xlu2 %622 }
 0x20d   : > { %v1247_v48 = vmul.f32 %v3273_v59, %v623_v27  ;;  %v1379_v59 = vsub.f32 %v1235_v42, %v3298_v1 }
 0x20f   : > { %v1391_v18 = vsub.f32 %v1247_v48, %v3291_v0  ;;  %v1237_v0 = vmul.f32 %v3304_v2, %v562_v5 }
 0x210   : > { %1155 = vperm.xlu0 %2463, %v3503_v6  }
 0x211   : > { %2500 = vtanh.f32 %v1391_v18  ;;  %v1664_v18 = vmul.f32 %v2499_v39, %v3331_v45  ;;  %v1381_v21 = vsub.f32 %v1237_v0, %v3323_v19 }
 0x212   : > { %712 = vperm.xlu2 %2400, %v3122_v25   ;;  %706 = vperm.xlu1 %2399, %v3122_v25   ;;  %v538_v50 = vpop.permute.xlu0 %537  ;;  %2502 = vtanh.f32 %v1378_v47  ;;  %v1380_v25 = vsub.f32 %v1236_v37, %v3316_v13 }
 0x213   : > { %v1233_v27 = vmul.f32 %v3240_v30, %v538_v50  ;;  %v586_v50 = vpop.permute.xlu1 %585 }
 0x215   : > { %v1377_v48 = vsub.f32 %v1233_v27, %v3260_v56 }
 0x217   : > { %v2501_v36 = vpop.eup %2500  ;;  %2504 = vtanh.f32 %v1377_v48 }
 0x218   : > { %2506 = vtanh.f32 %v1379_v59  ;;  %2468 = vset.pattern.permute.xlu0 %v3255_v54  ;;  %v1663_v42 = vmul.f32 %v2501_v36, %v3351_v57  ;;  %v1975_v5 = vmul.f32 %v2501_v36, %v3356_v20  ;;  %v2503_v47 = vpop.eup %2502 }
 0x219   : > { %2508 = vtanh.f32 %v1380_v25  ;;  %v1650_v20 = vmul.f32 %v2503_v47, %v3377_v14  ;;  %v1962_v59 = vmul.f32 %v2503_v47, %v3385_v16  ;;  %v5154_v47 = vld [vmem:[#allocation31_spill] sm:$0xff] }
 0x21a   : > { %2402 = vset.pattern.permute.xlu2 %v3111_v22  ;;  %2401 = vset.pattern.permute.xlu1 %v5109_v10  ;;  %v3554_v45 = vadd.f32 %v1664_v18, %v1663_v42  ;;  %v3556_v49 = vadd.f32 %v1976_v61, %v1975_v5  ;;  %2510 = vtanh.f32 %v1381_v21  ;;  %v3565_v18 = vpop.permute.xlu0 %1022  ;;  %v3586_v22 = vld [vmem:[%s4923_s8 + $0x48] sm:$0xff]  ;;  %v3707_v10 = vld [vmem:[%s4923_s8 + $0x70] sm:$0xff] }
 0x21b   : > { %5152 = vst [vmem:[#allocation48_spill] sm:$0xff] %v3565_v18  ;;  %v3578_v18 = vpop.permute.xlu1 %603 }
 0x21d   : > { %v2505_v39 = vpop.eup %2504 }
 0x21e   : > { %v2507_v37 = vpop.eup %2506  ;;  %v1649_v27 = vmul.f32 %v2505_v39, %v3361_v63  ;;  %v1961_v57 = vmul.f32 %v2505_v39, %v3372_v9 }
 0x21f   : > { %v2509_v61 = vpop.eup %2508  ;;  %v1651_v36 = vmul.f32 %v2507_v37, %v3392_v8  ;;  %v1963_v21 = vmul.f32 %v2507_v37, %v3397_v44  ;;  %v5155_v37 = vld [vmem:[#allocation33_spill] sm:$0xff] }
 0x220   : > { %v1781_v0 = vadd.f32 %v3478_v38, %v1649_v27  ;;  %v2093_v48 = vadd.f32 %v3480_v11, %v1961_v57  ;;  %506 = vperm.xlu0 %2468, %v3116_v23   ;;  %v2511_v25 = vpop.eup %2510  ;;  %v3574_v38 = vld [vmem:[%s4923_s8 + $0x40] sm:$0xff]  ;;  %v1964_v39 = vmul.f32 %v2509_v61, %v5154_v47 }
 0x221   : > { %v5153_v23 = vld [vmem:[#allocation30_spill] sm:$0xff] }
 0x222   : > { %v1782_v42 = vadd.f32 %v1781_v0, %v1650_v20  ;;  %v2094_v5 = vadd.f32 %v2093_v48, %v1962_v59  ;;  %731 = vperm.xlu2 %2402, %v3170_v24   ;;  %725 = vperm.xlu1 %2401, %v3170_v24   ;;  %v1652_v11 = vmul.f32 %v2509_v61, %v5153_v23  ;;  %v3591_v61 = vld [vmem:[%s4924_s9 + $0x40] sm:$0xff] }
 0x223   : > { %v1653_v20 = vmul.f32 %v2511_v25, %v5155_v37  ;;  %v1965_v59 = vmul.f32 %v2511_v25, %v3427_v32  ;;  %v1239_v0 = vmul.f32 %v3574_v38, %v574_v7  ;;  %v3599_v7 = vld [vmem:[%s4923_s8 + $0x50] sm:$0xff] }
 0x224   : > { %v1783_v27 = vadd.f32 %v1782_v42, %v1651_v36  ;;  %v2095_v57 = vadd.f32 %v2094_v5, %v1963_v21  ;;  %v1240_v36 = vmul.f32 %v3586_v22, %v3508_v55  ;;  %v3607_v55 = vld [vmem:[%s4923_s8 + $0x58] sm:$0xff] }
 0x225   : > { %v1383_v25 = vsub.f32 %v1239_v0, %v3591_v61  ;;  %v3619_v0 = vpop.permute.xlu1 %615 }
 0x226   : > { %v1784_v48 = vadd.f32 %v1783_v27, %v1652_v11  ;;  %v2096_v43 = vadd.f32 %v2095_v57, %v1964_v39  ;;  %v1241_v11 = vmul.f32 %v3599_v7, %v586_v50  ;;  %v5156_v39 = vld [vmem:[#allocation25_spill] sm:$0xff]  ;;  %v641_v57 = vpop.permute.xlu2 %640 }
 0x227   : > { %2512 = vtanh.f32 %v1383_v25  ;;  %v1250_v50 = vmul.f32 %v3251_v52, %v641_v57 }
 0x228   : > { %v1785_v21 = vadd.f32 %v1784_v48, %v1653_v20  ;;  %v2097_v42 = vadd.f32 %v2096_v43, %v1965_v59  ;;  %991 = vperm.xlu0 %2468, %v3495_v15   ;;  %v3612_v43 = vld [vmem:[%s4924_s9 + $0x48] sm:$0xff]  ;;  %v1242_v59 = vmul.f32 %v3607_v55, %v3515_v29  ;;  %v5157_v48 = vld [vmem:[#allocation26_spill] sm:$0xff]  ;;  %v3625_v15 = vld [vmem:[%s4924_s9 + $0x50] sm:$0xff] }
 0x229   : > { %v1384_v20 = vsub.f32 %v1240_v36, %v3612_v43  ;;  %v1385_v36 = vsub.f32 %v1241_v11, %v3625_v15  ;;  %v1394_v25 = vsub.f32 %v1250_v50, %v3278_v60  ;;  %v3647_v11 = vld [vmem:[%s4925_s10 + $0x40] sm:$0xff] }
 0x22a   : > { %2404 = vset.pattern.permute.xlu2 %v3108_v17  ;;  %2403 = vset.pattern.permute.xlu1 %v3128_v28  ;;  %v568_v5 = vpop.permute.xlu0 %567 }
 0x22b   : > { %v1238_v27 = vmul.f32 %v5156_v39, %v568_v5  ;;  %v3631_v5 = vld [vmem:[%s4924_s9 + $0x58] sm:$0xff] }
 0x22c   : > { %v1386_v29 = vsub.f32 %v1242_v59, %v3631_v5 }
 0x22d   : > { %v1382_v17 = vsub.f32 %v1238_v27, %v5157_v48  ;;  %v2513_v52 = vpop.eup %2512 }
 0x22e   : > { %v1967_v41 = vmul.f32 %v2513_v52, %v3647_v11 }
 0x22f   : > { %2514 = vtanh.f32 %v1382_v17  ;;  %v3642_v17 = vld [vmem:[%s4926_s11 + $0x40] sm:$0xff] }
 0x230   : > { %2516 = vtanh.f32 %v1384_v20  ;;  %1185 = vperm.xlu0 %2468, %v3503_v6   ;;  %v1655_v6 = vmul.f32 %v2513_v52, %v3642_v17 }
 0x231   : > { %2518 = vtanh.f32 %v1385_v36 }
 0x232   : > { %743 = vperm.xlu2 %2404, %v3170_v24   ;;  %737 = vperm.xlu1 %2403, %v3170_v24   ;;  %2520 = vtanh.f32 %v1386_v29  ;;  %v3656_v29 = vld [vmem:[%s4926_s11 + $0x48] sm:$0xff] }
 0x233   : > { %2522 = vtanh.f32 %v1394_v25 }
 0x234   : > { %v635_v27 = vpop.permute.xlu1 %634 }
 0x235   : > { %v2515_v57 = vpop.eup %2514  ;;  %v1249_v20 = vmul.f32 %v3240_v30, %v635_v27  ;;  %v3660_v30 = vpop.permute.xlu0 %1052 }
 0x236   : > { %v2517_v59 = vpop.eup %2516  ;;  %v1654_v60 = vmul.f32 %v2515_v57, %v3434_v53  ;;  %v1966_v50 = vmul.f32 %v2515_v57, %v3439_v26  ;;  %5158 = vst [vmem:[#allocation30_spill] sm:$0xff] %v3660_v30 }
 0x237   : > { %v1393_v36 = vsub.f32 %v1249_v20, %v3260_v56  ;;  %v2519_v27 = vpop.eup %2518  ;;  %v3666_v56 = vld [vmem:[%s4925_s10 + $0x48] sm:$0xff]  ;;  %v1656_v25 = vmul.f32 %v2517_v59, %v3656_v29 }
 0x238   : > { %v1786_v28 = vadd.f32 %v1785_v21, %v1654_v60  ;;  %v2098_v3 = vadd.f32 %v2097_v42, %v1966_v50  ;;  %2477 = vset.pattern.permute.xlu0 %v3176_v34  ;;  %v2521_v57 = vpop.eup %2520  ;;  %v1968_v20 = vmul.f32 %v2517_v59, %v3666_v56  ;;  %v3673_v21 = vld [vmem:[%s4923_s8 + $0x68] sm:$0xff]  ;;  %v5159_v60 = vld [vmem:[#allocation12_spill] sm:$0xff]  ;;  %v5160_v50 = vld [vmem:[#allocation22_spill] sm:$0xff]  ;;  %v653_v34 = vpop.permute.xlu2 %652 }
 0x239   : > { %2524 = vtanh.f32 %v1393_v36  ;;  %v1253_v30 = vmul.f32 %v3304_v2, %v5160_v50  ;;  %v3682_v36 = vld [vmem:[%s4926_s11 + $0x50] sm:$0xff]  ;;  %v1244_v4 = vmul.f32 %v3673_v21, %v3578_v18  ;;  %v1245_v18 = vmul.f32 %v3707_v10, %v3522_v12 }
 0x23a   : > { %v1787_v42 = vadd.f32 %v1786_v28, %v1655_v6  ;;  %v2099_v52 = vadd.f32 %v2098_v3, %v1967_v41  ;;  %2407 = vset.pattern.permute.xlu2 %v3140_v31  ;;  %2406 = vset.pattern.permute.xlu1 %v5159_v60  ;;  %5161 = vst [vmem:[#allocation31_spill] sm:$0xff] %v3682_v36  ;;  %v3687_v59 = vld [vmem:[%s4925_s10 + $0x50] sm:$0xff]  ;;  %v2523_v28 = vpop.eup %2522  ;;  %v3692_v3 = vld [vmem:[%s4926_s11 + $0x58] sm:$0xff] }
 0x23b   : > { %5162 = vst [vmem:[#allocation33_spill] sm:$0xff] %v3687_v59  ;;  %v1657_v41 = vmul.f32 %v2519_v27, %v3682_v36  ;;  %v1969_v2 = vmul.f32 %v2519_v27, %v3687_v59  ;;  %v3699_v31 = vld [vmem:[%s4925_s10 + $0x58] sm:$0xff]  ;;  %v1658_v60 = vmul.f32 %v2521_v57, %v3692_v3  ;;  %v3713_v27 = vld [vmem:[%s4924_s9 + $0x68] sm:$0xff]  ;;  %v1666_v59 = vmul.f32 %v2523_v28, %v3377_v14 }
 0x23c   : > { %5163 = vst [vmem:[#allocation25_spill] sm:$0xff] %v3692_v3  ;;  %v1788_v6 = vadd.f32 %v1787_v42, %v1656_v25  ;;  %v2100_v50 = vadd.f32 %v2099_v52, %v1968_v20  ;;  %v1970_v51 = vmul.f32 %v2521_v57, %v3699_v31  ;;  %v1252_v42 = vmul.f32 %v3284_v62, %v653_v34  ;;  %v3724_v57 = vld [vmem:[%s4923_s8 + $0x78] sm:$0xff] }
 0x23d   : > { %v1397_v3 = vsub.f32 %v1253_v30, %v3323_v19  ;;  %v1978_v36 = vmul.f32 %v2523_v28, %v3385_v16  ;;  %v1388_v19 = vsub.f32 %v1244_v4, %v3713_v27  ;;  %v1246_v12 = vmul.f32 %v3724_v57, %v3619_v0  ;;  %v3734_v16 = vld [vmem:[%s4923_s8 + $0x60] sm:$0xff]  ;;  %v3744_v4 = vld [vmem:[%s4924_s9 + $0x70] sm:$0xff] }
 0x23e   : > { %v1789_v25 = vadd.f32 %v1788_v6, %v1657_v41  ;;  %v2101_v20 = vadd.f32 %v2100_v50, %v1969_v2 }
 0x23f   : > { %v2525_v52 = vpop.eup %2524  ;;  %2526 = vtanh.f32 %v1397_v3 }
 0x240   : > { %v1665_v41 = vmul.f32 %v2525_v52, %v3361_v63  ;;  %v1977_v2 = vmul.f32 %v2525_v52, %v3372_v9  ;;  %v1790_v34 = vadd.f32 %v1789_v25, %v1658_v60  ;;  %v2102_v62 = vadd.f32 %v2101_v20, %v1970_v51  ;;  %v3767_v20 = vld [vmem:[%s4926_s11 + $0x68] sm:$0xff] }
 0x241   : > { %v1396_v9 = vsub.f32 %v1252_v42, %v3316_v13  ;;  %v3756_v13 = vld [vmem:[%s4924_s9 + $0x78] sm:$0xff]  ;;  %2528 = vtanh.f32 %v1388_v19  ;;  %5164 = vst [vmem:[#allocation26_spill] sm:$0xff] %v3767_v20  ;;  %v3772_v42 = vld [vmem:[%s4925_s10 + $0x68] sm:$0xff] }
 0x242   : > { %v1802_v14 = vadd.f32 %v3554_v45, %v1665_v41  ;;  %v2114_v30 = vadd.f32 %v3556_v49, %v1977_v2  ;;  %761 = vperm.xlu2 %2407, %v3170_v24   ;;  %755 = vperm.xlu1 %2406, %v3170_v24   ;;  %v598_v63 = vpop.permute.xlu0 %597  ;;  %v3750_v45 = vld [vmem:[%s4924_s9 + $0x60] sm:$0xff]  ;;  %v1389_v49 = vsub.f32 %v1245_v18, %v3744_v4 }
 0x243   : > { %v1243_v51 = vmul.f32 %v3734_v16, %v598_v63  ;;  %v1390_v50 = vsub.f32 %v1246_v12, %v3756_v13  ;;  %2530 = vtanh.f32 %v1396_v9  ;;  %5165 = vst [vmem:[#allocation22_spill] sm:$0xff] %v3772_v42  ;;  %v3777_v18 = vld [vmem:[%s4926_s11 + $0x60] sm:$0xff] }
 0x244   : > { %v1803_v0 = vadd.f32 %v1802_v14, %v1666_v59  ;;  %v2115_v60 = vadd.f32 %v2114_v30, %v1978_v36  ;;  %v647_v28 = vpop.permute.xlu1 %646  ;;  %v3782_v41 = vld [vmem:[%s4925_s10 + $0x60] sm:$0xff] }
 0x245   : > { %v1387_v6 = vsub.f32 %v1243_v51, %v3750_v45  ;;  %v1251_v3 = vmul.f32 %v3266_v58, %v647_v28  ;;  %v2527_v36 = vpop.eup %2526 }
 0x247   : > { %2532 = vtanh.f32 %v1387_v6  ;;  %v1395_v25 = vsub.f32 %v1251_v3, %v3298_v1  ;;  %v2529_v59 = vpop.eup %2528  ;;  %v671_v1 = vpop.permute.xlu2 %670  ;;  %v3794_v6 = vld [vmem:[%s4926_s11 + $0x70] sm:$0xff] }
 0x248   : > { %2534 = vtanh.f32 %v1389_v49  ;;  %v1660_v19 = vmul.f32 %v2529_v59, %v3767_v20  ;;  %v1972_v63 = vmul.f32 %v2529_v59, %v3772_v42  ;;  %v1255_v49 = vmul.f32 %v3574_v38, %v671_v1  ;;  %5166 = vst [vmem:[#allocation49_spill] sm:$0xff] %v3794_v6  ;;  %v3799_v3 = vld [vmem:[%s4925_s10 + $0x70] sm:$0xff] }
 0x249   : > { %2536 = vtanh.f32 %v1395_v25  ;;  %v2531_v58 = vpop.eup %2530  ;;  %5167 = vst [vmem:[#allocation50_spill] sm:$0xff] %v3799_v3 }
 0x24a   : > { %2538 = vtanh.f32 %v1390_v50  ;;  %2409 = vset.pattern.permute.xlu2 %v3155_v33  ;;  %2408 = vset.pattern.permute.xlu1 %v3212_v40  ;;  %v1668_v9 = vmul.f32 %v2531_v58, %v5153_v23  ;;  %v1980_v51 = vmul.f32 %v2531_v58, %v5154_v47  ;;  %v1669_v47 = vmul.f32 %v2527_v36, %v5155_v37  ;;  %v3810_v33 = vld [vmem:[%s4926_s11 + $0x78] sm:$0xff] }
 0x24b   : > { %v1981_v58 = vmul.f32 %v2527_v36, %v3427_v32  ;;  %5168 = vst [vmem:[#allocation51_spill] sm:$0xff] %v3810_v33 }
 0x24d   : > { %v2533_v52 = vpop.eup %2532 }
 0x24e   : > { %v2535_v2 = vpop.eup %2534  ;;  %v1659_v12 = vmul.f32 %v2533_v52, %v3777_v18  ;;  %v1971_v14 = vmul.f32 %v2533_v52, %v3782_v41 }
 0x24f   : > { %v2537_v30 = vpop.eup %2536  ;;  %v1661_v1 = vmul.f32 %v2535_v2, %v3794_v6  ;;  %v1973_v52 = vmul.f32 %v2535_v2, %v3799_v3  ;;  %v1399_v2 = vsub.f32 %v1255_v49, %v3591_v61  ;;  %v3822_v6 = vpop.permute.xlu0 %1082  ;;  %v5170_v49 = vld [vmem:[#allocation14_spill] sm:$0xff] }
 0x250   : > { %v2539_v28 = vpop.eup %2538  ;;  %v1791_v50 = vadd.f32 %v1790_v34, %v1659_v12  ;;  %v2103_v25 = vadd.f32 %v2102_v62, %v1971_v14  ;;  %v1667_v59 = vmul.f32 %v2537_v30, %v3392_v8  ;;  %v1979_v23 = vmul.f32 %v2537_v30, %v3397_v44  ;;  %v3815_v34 = vld [vmem:[%s4925_s10 + $0x78] sm:$0xff]  ;;  %5169 = vst [vmem:[#allocation52_spill] sm:$0xff] %v3822_v6 }
 0x251   : > { %v1662_v32 = vmul.f32 %v2539_v28, %v3810_v33  ;;  %v1974_v36 = vmul.f32 %v2539_v28, %v3815_v34  ;;  %2540 = vtanh.f32 %v1399_v2 }
 0x252   : > { %v1792_v8 = vadd.f32 %v1791_v50, %v1660_v19  ;;  %v2104_v44 = vadd.f32 %v2103_v25, %v1972_v63  ;;  %v1804_v62 = vadd.f32 %v1803_v0, %v1667_v59  ;;  %v2116_v37 = vadd.f32 %v2115_v60, %v1979_v23  ;;  %773 = vperm.xlu2 %2409, %v3170_v24  }
 0x253   : > { %767 = vperm.xlu1 %2408, %v3170_v24  }
 0x254   : > { %v1793_v12 = vadd.f32 %v1792_v8, %v1661_v1  ;;  %v2105_v14 = vadd.f32 %v2104_v44, %v1973_v52  ;;  %v1805_v30 = vadd.f32 %v1804_v62, %v1668_v9  ;;  %v2117_v40 = vadd.f32 %v2116_v37, %v1980_v51  ;;  %v665_v3 = vpop.permute.xlu1 %664  ;;  %v683_v9 = vpop.permute.xlu2 %682 }
 0x255   : > { %v1254_v0 = vmul.f32 %v5156_v39, %v665_v3  ;;  %v5172_v39 = vld [vmem:[#allocation23_spill] sm:$0xff]  ;;  %v1257_v23 = vmul.f32 %v3599_v7, %v683_v9 }
 0x256   : > { %v3825_v60 = vadd.f32 %v1793_v12, %v1662_v32  ;;  %v3827_v19 = vadd.f32 %v2105_v14, %v1974_v36  ;;  %v1806_v63 = vadd.f32 %v1805_v30, %v1669_v47  ;;  %v2118_v50 = vadd.f32 %v2117_v40, %v1981_v58  ;;  %v5174_v14 = vld [vmem:[#allocation32_spill] sm:$0xff] }
 0x257   : > { %v1398_v28 = vsub.f32 %v1254_v0, %v5157_v48  ;;  %v2541_v51 = vpop.eup %2540  ;;  %v1258_v3 = vmul.f32 %v3607_v55, %v5172_v39  ;;  %v1401_v8 = vsub.f32 %v1257_v23, %v3625_v15  ;;  %v1224_v30 = vmul.f32 %v3586_v22, %v5174_v14  ;;  %v5176_v39 = vld [vmem:[#allocation31_spill] sm:$0xff]  ;;  %v5177_v23 = vld [vmem:[#allocation33_spill] sm:$0xff] }
 0x258   : > { %v1671_v47 = vmul.f32 %v2541_v51, %v3642_v17  ;;  %v1983_v58 = vmul.f32 %v2541_v51, %v3647_v11 }
 0x259   : > { %2542 = vtanh.f32 %v1398_v28  ;;  %v1402_v44 = vsub.f32 %v1258_v3, %v3631_v5  ;;  %v5175_v28 = vld [vmem:[#allocation27_spill] sm:$0xff] }
 0x25a   : > { %2412 = vset.pattern.permute.xlu2 %v3164_v46  ;;  %v3832_v25 = vpop.permute.xlu0 %931  ;;  %2544 = vtanh.f32 %v1401_v8  ;;  %v1225_v9 = vmul.f32 %v3599_v7, %v5175_v28 }
 0x25b   : > { %2411 = vset.pattern.permute.xlu1 %v5170_v49  ;;  %5171 = vst [vmem:[#allocation53_spill] sm:$0xff] %v3832_v25  ;;  %2546 = vtanh.f32 %v1402_v44 }
 0x25c   : > { %v701_v2 = vpop.permute.xlu2 %700 }
 0x25f   : > { %v2543_v59 = vpop.eup %2542 }
 0x260   : > { %v1670_v40 = vmul.f32 %v2543_v59, %v3434_v53  ;;  %v1982_v48 = vmul.f32 %v2543_v59, %v3439_v26  ;;  %v2545_v12 = vpop.eup %2544 }
 0x261   : > { %v2547_v0 = vpop.eup %2546  ;;  %v1673_v3 = vmul.f32 %v2545_v12, %v5176_v39 }
 0x262   : > { %v1807_v1 = vadd.f32 %v1806_v63, %v1670_v40  ;;  %v2119_v52 = vadd.f32 %v2118_v50, %v1982_v48  ;;  %791 = vperm.xlu2 %2412, %v3170_v24   ;;  %v3847_v36 = vpop.permute.xlu0 %1125  ;;  %v1260_v63 = vmul.f32 %v3673_v21, %v701_v2  ;;  %v1985_v40 = vmul.f32 %v2545_v12, %v5177_v23  ;;  %v5178_v48 = vld [vmem:[#allocation25_spill] sm:$0xff] }
 0x263   : > { %785 = vperm.xlu1 %2411, %v3170_v24   ;;  %5173 = vst [vmem:[#allocation23_spill] sm:$0xff] %v3847_v36  ;;  %v1369_v12 = vsub.f32 %v1225_v9, %v3625_v15 }
 0x264   : > { %v1808_v62 = vadd.f32 %v1807_v1, %v1671_v47  ;;  %v2120_v37 = vadd.f32 %v2119_v52, %v1983_v58  ;;  %v677_v32 = vpop.permute.xlu1 %676  ;;  %v1674_v47 = vmul.f32 %v2547_v0, %v5178_v48  ;;  %v1986_v58 = vmul.f32 %v2547_v0, %v3699_v31  ;;  %v5179_v52 = vld [vmem:[#allocation35_spill] sm:$0xff] }
 0x265   : > { %v1256_v53 = vmul.f32 %v3586_v22, %v677_v32  ;;  %v1368_v1 = vsub.f32 %v1224_v30, %v3612_v43  ;;  %v1226_v8 = vmul.f32 %v3607_v55, %v5179_v52  ;;  %v5180_v30 = vld [vmem:[#allocation29_spill] sm:$0xff] }
 0x266   : > { %v1227_v28 = vmul.f32 %v3734_v16, %v5180_v30 }
 0x267   : > { %v1400_v26 = vsub.f32 %v1256_v53, %v3612_v43 }
 0x268   : > { %v1371_v9 = vsub.f32 %v1227_v28, %v3750_v45  ;;  %v5184_v28 = vld [vmem:[#allocation36_spill] sm:$0xff] }
 0x269   : > { %2548 = vtanh.f32 %v1400_v26  ;;  %v1404_v26 = vsub.f32 %v1260_v63, %v3713_v27 }
 0x26a   : > { %2414 = vset.pattern.permute.xlu2 %v3179_v35  ;;  %2550 = vtanh.f32 %v1368_v1  ;;  %v5182_v1 = vld [vmem:[#allocation2_spill] sm:$0xff] }
 0x26b   : > { %2413 = vset.pattern.permute.xlu1 %v3255_v54  ;;  %2552 = vtanh.f32 %v1404_v26 }
 0x26f   : > { %v2549_v50 = vpop.eup %2548 }
 0x270   : > { %v1672_v51 = vmul.f32 %v2549_v50, %v3656_v29  ;;  %v1984_v59 = vmul.f32 %v2549_v50, %v3666_v56 }
 0x272   : > { %v1809_v44 = vadd.f32 %v1808_v62, %v1672_v51  ;;  %v2121_v32 = vadd.f32 %v2120_v37, %v1984_v59  ;;  %803 = vperm.xlu2 %2414, %v3170_v24   ;;  %v477_v53 = vpop.permute.xlu0 %476  ;;  %v1370_v51 = vsub.f32 %v1226_v8, %v3631_v5 }
 0x273   : > { %797 = vperm.xlu1 %2413, %v3170_v24   ;;  %v1223_v2 = vmul.f32 %v3574_v38, %v477_v53 }
 0x274   : > { %v1810_v14 = vadd.f32 %v1809_v44, %v1673_v3  ;;  %v2122_v0 = vadd.f32 %v2121_v32, %v1985_v40  ;;  %v695_v50 = vpop.permute.xlu1 %694  ;;  %v5181_v3 = vld [vmem:[#allocation3_spill] sm:$0xff]  ;;  %v2551_v40 = vpop.eup %2550 }
 0x275   : > { %v1367_v62 = vsub.f32 %v1223_v2, %v3591_v61  ;;  %v1259_v37 = vmul.f32 %v3734_v16, %v695_v50  ;;  %v2553_v52 = vpop.eup %2552  ;;  %v713_v44 = vpop.permute.xlu2 %712 }
 0x276   : > { %v1811_v63 = vadd.f32 %v1810_v14, %v1674_v47  ;;  %v2123_v59 = vadd.f32 %v2122_v0, %v1986_v58  ;;  %v1640_v58 = vmul.f32 %v2551_v40, %v3656_v29  ;;  %v1676_v14 = vmul.f32 %v2553_v52, %v3767_v20 }
 0x277   : > { %2554 = vtanh.f32 %v1367_v62  ;;  %v1403_v24 = vsub.f32 %v1259_v37, %v3750_v45  ;;  %v1988_v0 = vmul.f32 %v2553_v52, %v3772_v42  ;;  %v1262_v50 = vmul.f32 %v3724_v57, %v713_v44  ;;  %v5185_v37 = vld [vmem:[#allocation37_spill] sm:$0xff]  ;;  %v5186_v52 = vld [vmem:[#allocation20_spill] sm:$0xff] }
 0x278   : > { %2556 = vtanh.f32 %v1369_v12  ;;  %v1952_v12 = vmul.f32 %v2551_v40, %v3666_v56 }
 0x279   : > { %2558 = vtanh.f32 %v1403_v24 }
 0x27a   : > { %2560 = vtanh.f32 %v1370_v51  ;;  %2417 = vset.pattern.permute.xlu2 %v5181_v3  ;;  %v3882_v26 = vpop.permute.xlu0 %961 }
 0x27b   : > { %2416 = vset.pattern.permute.xlu1 %v5182_v1  ;;  %2562 = vtanh.f32 %v1371_v9  ;;  %5183 = vst [vmem:[#allocation32_spill] sm:$0xff] %v3882_v26 }
 0x27d   : > { %v2555_v32 = vpop.eup %2554 }
 0x27e   : > { %v2557_v47 = vpop.eup %2556  ;;  %v1639_v8 = vmul.f32 %v2555_v32, %v3642_v17  ;;  %v1951_v53 = vmul.f32 %v2555_v32, %v3647_v11 }
 0x27f   : > { %v2559_v2 = vpop.eup %2558  ;;  %v1641_v32 = vmul.f32 %v2557_v47, %v5176_v39  ;;  %v1953_v6 = vmul.f32 %v2557_v47, %v5177_v23 }
 0x280   : > { %v2561_v30 = vpop.eup %2560  ;;  %v1766_v62 = vadd.f32 %v5184_v28, %v1639_v8  ;;  %v2078_v51 = vadd.f32 %v5185_v37, %v1951_v53  ;;  %v1675_v24 = vmul.f32 %v2559_v2, %v3777_v18  ;;  %v1987_v9 = vmul.f32 %v2559_v2, %v3782_v41 }
 0x281   : > { %v2563_v44 = vpop.eup %2562  ;;  %v1642_v35 = vmul.f32 %v2561_v30, %v5178_v48  ;;  %v1954_v8 = vmul.f32 %v2561_v30, %v3699_v31  ;;  %v1406_v53 = vsub.f32 %v1262_v50, %v3756_v13 }
 0x282   : > { %v1767_v40 = vadd.f32 %v1766_v62, %v1640_v58  ;;  %v2079_v36 = vadd.f32 %v2078_v51, %v1952_v12  ;;  %v1812_v26 = vadd.f32 %v1811_v63, %v1675_v24  ;;  %v2124_v25 = vadd.f32 %v2123_v59, %v1987_v9  ;;  %822 = vperm.xlu2 %2417, %v5186_v52   ;;  %v3903_v30 = vpop.permute.xlu0 %1155 }
 0x283   : > { %816 = vperm.xlu1 %2416, %v5186_v52   ;;  %v1643_v63 = vmul.f32 %v2563_v44, %v3777_v18  ;;  %v1955_v59 = vmul.f32 %v2563_v44, %v3782_v41  ;;  %2564 = vtanh.f32 %v1406_v53  ;;  %5187 = vst [vmem:[#allocation27_spill] sm:$0xff] %v3903_v30 }
 0x284   : > { %v1768_v2 = vadd.f32 %v1767_v40, %v1641_v32  ;;  %v2080_v28 = vadd.f32 %v2079_v36, %v1953_v6  ;;  %v1813_v37 = vadd.f32 %v1812_v26, %v1676_v14  ;;  %v2125_v3 = vadd.f32 %v2124_v25, %v1988_v0  ;;  %v707_v47 = vpop.permute.xlu1 %706  ;;  %v5188_v6 = vld [vmem:[#allocation11_spill] sm:$0xff]  ;;  %v5189_v25 = vld [vmem:[#allocation38_spill] sm:$0xff]  ;;  %v732_v0 = vpop.permute.xlu2 %731 }
 0x285   : > { %v1261_v58 = vmul.f32 %v3707_v10, %v707_v47  ;;  %v1229_v36 = vmul.f32 %v3707_v10, %v5189_v25  ;;  %v5190_v26 = vld [vmem:[#allocation34_spill] sm:$0xff]  ;;  %v5193_v40 = vld [vmem:[#allocation39_spill] sm:$0xff] }
 0x286   : > { %v1769_v12 = vadd.f32 %v1768_v2, %v1642_v35  ;;  %v2081_v62 = vadd.f32 %v2080_v28, %v1954_v8  ;;  %v1230_v14 = vmul.f32 %v3724_v57, %v5190_v26  ;;  %v5191_v35 = vld [vmem:[#allocation9_spill] sm:$0xff]  ;;  %v3918_v32 = vld [vmem:[%s4923_s8] sm:$0xff]  ;;  %v3925_v8 = vld [vmem:[%s4923_s8 + $0x10] sm:$0xff] }
 0x287   : > { %v1405_v51 = vsub.f32 %v1261_v58, %v3744_v4  ;;  %5192 = vst [vmem:[#allocation31_spill] sm:$0xff] %v3918_v32  ;;  %v1263_v44 = vmul.f32 %v3918_v32, %v5193_v40  ;;  %v1265_v53 = vmul.f32 %v3925_v8, %v732_v0  ;;  %v1373_v28 = vsub.f32 %v1229_v36, %v3744_v4  ;;  %v5195_v58 = vld [vmem:[#allocation49_spill] sm:$0xff]  ;;  %v3937_v25 = vld [vmem:[%s4924_s9] sm:$0xff] }
 0x288   : > { %v3905_v24 = vadd.f32 %v1769_v12, %v1643_v63  ;;  %v3907_v50 = vadd.f32 %v2081_v62, %v1955_v59  ;;  %5194 = vst [vmem:[#allocation33_spill] sm:$0xff] %v3925_v8  ;;  %v1374_v47 = vsub.f32 %v1230_v14, %v3756_v13  ;;  %v5196_v59 = vld [vmem:[#allocation50_spill] sm:$0xff]  ;;  %v3944_v14 = vld [vmem:[%s4924_s9 + $0x10] sm:$0xff] }
 0x289   : > { %2566 = vtanh.f32 %v1405_v51  ;;  %v2565_v9 = vpop.eup %2564  ;;  %5197 = vst [vmem:[#allocation25_spill] sm:$0xff] %v3937_v25  ;;  %v1407_v26 = vsub.f32 %v1263_v44, %v3937_v25 }
 0x28a   : > { %2419 = vset.pattern.permute.xlu2 %v5188_v6  ;;  %v1678_v62 = vmul.f32 %v2565_v9, %v3810_v33  ;;  %v1990_v51 = vmul.f32 %v2565_v9, %v3815_v34  ;;  %5198 = vst [vmem:[#allocation35_spill] sm:$0xff] %v3944_v14  ;;  %2568 = vtanh.f32 %v1374_v47 }
 0x28b   : > { %2418 = vset.pattern.permute.xlu1 %v5191_v35  ;;  %2570 = vtanh.f32 %v1373_v28 }
 0x28c   : > { %2572 = vtanh.f32 %v1407_v26  ;;  %v5202_v26 = vld [vmem:[#allocation40_spill] sm:$0xff] }
 0x28f   : > { %v2567_v2 = vpop.eup %2566 }
 0x290   : > { %v1677_v63 = vmul.f32 %v2567_v2, %v5195_v58  ;;  %v1989_v12 = vmul.f32 %v2567_v2, %v5196_v59  ;;  %v1409_v2 = vsub.f32 %v1265_v53, %v3944_v14  ;;  %v3959_v53 = vld [vmem:[%s4924_s9 + $0x8] sm:$0xff]  ;;  %v2569_v47 = vpop.eup %2568 }
 0x291   : > { %5200 = vst [vmem:[#allocation36_spill] sm:$0xff] %v3959_v53  ;;  %v1646_v25 = vmul.f32 %v2569_v47, %v3810_v33 }
 0x292   : > { %v1814_v0 = vadd.f32 %v1813_v37, %v1677_v63  ;;  %v2126_v40 = vadd.f32 %v2125_v3, %v1989_v12  ;;  %834 = vperm.xlu2 %2419, %v5186_v52   ;;  %v507_v36 = vpop.permute.xlu0 %506  ;;  %v3953_v63 = vld [vmem:[%s4923_s8 + $0x8] sm:$0xff]  ;;  %2574 = vtanh.f32 %v1409_v2  ;;  %v1795_v2 = vrot.slane %v3825_v60, 4 }
 0x293   : > { %828 = vperm.xlu1 %2418, %v5186_v52   ;;  %v1228_v9 = vmul.f32 %v3673_v21, %v507_v36  ;;  %5199 = vst [vmem:[#allocation29_spill] sm:$0xff] %v3953_v63 }
 0x294   : > { %v1815_v30 = vadd.f32 %v1814_v0, %v1678_v62  ;;  %v2127_v44 = vadd.f32 %v2126_v40, %v1990_v51  ;;  %v726_v37 = vpop.permute.xlu1 %725  ;;  %v2571_v62 = vpop.eup %2570  ;;  %v3965_v51 = vld [vmem:[%s4923_s8 + $0x28] sm:$0xff]  ;;  %v5203_v40 = vld [vmem:[#allocation12_spill] sm:$0xff] }
 0x295   : > { %v1372_v3 = vsub.f32 %v1228_v9, %v3713_v27  ;;  %v1264_v12 = vmul.f32 %v3953_v63, %v726_v37  ;;  %5201 = vst [vmem:[#allocation37_spill] sm:$0xff] %v3965_v51  ;;  %v1268_v0 = vmul.f32 %v3965_v51, %v5202_v26  ;;  %v2573_v36 = vpop.eup %2572  ;;  %v2107_v9 = vrot.slane %v3827_v19, 4  ;;  %v5204_v37 = vld [vmem:[#allocation10_spill] sm:$0xff]  ;;  %v3979_v51 = vld [vmem:[%s4924_s9 + $0x28] sm:$0xff] }
 0x296   : > { %v1645_v14 = vmul.f32 %v2571_v62, %v5195_v58  ;;  %v1957_v8 = vmul.f32 %v2571_v62, %v5196_v59  ;;  %v2128_v26 = vrot.slane %v2127_v44, 4  ;;  %5205 = vst [vmem:[#allocation20_spill] sm:$0xff] %v3979_v51  ;;  %v3993_v59 = vld [vmem:[%s4926_s11] sm:$0xff] }
 0x297   : > { %2576 = vtanh.f32 %v1372_v3  ;;  %v1408_v28 = vsub.f32 %v1264_v12, %v3959_v53  ;;  %v744_v3 = vpop.permute.xlu2 %743  ;;  %v3987_v53 = vld [vmem:[%s4923_s8 + $0x20] sm:$0xff]  ;;  %5207 = vst [vmem:[#allocation34_spill] sm:$0xff] %v3993_v59  ;;  %v1679_v58 = vmul.f32 %v3993_v59, %v2573_v36  ;;  %v4009_v59 = vld [vmem:[%s4926_s11 + $0x10] sm:$0xff] }
 0x298   : > { %v2575_v12 = vpop.eup %2574  ;;  %5206 = vst [vmem:[#allocation38_spill] sm:$0xff] %v3987_v53  ;;  %v1267_v62 = vmul.f32 %v3987_v53, %v744_v3  ;;  %v2129_v35 = vadd.f32 %v2128_v26, %v2127_v44 }
 0x299   : > { %2578 = vtanh.f32 %v1408_v28  ;;  %v1816_v28 = vrot.slane %v1815_v30, 4  ;;  %5209 = vst [vmem:[#allocation40_spill] sm:$0xff] %v4009_v59  ;;  %v1681_v63 = vmul.f32 %v4009_v59, %v2575_v12 }
 0x29a   : > { %2422 = vset.pattern.permute.xlu2 %v5203_v40  ;;  %v1412_v40 = vsub.f32 %v1268_v0, %v3979_v51  ;;  %v3999_v0 = vld [vmem:[%s4925_s10] sm:$0xff]  ;;  %v1796_v51 = vadd.f32 %v1795_v2, %v3825_v60 }
 0x29b   : > { %2421 = vset.pattern.permute.xlu1 %v5204_v37  ;;  %5208 = vst [vmem:[#allocation39_spill] sm:$0xff] %v3999_v0  ;;  %v1817_v3 = vadd.f32 %v1816_v28, %v1815_v30 }
 0x29c   : > { %2580 = vtanh.f32 %v1412_v40 }
 0x29d   : > { %v2577_v6 = vpop.eup %2576 }
 0x29e   : > { %v1644_v37 = vmul.f32 %v2577_v6, %v3767_v20  ;;  %v1956_v32 = vmul.f32 %v2577_v6, %v3772_v42  ;;  %v1991_v6 = vmul.f32 %v3999_v0, %v2573_v36  ;;  %v2108_v42 = vadd.f32 %v2107_v9, %v3827_v19  ;;  %v4015_v36 = vld [vmem:[%s4926_s11 + $0x8] sm:$0xff]  ;;  %v4035_v9 = vld [vmem:[%s4924_s9 + $0x20] sm:$0xff]  ;;  %v4042_v0 = vld [vmem:[%s4923_s8 + $0x18] sm:$0xff] }
 0x29f   : > { %v2579_v33 = vpop.eup %2578  ;;  %v4021_v19 = vld [vmem:[%s4925_s10 + $0x8] sm:$0xff]  ;;  %5212 = vst [vmem:[#allocation56_spill] sm:$0xff] %v4035_v9 }
 0x2a0   : > { %v1771_v53 = vadd.f32 %v3905_v24, %v1644_v37  ;;  %v2083_v20 = vadd.f32 %v3907_v50, %v1956_v32  ;;  %v1680_v60 = vmul.f32 %v4015_v36, %v2579_v33  ;;  %5210 = vst [vmem:[#allocation54_spill] sm:$0xff] %v4021_v19  ;;  %v1992_v30 = vmul.f32 %v4021_v19, %v2579_v33  ;;  %v4027_v24 = vld [vmem:[%s4925_s10 + $0x10] sm:$0xff] }
 0x2a1   : > { %5211 = vst [vmem:[#allocation55_spill] sm:$0xff] %v4027_v24  ;;  %v1993_v50 = vmul.f32 %v4027_v24, %v2575_v12  ;;  %v1958_v32 = vmul.f32 %v2569_v47, %v3815_v34  ;;  %v1411_v33 = vsub.f32 %v1267_v62, %v4035_v9  ;;  %v1797_v37 = vrot.slane %v1796_v51, 2 }
 0x2a2   : > { %v1772_v44 = vadd.f32 %v1771_v53, %v1645_v14  ;;  %v2084_v2 = vadd.f32 %v2083_v20, %v1957_v8  ;;  %852 = vperm.xlu2 %2422, %v5186_v52   ;;  %v2109_v28 = vrot.slane %v2108_v42, 2  ;;  %v1822_v26 = vadd.f32 %v1680_v60, %v1679_v58  ;;  %5213 = vst [vmem:[#allocation57_spill] sm:$0xff] %v4042_v0 }
 0x2a3   : > { %v2134_v59 = vadd.f32 %v1992_v30, %v1991_v6  ;;  %846 = vperm.xlu1 %2421, %v5186_v52   ;;  %v1818_v12 = vrot.slane %v1817_v3, 2  ;;  %v2130_v8 = vrot.slane %v2129_v35, 2  ;;  %2582 = vtanh.f32 %v1411_v33  ;;  %v762_v33 = vpop.permute.xlu2 %761 }
 0x2a4   : > { %v1773_v47 = vadd.f32 %v1772_v44, %v1646_v25  ;;  %v2085_v14 = vadd.f32 %v2084_v2, %v1958_v32  ;;  %v738_v20 = vpop.permute.xlu1 %737  ;;  %v1823_v53 = vadd.f32 %v1822_v26, %v1681_v63  ;;  %v1798_v6 = vadd.f32 %v1797_v37, %v1796_v51  ;;  %v4048_v25 = vld [vmem:[%s4924_s9 + $0x18] sm:$0xff]  ;;  %v2581_v32 = vpop.eup %2580 }
 0x2a5   : > { %v2135_v24 = vadd.f32 %v2134_v59, %v1993_v50  ;;  %v1266_v62 = vmul.f32 %v4042_v0, %v738_v20  ;;  %v2110_v60 = vadd.f32 %v2109_v28, %v2108_v42  ;;  %v1819_v30 = vadd.f32 %v1818_v12, %v1817_v3  ;;  %v5214_v26 = vld [vmem:[#allocation21_spill] sm:$0xff] }
 0x2a6   : > { %v1774_v9 = vrot.slane %v1773_v47, 4  ;;  %v2086_v58 = vrot.slane %v2085_v14, 4  ;;  %v2131_v50 = vadd.f32 %v2130_v8, %v2129_v35  ;;  %v1799_v51 = vrot.slane %v1798_v6, 1  ;;  %v5215_v37 = vld [vmem:[#allocation13_spill] sm:$0xff] }
 0x2a7   : > { %v1410_v63 = vsub.f32 %v1266_v62, %v4048_v25  ;;  %v2111_v42 = vrot.slane %v2110_v60, 1  ;;  %v1820_v19 = vrot.slane %v1819_v30, 1  ;;  %v4056_v35 = vld [vmem:[%s4923_s8 + $0x38] sm:$0xff] }
 0x2a8   : > { %v1775_v59 = vadd.f32 %v1774_v9, %v1773_v47  ;;  %v2087_v40 = vadd.f32 %v2086_v58, %v2085_v14  ;;  %v2132_v62 = vrot.slane %v2131_v50, 1  ;;  %5216 = vst [vmem:[#allocation58_spill] sm:$0xff] %v4056_v35  ;;  %v1270_v3 = vmul.f32 %v4056_v35, %v762_v33  ;;  %v4062_v9 = vld [vmem:[%s4926_s11 + $0x28] sm:$0xff] }
 0x2a9   : > { %2584 = vtanh.f32 %v1410_v63  ;;  %v2583_v28 = vpop.eup %2582  ;;  %5217 = vst [vmem:[#allocation59_spill] sm:$0xff] %v4062_v9  ;;  %v1684_v12 = vmul.f32 %v4062_v9, %v2581_v32  ;;  %v1800_v58 = vadd.f32 %v1799_v51, %v1798_v6  ;;  %v2112_v63 = vadd.f32 %v2111_v42, %v2110_v60  ;;  %v4080_v6 = vld [vmem:[%s4926_s11 + $0x18] sm:$0xff] }
 0x2aa   : > { %v1776_v44 = vrot.slane %v1775_v59, 2  ;;  %v2088_v2 = vrot.slane %v2087_v40, 2  ;;  %2424 = vset.pattern.permute.xlu2 %v5214_v26  ;;  %v4086_v51 = vld [vmem:[%s4925_s10 + $0x18] sm:$0xff] }
 0x2ab   : > { %2423 = vset.pattern.permute.xlu1 %v5215_v37 }
 0x2ac   : > { %v1777_v20 = vadd.f32 %v1776_v44, %v1775_v59  ;;  %v2089_v0 = vadd.f32 %v2088_v2, %v2087_v40  ;;  %v4068_v59 = vld [vmem:[%s4926_s11 + $0x20] sm:$0xff] }
 0x2ad   : > { %5218 = vst [vmem:[#allocation60_spill] sm:$0xff] %v4068_v59  ;;  %v1683_v40 = vmul.f32 %v4068_v59, %v2583_v28  ;;  %v4074_v44 = vld [vmem:[%s4925_s10 + $0x20] sm:$0xff] }
 0x2ae   : > { %v1778_v47 = vrot.slane %v1777_v20, 1  ;;  %v2090_v14 = vrot.slane %v2089_v0, 1  ;;  %5219 = vst [vmem:[#allocation61_spill] sm:$0xff] %v4074_v44  ;;  %v1995_v2 = vmul.f32 %v4074_v44, %v2583_v28  ;;  %v4092_v28 = vld [vmem:[%s4925_s10 + $0x28] sm:$0xff] }
 0x2af   : > { %v2585_v8 = vpop.eup %2584 }
 0x2b0   : > { %v1779_v33 = vadd.f32 %v1778_v47, %v1777_v20  ;;  %v2091_v26 = vadd.f32 %v2090_v14, %v2089_v0  ;;  %v1682_v60 = vmul.f32 %v4080_v6, %v2585_v8  ;;  %v1994_v42 = vmul.f32 %v4086_v51, %v2585_v8  ;;  %v4098_v14 = vld [vmem:[%s4924_s9 + $0x38] sm:$0xff] }
 0x2b1   : > { %v1996_v0 = vmul.f32 %v4092_v28, %v2581_v32  ;;  %v1821_v20 = vadd.f32 %v1820_v19, %v1819_v30  ;;  %v2133_v47 = vadd.f32 %v2132_v62, %v2131_v50  ;;  %v1414_v35 = vsub.f32 %v1270_v3, %v4098_v14 }
 0x2b2   : > { %v1824_v9 = vadd.f32 %v1823_v53, %v1682_v60  ;;  %v2136_v44 = vadd.f32 %v2135_v24, %v1994_v42  ;;  %864 = vperm.xlu2 %2424, %v5186_v52   ;;  %v2247_v8 = vsel %vm303_vm0, %v1800_v58, %v1779_v33  ;;  %v2264_v59 = vsel %vm303_vm0, %v2112_v63, %v2091_v26  ;;  %v4114_v24 = vld [vmem:[%s4923_s8 + $0x30] sm:$0xff] }
 0x2b3   : > { %858 = vperm.xlu1 %2423, %v5186_v52   ;;  %v4106_v19 = vsel %vm305_vm1, %v1821_v20, %v2247_v8  ;;  %v4109_v30 = vsel %vm305_vm1, %v2133_v47, %v2264_v59  ;;  %2586 = vtanh.f32 %v1414_v35  ;;  %v4120_v58 = vld [vmem:[%s4924_s9 + $0x30] sm:$0xff]  ;;  %v5223_v8 = vld [vmem:[#allocation41_spill] sm:$0xff] }
 0x2b4   : > { %v1825_v50 = vadd.f32 %v1824_v9, %v1683_v40  ;;  %v2137_v32 = vadd.f32 %v2136_v44, %v1995_v2  ;;  %v756_v62 = vpop.permute.xlu1 %755  ;;  %v5220_v9 = vld [vmem:[#allocation15_spill] sm:$0xff]  ;;  %v774_v40 = vpop.permute.xlu2 %773  ;;  %v4134_v2 = vld [vmem:[%s4926_s11 + $0x30] sm:$0xff] }
 0x2b5   : > { %v1269_v53 = vmul.f32 %v4114_v24, %v756_v62  ;;  %v4140_v60 = vld [vmem:[%s4925_s10 + $0x30] sm:$0xff]  ;;  %v1272_v47 = vmul.f32 %v3586_v22, %v774_v40 }
 0x2b6   : > { %v1826_v3 = vadd.f32 %v1825_v50, %v1684_v12  ;;  %v2138_v26 = vadd.f32 %v2137_v32, %v1996_v0  ;;  %v4128_v12 = vld [vmem:[%s4926_s11 + $0x38] sm:$0xff]  ;;  %v1273_v50 = vmul.f32 %v3599_v7, %v5223_v8 }
 0x2b7   : > { %v1413_v63 = vsub.f32 %v1269_v53, %v4120_v58  ;;  %5221 = vst [vmem:[#allocation15_spill] sm:$0xff] %v4128_v12  ;;  %v4146_v0 = vld [vmem:[%s4925_s10 + $0x38] sm:$0xff] }
 0x2b8   : > { %5222 = vst [vmem:[#allocation62_spill] sm:$0xff] %v4146_v0 }
 0x2b9   : > { %2588 = vtanh.f32 %v1413_v63  ;;  %v2587_v59 = vpop.eup %2586 }
 0x2ba   : > { %2427 = vset.pattern.permute.xlu2 %v5170_v49  ;;  %v1686_v35 = vmul.f32 %v4128_v12, %v2587_v59  ;;  %v1998_v20 = vmul.f32 %v4146_v0, %v2587_v59  ;;  %v1417_v12 = vsub.f32 %v1273_v50, %v3625_v15 }
 0x2bb   : > { %2426 = vset.pattern.permute.xlu1 %v5220_v9 }
 0x2bc   : > { %v792_v7 = vpop.permute.xlu2 %791 }
 0x2bf   : > { %v2589_v44 = vpop.eup %2588 }
 0x2c0   : > { %v1685_v33 = vmul.f32 %v4134_v2, %v2589_v44  ;;  %v1997_v42 = vmul.f32 %v4140_v60, %v2589_v44  ;;  %v1416_v44 = vsub.f32 %v1272_v47, %v3612_v43  ;;  %v1275_v43 = vmul.f32 %v3734_v16, %v792_v7 }
 0x2c2   : > { %v1827_v32 = vadd.f32 %v1826_v3, %v1685_v33  ;;  %v2139_v62 = vadd.f32 %v2138_v26, %v1997_v42  ;;  %882 = vperm.xlu2 %2427, %v5186_v52   ;;  %2590 = vtanh.f32 %v1416_v44  ;;  %v1419_v16 = vsub.f32 %v1275_v43, %v3750_v45 }
 0x2c3   : > { %876 = vperm.xlu1 %2426, %v5186_v52   ;;  %2592 = vtanh.f32 %v1417_v12 }
 0x2c4   : > { %v1828_v53 = vadd.f32 %v1827_v32, %v1686_v35  ;;  %v2140_v63 = vadd.f32 %v2139_v62, %v1998_v20  ;;  %v5225_v62 = vld [vmem:[#allocation43_spill] sm:$0xff] }
 0x2c5   : > { %v768_v49 = vpop.permute.xlu1 %767  ;;  %v1278_v45 = vmul.f32 %v3724_v57, %v5225_v62 }
 0x2c6   : > { %v1271_v59 = vmul.f32 %v3574_v38, %v768_v49 }
 0x2c7   : > { %v1422_v57 = vsub.f32 %v1278_v45, %v3756_v13 }
 0x2c8   : > { %v1415_v22 = vsub.f32 %v1271_v59, %v3591_v61  ;;  %v2591_v3 = vpop.eup %2590  ;;  %v5226_v59 = vld [vmem:[#allocation42_spill] sm:$0xff] }
 0x2c9   : > { %v2593_v26 = vpop.eup %2592  ;;  %v1688_v38 = vmul.f32 %v2591_v3, %v3656_v29  ;;  %v2000_v61 = vmul.f32 %v2591_v3, %v3666_v56 }
 0x2ca   : > { %2594 = vtanh.f32 %v1415_v22  ;;  %2429 = vset.pattern.permute.xlu2 %v3255_v54  ;;  %v1689_v49 = vmul.f32 %v2593_v26, %v5176_v39  ;;  %v2001_v12 = vmul.f32 %v2593_v26, %v5177_v23  ;;  %v5224_v39 = vld [vmem:[#allocation18_spill] sm:$0xff] }
 0x2cb   : > { %2428 = vset.pattern.permute.xlu1 %v3164_v46  ;;  %2596 = vtanh.f32 %v1419_v16  ;;  %v5234_v16 = vld [vmem:[#allocation36_spill] sm:$0xff] }
 0x2cc   : > { %v804_v23 = vpop.permute.xlu2 %803 }
 0x2d0   : > { %v2595_v40 = vpop.eup %2594 }
 0x2d1   : > { %v1687_v15 = vmul.f32 %v2595_v40, %v3642_v17  ;;  %v1999_v35 = vmul.f32 %v2595_v40, %v3647_v11  ;;  %v2597_v50 = vpop.eup %2596 }
 0x2d2   : > { %894 = vperm.xlu2 %2429, %v5186_v52   ;;  %v2003_v44 = vmul.f32 %v2597_v50, %v3782_v41  ;;  %v5228_v41 = vld [vmem:[#allocation3_spill] sm:$0xff] }
 0x2d3   : > { %v1829_v33 = vadd.f32 %v1828_v53, %v1687_v15  ;;  %v2141_v42 = vadd.f32 %v2140_v63, %v1999_v35  ;;  %888 = vperm.xlu1 %2428, %v5186_v52   ;;  %v1277_v53 = vmul.f32 %v3707_v10, %v804_v23  ;;  %v5229_v15 = vld [vmem:[#allocation29_spill] sm:$0xff] }
 0x2d5   : > { %v1830_v20 = vadd.f32 %v1829_v33, %v1688_v38  ;;  %v2142_v17 = vadd.f32 %v2141_v42, %v2000_v61  ;;  %v786_v47 = vpop.permute.xlu1 %785  ;;  %v1421_v3 = vsub.f32 %v1277_v53, %v3744_v4  ;;  %v5230_v38 = vld [vmem:[#allocation26_spill] sm:$0xff] }
 0x2d6   : > { %v1274_v11 = vmul.f32 %v3607_v55, %v786_v47 }
 0x2d7   : > { %v1831_v29 = vadd.f32 %v1830_v20, %v1689_v49  ;;  %v2143_v8 = vadd.f32 %v2142_v17, %v2001_v12  ;;  %v5231_v49 = vld [vmem:[#allocation22_spill] sm:$0xff]  ;;  %v5235_v17 = vld [vmem:[#allocation51_spill] sm:$0xff] }
 0x2d8   : > { %v1418_v56 = vsub.f32 %v1274_v11, %v3631_v5  ;;  %v1691_v5 = vmul.f32 %v2597_v50, %v3777_v18  ;;  %v5227_v18 = vld [vmem:[#allocation9_spill] sm:$0xff] }
 0x2da   : > { %2598 = vtanh.f32 %v1418_v56  ;;  %2433 = vset.pattern.permute.xlu2 %v5182_v1 }
 0x2db   : > { %2432 = vset.pattern.permute.xlu1 %v5224_v39  ;;  %2600 = vtanh.f32 %v1421_v3  ;;  %v5239_v3 = vld [vmem:[#allocation8_spill] sm:$0xff] }
 0x2dc   : > { %2602 = vtanh.f32 %v1422_v57  ;;  %v823_v43 = vpop.permute.xlu2 %822 }
 0x2dd   : > { %v1280_v4 = vmul.f32 %v5229_v15, %v823_v43 }
 0x2df   : > { %v1424_v20 = vsub.f32 %v1280_v4, %v5234_v16 }
 0x2e0   : > { %v2599_v32 = vpop.eup %2598 }
 0x2e1   : > { %v1690_v55 = vmul.f32 %v2599_v32, %v5178_v48  ;;  %v2002_v63 = vmul.f32 %v2599_v32, %v3699_v31  ;;  %v5236_v32 = vld [vmem:[#allocation31_spill] sm:$0xff] }
 0x2e2   : > { %913 = vperm.xlu2 %2433, %v5226_v59  }
 0x2e3   : > { %v1832_v22 = vadd.f32 %v1831_v29, %v1690_v55  ;;  %v2144_v7 = vadd.f32 %v2143_v8, %v2002_v63  ;;  %906 = vperm.xlu1 %2432, %v5186_v52   ;;  %v2601_v52 = vpop.eup %2600  ;;  %v5237_v55 = vld [vmem:[#allocation25_spill] sm:$0xff] }
 0x2e4   : > { %v2603_v35 = vpop.eup %2602 }
 0x2e5   : > { %v1833_v26 = vadd.f32 %v1832_v22, %v1691_v5  ;;  %v2145_v10 = vadd.f32 %v2144_v7, %v2003_v44  ;;  %v798_v40 = vpop.permute.xlu1 %797  ;;  %v1694_v47 = vmul.f32 %v2603_v35, %v5235_v17  ;;  %v2006_v11 = vmul.f32 %v2603_v35, %v3815_v34  ;;  %v5238_v22 = vld [vmem:[#allocation10_spill] sm:$0xff] }
 0x2e6   : > { %v1276_v48 = vmul.f32 %v3673_v21, %v798_v40  ;;  %v5232_v21 = vld [vmem:[#allocation49_spill] sm:$0xff] }
 0x2e7   : > { %v1693_v33 = vmul.f32 %v2601_v52, %v5232_v21 }
 0x2e8   : > { %v1420_v31 = vsub.f32 %v1276_v48, %v3713_v27  ;;  %v5233_v27 = vld [vmem:[#allocation50_spill] sm:$0xff] }
 0x2e9   : > { %v2005_v42 = vmul.f32 %v2601_v52, %v5233_v27  ;;  %v5240_v52 = vld [vmem:[#allocation54_spill] sm:$0xff] }
 0x2ea   : > { %2604 = vtanh.f32 %v1420_v31  ;;  %2435 = vset.pattern.permute.xlu2 %v5227_v18  ;;  %v5244_v27 = vld [vmem:[#allocation34_spill] sm:$0xff] }
 0x2eb   : > { %2434 = vset.pattern.permute.xlu1 %v5228_v41  ;;  %2606 = vtanh.f32 %v1424_v20  ;;  %v5245_v20 = vld [vmem:[#allocation39_spill] sm:$0xff] }
 0x2ec   : > { %v835_v40 = vpop.permute.xlu2 %834 }
 0x2f0   : > { %v2605_v13 = vpop.eup %2604 }
 0x2f1   : > { %v1692_v61 = vmul.f32 %v2605_v13, %v5230_v38  ;;  %v2004_v12 = vmul.f32 %v2605_v13, %v5231_v49  ;;  %v2607_v57 = vpop.eup %2606  ;;  %v5241_v13 = vld [vmem:[#allocation45_spill] sm:$0xff]  ;;  %v5242_v38 = vld [vmem:[#allocation38_spill] sm:$0xff] }
 0x2f2   : > { %925 = vperm.xlu2 %2435, %v5226_v59   ;;  %v1696_v43 = vmul.f32 %v4015_v36, %v2607_v57  ;;  %v2008_v4 = vmul.f32 %v5240_v52, %v2607_v57  ;;  %v5243_v49 = vld [vmem:[#allocation57_spill] sm:$0xff] }
 0x2f3   : > { %v1834_v29 = vadd.f32 %v1833_v26, %v1692_v61  ;;  %v2146_v8 = vadd.f32 %v2145_v10, %v2004_v12  ;;  %919 = vperm.xlu1 %2434, %v5226_v59   ;;  %v1283_v61 = vmul.f32 %v5242_v38, %v5241_v13  ;;  %v1282_v12 = vmul.f32 %v5243_v49, %v835_v40  ;;  %v5252_v13 = vld [vmem:[#allocation60_spill] sm:$0xff] }
 0x2f5   : > { %v1835_v56 = vadd.f32 %v1834_v29, %v1693_v33  ;;  %v2147_v23 = vadd.f32 %v2146_v8, %v2005_v42  ;;  %v817_v50 = vpop.permute.xlu1 %816 }
 0x2f6   : > { %v1279_v62 = vmul.f32 %v5236_v32, %v817_v50 }
 0x2f7   : > { %v1836_v45 = vadd.f32 %v1835_v56, %v1694_v47  ;;  %v2148_v53 = vadd.f32 %v2147_v23, %v2006_v11  ;;  %v1426_v56 = vsub.f32 %v1282_v12, %v4048_v25  ;;  %v5246_v23 = vld [vmem:[#allocation56_spill] sm:$0xff]  ;;  %v5253_v12 = vld [vmem:[#allocation61_spill] sm:$0xff] }
 0x2f8   : > { %v1423_v63 = vsub.f32 %v1279_v62, %v5237_v55  ;;  %v1427_v50 = vsub.f32 %v1283_v61, %v5246_v23 }
 0x2f9   : > { %v1837_v5 = vrot.slane %v1836_v45, 4  ;;  %v2149_v44 = vrot.slane %v2148_v53, 4 }
 0x2fa   : > { %2608 = vtanh.f32 %v1423_v63  ;;  %2437 = vset.pattern.permute.xlu2 %v5238_v22  ;;  %v5247_v63 = vld [vmem:[#allocation33_spill] sm:$0xff] }
 0x2fb   : > { %v1838_v34 = vadd.f32 %v1837_v5, %v1836_v45  ;;  %v2150_v7 = vadd.f32 %v2149_v44, %v2148_v53  ;;  %2436 = vset.pattern.permute.xlu1 %v5239_v3  ;;  %v5248_v44 = vld [vmem:[#allocation35_spill] sm:$0xff]  ;;  %2610 = vtanh.f32 %v1426_v56 }
 0x2fc   : > { %2612 = vtanh.f32 %v1427_v50  ;;  %v853_v57 = vpop.permute.xlu2 %852  ;;  %v5254_v50 = vld [vmem:[#allocation37_spill] sm:$0xff] }
 0x2fd   : > { %v1839_v26 = vrot.slane %v1838_v34, 2  ;;  %v2151_v10 = vrot.slane %v2150_v7, 2  ;;  %v1285_v40 = vmul.f32 %v4114_v24, %v853_v57  ;;  %v5255_v57 = vld [vmem:[#allocation20_spill] sm:$0xff] }
 0x2ff   : > { %v1840_v48 = vadd.f32 %v1839_v26, %v1838_v34  ;;  %v2152_v31 = vadd.f32 %v2151_v10, %v2150_v7  ;;  %v5249_v7 = vld [vmem:[#allocation12_spill] sm:$0xff] }
 0x300   : > { %v2609_v35 = vpop.eup %2608 }
 0x301   : > { %v1841_v21 = vrot.slane %v1840_v48, 1  ;;  %v2153_v33 = vrot.slane %v2152_v31, 1  ;;  %v1695_v42 = vmul.f32 %v5244_v27, %v2609_v35  ;;  %v2007_v17 = vmul.f32 %v5245_v20, %v2609_v35  ;;  %v2611_v26 = vpop.eup %2610 }
 0x302   : > { %943 = vperm.xlu2 %2437, %v5226_v59   ;;  %v2613_v10 = vpop.eup %2612  ;;  %v2010_v35 = vmul.f32 %v4086_v51, %v2611_v26 }
 0x303   : > { %v1842_v47 = vadd.f32 %v1841_v21, %v1840_v48  ;;  %v2154_v11 = vadd.f32 %v2153_v33, %v2152_v31  ;;  %v1843_v29 = vadd.f32 %v1696_v43, %v1695_v42  ;;  %v2155_v8 = vadd.f32 %v2008_v4, %v2007_v17  ;;  %937 = vperm.xlu1 %2436, %v5226_v59   ;;  %v5250_v48 = vld [vmem:[#allocation40_spill] sm:$0xff]  ;;  %v5251_v31 = vld [vmem:[#allocation55_spill] sm:$0xff] }
 0x304   : > { %v1698_v4 = vmul.f32 %v4080_v6, %v2611_v26  ;;  %v1699_v61 = vmul.f32 %v5252_v13, %v2613_v10  ;;  %v2011_v21 = vmul.f32 %v5253_v12, %v2613_v10  ;;  %v1429_v17 = vsub.f32 %v1285_v40, %v4120_v58  ;;  %v5256_v10 = vld [vmem:[#allocation16_spill] sm:$0xff]  ;;  %v4243_v40 = vld [vmem:[%s4923_s8 + $0x48] sm:$0xff] }
 0x305   : > { %v829_v62 = vpop.permute.xlu1 %828  ;;  %v4216_v45 = vsel %vm307_vm2, %v1842_v47, %v4106_v19  ;;  %v4220_v53 = vsel %vm307_vm2, %v2154_v11, %v4109_v30  ;;  %5257 = vst [vmem:[#allocation41_spill] sm:$0xff] %v4243_v40 }
 0x306   : > { %v1281_v5 = vmul.f32 %v5247_v63, %v829_v62 }
 0x308   : > { %v1425_v34 = vsub.f32 %v1281_v5, %v5248_v44 }
 0x30a   : > { %2614 = vtanh.f32 %v1425_v34  ;;  %2439 = vset.pattern.permute.xlu2 %v5215_v37 }
 0x30b   : > { %2438 = vset.pattern.permute.xlu1 %v5249_v7  ;;  %2616 = vtanh.f32 %v1429_v17 }
 0x310   : > { %v2615_v19 = vpop.eup %2614 }
 0x311   : > { %v1697_v30 = vmul.f32 %v5250_v48, %v2615_v19  ;;  %v2009_v43 = vmul.f32 %v5251_v31, %v2615_v19 }
 0x312   : > { %955 = vperm.xlu2 %2439, %v5226_v59  }
 0x313   : > { %v1844_v33 = vadd.f32 %v1843_v29, %v1697_v30  ;;  %v2156_v42 = vadd.f32 %v2155_v8, %v2009_v43  ;;  %949 = vperm.xlu1 %2438, %v5226_v59   ;;  %v865_v29 = vpop.permute.xlu2 %864  ;;  %v2617_v8 = vpop.eup %2616  ;;  %v5258_v30 = vld [vmem:[#allocation46_spill] sm:$0xff] }
 0x314   : > { %v1288_v43 = vmul.f32 %v4243_v40, %v5258_v30  ;;  %v2013_v17 = vmul.f32 %v4140_v60, %v2617_v8 }
 0x315   : > { %v1845_v47 = vadd.f32 %v1844_v33, %v1698_v4  ;;  %v2157_v11 = vadd.f32 %v2156_v42, %v2010_v35  ;;  %v847_v56 = vpop.permute.xlu1 %846  ;;  %v4250_v4 = vld [vmem:[%s4923_s8 + $0x40] sm:$0xff]  ;;  %v1701_v42 = vmul.f32 %v4134_v2, %v2617_v8 }
 0x316   : > { %v1284_v62 = vmul.f32 %v5254_v50, %v847_v56  ;;  %v1287_v35 = vmul.f32 %v4250_v4, %v865_v29  ;;  %v4262_v56 = vld [vmem:[%s4924_s9 + $0x40] sm:$0xff] }
 0x317   : > { %v1846_v5 = vadd.f32 %v1845_v47, %v1699_v61  ;;  %v2158_v34 = vadd.f32 %v2157_v11, %v2011_v21  ;;  %v5259_v61 = vld [vmem:[#allocation59_spill] sm:$0xff] }
 0x318   : > { %v1428_v26 = vsub.f32 %v1284_v62, %v5255_v57  ;;  %v1431_v62 = vsub.f32 %v1287_v35, %v4262_v56  ;;  %v5262_v35 = vld [vmem:[#allocation14_spill] sm:$0xff] }
 0x31a   : > { %2618 = vtanh.f32 %v1428_v26  ;;  %2441 = vset.pattern.permute.xlu2 %v5220_v9  ;;  %v4268_v26 = vld [vmem:[%s4924_s9 + $0x48] sm:$0xff] }
 0x31b   : > { %2440 = vset.pattern.permute.xlu1 %v5256_v10  ;;  %5260 = vst [vmem:[#allocation43_spill] sm:$0xff] %v4268_v26  ;;  %v1432_v29 = vsub.f32 %v1288_v43, %v4268_v26  ;;  %2620 = vtanh.f32 %v1431_v62  ;;  %v4278_v43 = vld [vmem:[%s4923_s8 + $0x58] sm:$0xff]  ;;  %v4286_v62 = vld [vmem:[%s4926_s11 + $0x40] sm:$0xff] }
 0x31c   : > { %5263 = vst [vmem:[#allocation42_spill] sm:$0xff] %v4278_v43 }
 0x31d   : > { %2622 = vtanh.f32 %v1432_v29  ;;  %5265 = vst [vmem:[#allocation29_spill] sm:$0xff] %v4286_v62 }
 0x320   : > { %v2619_v19 = vpop.eup %2618 }
 0x321   : > { %v1700_v21 = vmul.f32 %v5259_v61, %v2619_v19  ;;  %v2012_v33 = vmul.f32 %v4092_v28, %v2619_v19  ;;  %v2621_v37 = vpop.eup %2620 }
 0x322   : > { %973 = vperm.xlu2 %2441, %v5226_v59   ;;  %v1703_v29 = vmul.f32 %v4286_v62, %v2621_v37 }
 0x323   : > { %v1847_v47 = vadd.f32 %v1846_v5, %v1700_v21  ;;  %v2159_v11 = vadd.f32 %v2158_v34, %v2012_v33  ;;  %967 = vperm.xlu1 %2440, %v5226_v59   ;;  %v5261_v34 = vld [vmem:[#allocation58_spill] sm:$0xff]  ;;  %v883_v33 = vpop.permute.xlu2 %882  ;;  %v2623_v18 = vpop.eup %2622 }
 0x325   : > { %v1848_v8 = vadd.f32 %v1847_v47, %v1701_v42  ;;  %v2160_v19 = vadd.f32 %v2159_v11, %v2013_v17  ;;  %v859_v5 = vpop.permute.xlu1 %858  ;;  %v1290_v42 = vmul.f32 %v4278_v43, %v883_v33  ;;  %v5264_v17 = vld [vmem:[#allocation15_spill] sm:$0xff] }
 0x326   : > { %v1286_v30 = vmul.f32 %v5261_v34, %v859_v5  ;;  %v4292_v5 = vld [vmem:[%s4925_s10 + $0x40] sm:$0xff]  ;;  %v4305_v33 = vld [vmem:[%s4925_s10 + $0x48] sm:$0xff] }
 0x327   : > { %5266 = vst [vmem:[#allocation26_spill] sm:$0xff] %v4292_v5 }
 0x328   : > { %v1430_v21 = vsub.f32 %v1286_v30, %v4098_v14  ;;  %v2015_v30 = vmul.f32 %v4292_v5, %v2621_v37  ;;  %5268 = vst [vmem:[#allocation49_spill] sm:$0xff] %v4305_v33  ;;  %v4312_v37 = vld [vmem:[%s4924_s9 + $0x58] sm:$0xff] }
 0x329   : > { %5269 = vst [vmem:[#allocation50_spill] sm:$0xff] %v4312_v37  ;;  %v1434_v5 = vsub.f32 %v1290_v42, %v4312_v37  ;;  %v4377_v37 = vld [vmem:[%s4924_s9 + $0x70] sm:$0xff] }
 0x32a   : > { %2624 = vtanh.f32 %v1430_v21  ;;  %2443 = vset.pattern.permute.xlu2 %v3164_v46  ;;  %v2016_v46 = vmul.f32 %v4305_v33, %v2623_v18  ;;  %5279 = vst [vmem:[#allocation45_spill] sm:$0xff] %v4377_v37 }
 0x32b   : > { %2442 = vset.pattern.permute.xlu1 %v5262_v35  ;;  %2626 = vtanh.f32 %v1434_v5  ;;  %v4339_v5 = vld [vmem:[%s4923_s8 + $0x68] sm:$0xff] }
 0x32c   : > { %v895_v42 = vpop.permute.xlu2 %894  ;;  %5273 = vst [vmem:[#allocation51_spill] sm:$0xff] %v4339_v5 }
 0x330   : > { %v2625_v54 = vpop.eup %2624 }
 0x331   : > { %v1702_v47 = vmul.f32 %v5264_v17, %v2625_v54  ;;  %v2014_v11 = vmul.f32 %v4146_v0, %v2625_v54  ;;  %v4299_v54 = vld [vmem:[%s4926_s11 + $0x48] sm:$0xff]  ;;  %v4318_v0 = vld [vmem:[%s4923_s8 + $0x50] sm:$0xff] }
 0x332   : > { %985 = vperm.xlu2 %2443, %v5226_v59   ;;  %5267 = vst [vmem:[#allocation22_spill] sm:$0xff] %v4299_v54  ;;  %v1704_v21 = vmul.f32 %v4299_v54, %v2623_v18 }
 0x333   : > { %v1849_v43 = vadd.f32 %v1848_v8, %v1702_v47  ;;  %v2161_v62 = vadd.f32 %v2160_v19, %v2014_v11  ;;  %979 = vperm.xlu1 %2442, %v5226_v59   ;;  %v4324_v47 = vld [vmem:[%s4924_s9 + $0x50] sm:$0xff] }
 0x335   : > { %v1850_v26 = vadd.f32 %v1849_v43, %v1703_v29  ;;  %v2162_v54 = vadd.f32 %v2161_v62, %v2015_v30  ;;  %v877_v40 = vpop.permute.xlu1 %876  ;;  %v5270_v43 = vld [vmem:[#allocation19_spill] sm:$0xff]  ;;  %v2627_v62 = vpop.eup %2626  ;;  %v1292_v30 = vmul.f32 %v4339_v5, %v895_v42 }
 0x336   : > { %v1289_v18 = vmul.f32 %v4318_v0, %v877_v40  ;;  %v5272_v40 = vld [vmem:[#allocation47_spill] sm:$0xff] }
 0x337   : > { %v1851_v8 = vadd.f32 %v1850_v26, %v1704_v21  ;;  %v2163_v19 = vadd.f32 %v2162_v54, %v2016_v46  ;;  %v4332_v46 = vld [vmem:[%s4923_s8 + $0x70] sm:$0xff] }
 0x338   : > { %v1433_v11 = vsub.f32 %v1289_v18, %v4324_v47  ;;  %5271 = vst [vmem:[#allocation36_spill] sm:$0xff] %v4332_v46  ;;  %v1293_v26 = vmul.f32 %v4332_v46, %v5272_v40  ;;  %v4345_v54 = vld [vmem:[%s4926_s11 + $0x50] sm:$0xff]  ;;  %v4357_v40 = vld [vmem:[%s4926_s11 + $0x58] sm:$0xff] }
 0x339   : > { %5274 = vst [vmem:[#allocation31_spill] sm:$0xff] %v4345_v54  ;;  %v4351_v18 = vld [vmem:[%s4925_s10 + $0x50] sm:$0xff]  ;;  %v1706_v42 = vmul.f32 %v4357_v40, %v2627_v62 }
 0x33a   : > { %2628 = vtanh.f32 %v1433_v11  ;;  %2445 = vset.pattern.permute.xlu2 %v5224_v39  ;;  %5275 = vst [vmem:[#allocation25_spill] sm:$0xff] %v4351_v18  ;;  %v4363_v39 = vld [vmem:[%s4925_s10 + $0x58] sm:$0xff] }
 0x33b   : > { %2444 = vset.pattern.permute.xlu1 %v5270_v43  ;;  %5276 = vst [vmem:[#allocation10_spill] sm:$0xff] %v4357_v40  ;;  %v2018_v43 = vmul.f32 %v4363_v39, %v2627_v62  ;;  %v1437_v62 = vsub.f32 %v1293_v26, %v4377_v37  ;;  %v5286_v37 = vld [vmem:[#allocation28_spill] sm:$0xff] }
 0x33c   : > { %5277 = vst [vmem:[#allocation8_spill] sm:$0xff] %v4363_v39 }
 0x340   : > { %v2629_v29 = vpop.eup %2628 }
 0x341   : > { %v1705_v21 = vmul.f32 %v4345_v54, %v2629_v29  ;;  %v2017_v11 = vmul.f32 %v4351_v18, %v2629_v29  ;;  %v4371_v29 = vld [vmem:[%s4924_s9 + $0x68] sm:$0xff]  ;;  %v4435_v18 = vld [vmem:[%s4923_s8 + $0x78] sm:$0xff] }
 0x342   : > { %1003 = vperm.xlu2 %2445, %v5226_v59   ;;  %5278 = vst [vmem:[#allocation54_spill] sm:$0xff] %v4371_v29  ;;  %v1436_v40 = vsub.f32 %v1292_v30, %v4371_v29  ;;  %v4389_v30 = vld [vmem:[%s4924_s9 + $0x60] sm:$0xff] }
 0x343   : > { %v1852_v46 = vadd.f32 %v1851_v8, %v1705_v21  ;;  %v2164_v5 = vadd.f32 %v2163_v19, %v2017_v11  ;;  %997 = vperm.xlu1 %2444, %v5226_v59   ;;  %v4383_v59 = vld [vmem:[%s4923_s8 + $0x60] sm:$0xff]  ;;  %5281 = vst [vmem:[#allocation57_spill] sm:$0xff] %v4389_v30 }
 0x344   : > { %5280 = vst [vmem:[#allocation38_spill] sm:$0xff] %v4383_v59  ;;  %2630 = vtanh.f32 %v1436_v40  ;;  %v4403_v40 = vld [vmem:[%s4925_s10 + $0x60] sm:$0xff] }
 0x345   : > { %v1853_v39 = vadd.f32 %v1852_v46, %v1706_v42  ;;  %v2165_v33 = vadd.f32 %v2164_v5, %v2018_v43  ;;  %v889_v8 = vpop.permute.xlu1 %888  ;;  %2632 = vtanh.f32 %v1437_v62  ;;  %v4397_v5 = vld [vmem:[%s4926_s11 + $0x60] sm:$0xff]  ;;  %5283 = vst [vmem:[#allocation39_spill] sm:$0xff] %v4403_v40  ;;  %v4409_v62 = vld [vmem:[%s4926_s11 + $0x68] sm:$0xff] }
 0x346   : > { %v1291_v19 = vmul.f32 %v4383_v59, %v889_v8  ;;  %5282 = vst [vmem:[#allocation34_spill] sm:$0xff] %v4397_v5 }
 0x347   : > { %5284 = vst [vmem:[#allocation56_spill] sm:$0xff] %v4409_v62 }
 0x348   : > { %v1435_v21 = vsub.f32 %v1291_v19, %v4389_v30  ;;  %v4415_v19 = vld [vmem:[%s4925_s10 + $0x68] sm:$0xff]  ;;  %5289 = vst [vmem:[#allocation40_spill] sm:$0xff] %v4435_v18 }
 0x349   : > { %5285 = vst [vmem:[#allocation33_spill] sm:$0xff] %v4415_v19 }
 0x34a   : > { %2634 = vtanh.f32 %v1435_v21  ;;  %2447 = vset.pattern.permute.xlu2 %v5228_v41  ;;  %v2631_v43 = vpop.eup %2630 }
 0x34b   : > { %2446 = vset.pattern.permute.xlu1 %v5182_v1  ;;  %v2633_v46 = vpop.eup %2632  ;;  %v1708_v8 = vmul.f32 %v4409_v62, %v2631_v43  ;;  %v2020_v21 = vmul.f32 %v4415_v19, %v2631_v43  ;;  %v4428_v62 = vld [vmem:[%s4925_s10 + $0x70] sm:$0xff]  ;;  %v914_v43 = vpop.permute.xlu2 %913 }
 0x34c   : > { %5288 = vst [vmem:[#allocation12_spill] sm:$0xff] %v4428_v62 }
 0x350   : > { %v2635_v26 = vpop.eup %2634 }
 0x351   : > { %v1707_v11 = vmul.f32 %v4397_v5, %v2635_v26  ;;  %v2019_v42 = vmul.f32 %v4403_v40, %v2635_v26  ;;  %v4422_v26 = vld [vmem:[%s4926_s11 + $0x70] sm:$0xff]  ;;  %v2021_v5 = vmul.f32 %v4428_v62, %v2633_v46 }
 0x352   : > { %1016 = vperm.xlu2 %2447, %v5286_v37   ;;  %5287 = vst [vmem:[#allocation35_spill] sm:$0xff] %v4422_v26  ;;  %v1709_v40 = vmul.f32 %v4422_v26, %v2633_v46  ;;  %v1295_v46 = vmul.f32 %v5236_v32, %v914_v43 }
 0x353   : > { %v1854_v29 = vadd.f32 %v1853_v39, %v1707_v11  ;;  %v2166_v41 = vadd.f32 %v2165_v33, %v2019_v42  ;;  %1010 = vperm.xlu1 %2446, %v5286_v37   ;;  %v4441_v39 = vld [vmem:[%s4924_s9 + $0x78] sm:$0xff] }
 0x354   : > { %5290 = vst [vmem:[#allocation55_spill] sm:$0xff] %v4441_v39 }
 0x355   : > { %v1855_v19 = vadd.f32 %v1854_v29, %v1708_v8  ;;  %v2167_v30 = vadd.f32 %v2166_v41, %v2020_v21  ;;  %v907_v59 = vpop.permute.xlu1 %906  ;;  %v5291_v41 = vld [vmem:[#allocation11_spill] sm:$0xff]  ;;  %v926_v29 = vpop.permute.xlu2 %925  ;;  %v1439_v8 = vsub.f32 %v1295_v46, %v5237_v55 }
 0x356   : > { %v1294_v26 = vmul.f32 %v4435_v18, %v907_v59  ;;  %v1297_v11 = vmul.f32 %v5247_v63, %v926_v29 }
 0x357   : > { %v1856_v54 = vadd.f32 %v1855_v19, %v1709_v40  ;;  %v2168_v1 = vadd.f32 %v2167_v30, %v2021_v5  ;;  %v4451_v30 = vld [vmem:[%s4926_s11 + $0x78] sm:$0xff] }
 0x358   : > { %v1438_v33 = vsub.f32 %v1294_v26, %v4441_v39  ;;  %5292 = vst [vmem:[#allocation60_spill] sm:$0xff] %v4451_v30  ;;  %v4457_v40 = vld [vmem:[%s4925_s10 + $0x78] sm:$0xff]  ;;  %v1441_v19 = vsub.f32 %v1297_v11, %v5248_v44 }
 0x359   : > { %5293 = vst [vmem:[#allocation61_spill] sm:$0xff] %v4457_v40 }
 0x35a   : > { %2636 = vtanh.f32 %v1438_v33  ;;  %2450 = vset.pattern.permute.xlu2 %v5239_v3 }
 0x35b   : > { %2449 = vset.pattern.permute.xlu1 %v5291_v41  ;;  %2638 = vtanh.f32 %v1439_v8 }
 0x35c   : > { %2640 = vtanh.f32 %v1441_v19 }
 0x360   : > { %v2637_v59 = vpop.eup %2636 }
 0x361   : > { %v1710_v5 = vmul.f32 %v4451_v30, %v2637_v59  ;;  %v2022_v42 = vmul.f32 %v4457_v40, %v2637_v59 }
 0x362   : > { %1034 = vperm.xlu2 %2450, %v5286_v37  }
 0x363   : > { %v1857_v32 = vadd.f32 %v1856_v54, %v1710_v5  ;;  %v2169_v63 = vadd.f32 %v2168_v1, %v2022_v42  ;;  %1028 = vperm.xlu1 %2449, %v5286_v37   ;;  %v5294_v1 = vld [vmem:[#allocation53_spill] sm:$0xff]  ;;  %v2639_v5 = vpop.eup %2638  ;;  %v944_v42 = vpop.permute.xlu2 %943 }
 0x364   : > { %v1298_v54 = vmul.f32 %v5243_v49, %v5294_v1  ;;  %v2023_v49 = vmul.f32 %v5245_v20, %v2639_v5 }
 0x365   : > { %v1858_v21 = vrot.slane %v1857_v32, 4  ;;  %v2170_v26 = vrot.slane %v2169_v63, 4  ;;  %v920_v43 = vpop.permute.xlu1 %919 }
 0x366   : > { %v1296_v33 = vmul.f32 %v5229_v15, %v920_v43  ;;  %v2641_v15 = vpop.eup %2640  ;;  %v1711_v43 = vmul.f32 %v5244_v27, %v2639_v5 }
 0x367   : > { %v1859_v41 = vadd.f32 %v1858_v21, %v1857_v32  ;;  %v2171_v29 = vadd.f32 %v2170_v26, %v2169_v63  ;;  %v1442_v63 = vsub.f32 %v1298_v54, %v4048_v25  ;;  %v1300_v21 = vmul.f32 %v5254_v50, %v944_v42 }
 0x368   : > { %v1440_v59 = vsub.f32 %v1296_v33, %v5234_v16  ;;  %v1713_v33 = vmul.f32 %v5250_v48, %v2641_v15 }
 0x369   : > { %v1860_v55 = vrot.slane %v1859_v41, 2  ;;  %v2172_v46 = vrot.slane %v2171_v29, 2  ;;  %v1444_v48 = vsub.f32 %v1300_v21, %v5255_v57 }
 0x36a   : > { %2642 = vtanh.f32 %v1440_v59  ;;  %2452 = vset.pattern.permute.xlu2 %v5249_v7 }
 0x36b   : > { %v1861_v44 = vadd.f32 %v1860_v55, %v1859_v41  ;;  %v2173_v11 = vadd.f32 %v2172_v46, %v2171_v29  ;;  %2451 = vset.pattern.permute.xlu1 %v5238_v22  ;;  %v2025_v41 = vmul.f32 %v5251_v31, %v2641_v15  ;;  %2644 = vtanh.f32 %v1442_v63 }
 0x36c   : > { %2646 = vtanh.f32 %v1444_v48 }
 0x36d   : > { %v1862_v8 = vrot.slane %v1861_v44, 1  ;;  %v2174_v32 = vrot.slane %v2173_v11, 1 }
 0x36f   : > { %v1863_v16 = vadd.f32 %v1862_v8, %v1861_v44  ;;  %v2175_v19 = vadd.f32 %v2174_v32, %v2173_v11  ;;  %v956_v44 = vpop.permute.xlu2 %955 }
 0x370   : > { %v2643_v26 = vpop.eup %2642  ;;  %v1302_v42 = vmul.f32 %v5261_v34, %v956_v44 }
 0x371   : > { %v4478_v29 = vsel %vm309_vm3, %v1863_v16, %v4216_v45  ;;  %v4482_v25 = vsel %vm309_vm3, %v2175_v19, %v4220_v53  ;;  %v1712_v59 = vmul.f32 %v4015_v36, %v2643_v26  ;;  %v2024_v50 = vmul.f32 %v5240_v52, %v2643_v26  ;;  %v2645_v36 = vpop.eup %2644  ;;  %v5295_v52 = vld [vmem:[#allocation21_spill] sm:$0xff] }
 0x372   : > { %1046 = vperm.xlu2 %2452, %v5286_v37   ;;  %v2647_v1 = vpop.eup %2646  ;;  %v1714_v54 = vmul.f32 %v4080_v6, %v2645_v36  ;;  %v2026_v57 = vmul.f32 %v4086_v51, %v2645_v36  ;;  %v1446_v51 = vsub.f32 %v1302_v42, %v4098_v14  ;;  %v5301_v36 = vld [vmem:[#allocation24_spill] sm:$0xff] }
 0x373   : > { %v1864_v27 = vadd.f32 %v1712_v59, %v1711_v43  ;;  %v2176_v20 = vadd.f32 %v2024_v50, %v2023_v49  ;;  %1040 = vperm.xlu1 %2451, %v5286_v37   ;;  %v1716_v5 = vmul.f32 %v5259_v61, %v2647_v1 }
 0x375   : > { %v1865_v31 = vadd.f32 %v1864_v27, %v1713_v33  ;;  %v2177_v45 = vadd.f32 %v2176_v20, %v2025_v41  ;;  %v938_v55 = vpop.permute.xlu1 %937  ;;  %v5297_v41 = vld [vmem:[#allocation62_spill] sm:$0xff] }
 0x376   : > { %v1299_v46 = vmul.f32 %v5242_v38, %v938_v55  ;;  %v2028_v38 = vmul.f32 %v4092_v28, %v2647_v1  ;;  %v5298_v55 = vld [vmem:[#allocation41_spill] sm:$0xff] }
 0x377   : > { %v1866_v15 = vadd.f32 %v1865_v31, %v1714_v54  ;;  %v2178_v32 = vadd.f32 %v2177_v45, %v2026_v57  ;;  %v5302_v1 = vld [vmem:[#allocation29_spill] sm:$0xff]  ;;  %v5303_v57 = vld [vmem:[#allocation26_spill] sm:$0xff] }
 0x378   : > { %v1443_v53 = vsub.f32 %v1299_v46, %v5246_v23 }
 0x37a   : > { %2648 = vtanh.f32 %v1443_v53  ;;  %2455 = vset.pattern.permute.xlu2 %v5256_v10  ;;  %v5300_v53 = vld [vmem:[#allocation2_spill] sm:$0xff] }
 0x37b   : > { %2454 = vset.pattern.permute.xlu1 %v5295_v52  ;;  %2650 = vtanh.f32 %v1446_v51 }
 0x37c   : > { %v974_v21 = vpop.permute.xlu2 %973 }
 0x37d   : > { %v1305_v14 = vmul.f32 %v4318_v0, %v974_v21 }
 0x37f   : > { %v1449_v20 = vsub.f32 %v1305_v14, %v4324_v47 }
 0x380   : > { %v2649_v11 = vpop.eup %2648 }
 0x381   : > { %v1715_v23 = vmul.f32 %v5252_v13, %v2649_v11  ;;  %v2027_v8 = vmul.f32 %v5253_v12, %v2649_v11  ;;  %v5296_v13 = vld [vmem:[#allocation32_spill] sm:$0xff]  ;;  %v2651_v26 = vpop.eup %2650 }
 0x382   : > { %1064 = vperm.xlu2 %2455, %v5286_v37   ;;  %v1303_v12 = vmul.f32 %v4250_v4, %v5296_v13  ;;  %v1718_v33 = vmul.f32 %v5264_v17, %v2651_v26  ;;  %v2030_v59 = vmul.f32 %v5297_v41, %v2651_v26  ;;  %v992_v41 = vpop.permute.xlu0 %991 }
 0x383   : > { %v1867_v63 = vadd.f32 %v1866_v15, %v1715_v23  ;;  %v2179_v6 = vadd.f32 %v2178_v32, %v2027_v8  ;;  %1058 = vperm.xlu1 %2454, %v5286_v37   ;;  %v5305_v23 = vld [vmem:[#allocation25_spill] sm:$0xff]  ;;  %v5306_v8 = vld [vmem:[#allocation38_spill] sm:$0xff] }
 0x384   : > { %v1447_v49 = vsub.f32 %v1303_v12, %v4262_v56  ;;  %v5310_v12 = vld [vmem:[#allocation57_spill] sm:$0xff] }
 0x385   : > { %v1868_v16 = vadd.f32 %v1867_v63, %v1716_v5  ;;  %v2180_v61 = vadd.f32 %v2179_v6, %v2028_v38  ;;  %v950_v19 = vpop.permute.xlu1 %949  ;;  %v5304_v38 = vld [vmem:[#allocation31_spill] sm:$0xff]  ;;  %v5307_v63 = vld [vmem:[#allocation22_spill] sm:$0xff] }
 0x386   : > { %v1301_v28 = vmul.f32 %v4114_v24, %v950_v19 }
 0x388   : > { %v1445_v34 = vsub.f32 %v1301_v28, %v4120_v58  ;;  %v5309_v28 = vld [vmem:[#allocation44_spill] sm:$0xff] }
 0x38a   : > { %2652 = vtanh.f32 %v1445_v34  ;;  %2457 = vset.pattern.permute.xlu2 %v5262_v35 }
 0x38b   : > { %2456 = vset.pattern.permute.xlu1 %v5220_v9  ;;  %2654 = vtanh.f32 %v1447_v49  ;;  %v5311_v49 = vld [vmem:[#allocation42_spill] sm:$0xff] }
 0x38c   : > { %2656 = vtanh.f32 %v1449_v20  ;;  %v986_v11 = vpop.permute.xlu2 %985 }
 0x38d   : > { %v1307_v32 = vmul.f32 %v5306_v8, %v986_v11 }
 0x38f   : > { %v1451_v21 = vsub.f32 %v1307_v32, %v5310_v12 }
 0x390   : > { %v2653_v43 = vpop.eup %2652 }
 0x391   : > { %v1717_v24 = vmul.f32 %v4134_v2, %v2653_v43  ;;  %v2029_v58 = vmul.f32 %v4140_v60, %v2653_v43  ;;  %v5299_v60 = vld [vmem:[#allocation43_spill] sm:$0xff]  ;;  %v2655_v17 = vpop.eup %2654 }
 0x392   : > { %1076 = vperm.xlu2 %2457, %v5286_v37   ;;  %v2657_v52 = vpop.eup %2656  ;;  %v1719_v54 = vmul.f32 %v5302_v1, %v2655_v17  ;;  %v2031_v44 = vmul.f32 %v5303_v57, %v2655_v17 }
 0x393   : > { %v1869_v50 = vadd.f32 %v1868_v16, %v1717_v24  ;;  %v2181_v27 = vadd.f32 %v2180_v61, %v2029_v58  ;;  %1070 = vperm.xlu1 %2456, %v5286_v37   ;;  %v1721_v42 = vmul.f32 %v5304_v38, %v2657_v52  ;;  %v2033_v15 = vmul.f32 %v5305_v23, %v2657_v52  ;;  %v5308_v16 = vld [vmem:[#allocation49_spill] sm:$0xff]  ;;  %v5312_v58 = vld [vmem:[#allocation50_spill] sm:$0xff]  ;;  %v5318_v52 = vld [vmem:[#allocation8_spill] sm:$0xff] }
 0x395   : > { %v1870_v48 = vadd.f32 %v1869_v50, %v1718_v33  ;;  %v2182_v31 = vadd.f32 %v2181_v27, %v2030_v59  ;;  %v968_v45 = vpop.permute.xlu1 %967  ;;  %v5313_v59 = vld [vmem:[#allocation9_spill] sm:$0xff]  ;;  %v5314_v50 = vld [vmem:[#allocation3_spill] sm:$0xff] }
 0x396   : > { %v1304_v2 = vmul.f32 %v5298_v55, %v968_v45  ;;  %v5315_v27 = vld [vmem:[#allocation51_spill] sm:$0xff] }
 0x397   : > { %v1871_v51 = vadd.f32 %v1870_v48, %v1719_v54  ;;  %v2183_v19 = vadd.f32 %v2182_v31, %v2031_v44  ;;  %v1308_v20 = vmul.f32 %v5315_v27, %v992_v41  ;;  %v5319_v44 = vld [vmem:[#allocation34_spill] sm:$0xff] }
 0x398   : > { %v1448_v46 = vsub.f32 %v1304_v2, %v5299_v60 }
 0x39a   : > { %2658 = vtanh.f32 %v1448_v46  ;;  %2460 = vset.pattern.permute.xlu2 %v5300_v53  ;;  %v5316_v46 = vld [vmem:[#allocation54_spill] sm:$0xff] }
 0x39b   : > { %2459 = vset.pattern.permute.xlu1 %v5301_v36  ;;  %2660 = vtanh.f32 %v1451_v21  ;;  %v1452_v17 = vsub.f32 %v1308_v20, %v5316_v46  ;;  %v5317_v53 = vld [vmem:[#allocation10_spill] sm:$0xff]  ;;  %v5322_v21 = vld [vmem:[#allocation45_spill] sm:$0xff]  ;;  %v4555_v20 = vld [vmem:[%s4923_s8 + $0x8] sm:$0xff] }
 0x39c   : > { %v1004_v48 = vpop.permute.xlu2 %1003  ;;  %v5334_v46 = vld [vmem:[#allocation19_spill] sm:$0xff] }
 0x39d   : > { %v1310_v45 = vmul.f32 %v4435_v18, %v1004_v48 }
 0x3a0   : > { %v2659_v5 = vpop.eup %2658 }
 0x3a1   : > { %v1720_v6 = vmul.f32 %v5307_v63, %v2659_v5  ;;  %v2032_v61 = vmul.f32 %v5308_v16, %v2659_v5  ;;  %v2661_v31 = vpop.eup %2660  ;;  %v5320_v5 = vld [vmem:[#allocation39_spill] sm:$0xff] }
 0x3a2   : > { %1107 = vperm.xlu2 %2460, %v5309_v28   ;;  %v1723_v11 = vmul.f32 %v5319_v44, %v2661_v31 }
 0x3a3   : > { %v1872_v34 = vadd.f32 %v1871_v51, %v1720_v6  ;;  %v2184_v13 = vadd.f32 %v2183_v19, %v2032_v61  ;;  %1088 = vperm.xlu1 %2459, %v5286_v37   ;;  %v1454_v6 = vsub.f32 %v1310_v45, %v4441_v39  ;;  %v4768_v39 = vld [vmem:[%s4925_s10 + $0x38] sm:$0xff] }
 0x3a5   : > { %v1873_v26 = vadd.f32 %v1872_v34, %v1721_v42  ;;  %v2185_v14 = vadd.f32 %v2184_v13, %v2033_v15  ;;  %v980_v43 = vpop.permute.xlu1 %979  ;;  %v2035_v42 = vmul.f32 %v5320_v5, %v2661_v31  ;;  %v5321_v34 = vld [vmem:[#allocation36_spill] sm:$0xff] }
 0x3a6   : > { %v1306_v24 = vmul.f32 %v5311_v49, %v980_v43  ;;  %v4561_v31 = vld [vmem:[%s4923_s8 + $0x10] sm:$0xff] }
 0x3a8   : > { %v1450_v33 = vsub.f32 %v1306_v24, %v5312_v58 }
 0x3aa   : > { %2662 = vtanh.f32 %v1450_v33  ;;  %2462 = vset.pattern.permute.xlu2 %v5313_v59  ;;  %v5323_v33 = vld [vmem:[#allocation56_spill] sm:$0xff]  ;;  %v5324_v59 = vld [vmem:[#allocation33_spill] sm:$0xff] }
 0x3ab   : > { %2461 = vset.pattern.permute.xlu1 %v5314_v50  ;;  %2664 = vtanh.f32 %v1452_v17 }
 0x3ac   : > { %2666 = vtanh.f32 %v1454_v6 }
 0x3b0   : > { %v2663_v2 = vpop.eup %2662 }
 0x3b1   : > { %v1722_v36 = vmul.f32 %v5317_v53, %v2663_v2  ;;  %v2034_v54 = vmul.f32 %v5318_v52, %v2663_v2  ;;  %v2665_v24 = vpop.eup %2664 }
 0x3b2   : > { %1119 = vperm.xlu2 %2462, %v5309_v28   ;;  %v1724_v41 = vmul.f32 %v5323_v33, %v2665_v24  ;;  %v2036_v50 = vmul.f32 %v5324_v59, %v2665_v24  ;;  %v4717_v59 = vld [vmem:[%s4924_s9 + $0x38] sm:$0xff] }
 0x3b3   : > { %v1874_v15 = vadd.f32 %v1873_v26, %v1722_v36  ;;  %v2186_v32 = vadd.f32 %v2185_v14, %v2034_v54  ;;  %1113 = vperm.xlu1 %2461, %v5309_v28   ;;  %v1017_v26 = vpop.permute.xlu2 %1016  ;;  %v2667_v14 = vpop.eup %2666 }
 0x3b4   : > { %v1312_v48 = vmul.f32 %v4555_v20, %v1017_v26  ;;  %v1726_v2 = vmul.f32 %v4451_v30, %v2667_v14  ;;  %v2038_v17 = vmul.f32 %v4457_v40, %v2667_v14  ;;  %v4586_v14 = vld [vmem:[%s4923_s8] sm:$0xff] }
 0x3b5   : > { %v1875_v51 = vadd.f32 %v1874_v15, %v1723_v11  ;;  %v2187_v61 = vadd.f32 %v2186_v32, %v2035_v42  ;;  %v998_v19 = vpop.permute.xlu1 %997  ;;  %v5326_v11 = vld [vmem:[#allocation35_spill] sm:$0xff]  ;;  %v4630_v30 = vld [vmem:[%s4926_s11] sm:$0xff] }
 0x3b6   : > { %v1309_v13 = vmul.f32 %v5321_v34, %v998_v19  ;;  %v4573_v32 = vld [vmem:[%s4924_s9 + $0x8] sm:$0xff]  ;;  %v4579_v19 = vld [vmem:[%s4924_s9 + $0x10] sm:$0xff]  ;;  %v5335_v34 = vld [vmem:[#allocation18_spill] sm:$0xff] }
 0x3b7   : > { %v1876_v36 = vadd.f32 %v1875_v51, %v1724_v41  ;;  %v2188_v54 = vadd.f32 %v2187_v61, %v2036_v50  ;;  %v1456_v6 = vsub.f32 %v1312_v48, %v4573_v32 }
 0x3b8   : > { %v1453_v43 = vsub.f32 %v1309_v13, %v5322_v21 }
 0x3ba   : > { %2668 = vtanh.f32 %v1453_v43  ;;  %2465 = vset.pattern.permute.xlu2 %v5238_v22  ;;  %v5325_v22 = vld [vmem:[#allocation48_spill] sm:$0xff] }
 0x3bb   : > { %2464 = vset.pattern.permute.xlu1 %v5239_v3  ;;  %v1313_v3 = vmul.f32 %v4561_v31, %v5325_v22  ;;  %2670 = vtanh.f32 %v1456_v6  ;;  %v4592_v22 = vld [vmem:[%s4924_s9] sm:$0xff] }
 0x3bd   : > { %v1457_v51 = vsub.f32 %v1313_v3, %v4579_v19 }
 0x3bf   : > { %2672 = vtanh.f32 %v1457_v51 }
 0x3c0   : > { %v2669_v45 = vpop.eup %2668 }
 0x3c1   : > { %v1725_v42 = vmul.f32 %v5326_v11, %v2669_v45  ;;  %v2037_v15 = vmul.f32 %v4428_v62, %v2669_v45 }
 0x3c2   : > { %1137 = vperm.xlu2 %2465, %v5309_v28  }
 0x3c3   : > { %v1877_v61 = vadd.f32 %v1876_v36, %v1725_v42  ;;  %v2189_v13 = vadd.f32 %v2188_v54, %v2037_v15  ;;  %1131 = vperm.xlu1 %2464, %v5309_v28   ;;  %v2671_v42 = vpop.eup %2670 }
 0x3c5   : > { %v1878_v43 = vadd.f32 %v1877_v61, %v1726_v2  ;;  %v2190_v24 = vadd.f32 %v2189_v13, %v2038_v17  ;;  %v1011_v26 = vpop.permute.xlu1 %1010  ;;  %v5327_v17 = vld [vmem:[#allocation13_spill] sm:$0xff]  ;;  %v2673_v15 = vpop.eup %2672 }
 0x3c6   : > { %v1311_v41 = vmul.f32 %v4586_v14, %v1011_v26  ;;  %v1035_v61 = vpop.permute.xlu2 %1034 }
 0x3c7   : > { %v1879_v50 = vrot.slane %v1878_v43, 4  ;;  %v2191_v48 = vrot.slane %v2190_v24, 4 }
 0x3c8   : > { %v1455_v3 = vsub.f32 %v1311_v41, %v4592_v22  ;;  %v4600_v41 = vld [vmem:[%s4926_s11 + $0x8] sm:$0xff] }
 0x3c9   : > { %v1880_v45 = vadd.f32 %v1879_v50, %v1878_v43  ;;  %v2192_v2 = vadd.f32 %v2191_v48, %v2190_v24  ;;  %v1728_v43 = vmul.f32 %v4600_v41, %v2671_v42  ;;  %v4606_v24 = vld [vmem:[%s4925_s10 + $0x8] sm:$0xff]  ;;  %v4612_v48 = vld [vmem:[%s4926_s11 + $0x10] sm:$0xff] }
 0x3ca   : > { %2674 = vtanh.f32 %v1455_v3  ;;  %2467 = vset.pattern.permute.xlu2 %v5327_v17  ;;  %v1729_v3 = vmul.f32 %v4612_v48, %v2673_v15  ;;  %v4624_v17 = vld [vmem:[%s4923_s8 + $0x20] sm:$0xff] }
 0x3cb   : > { %v1881_v36 = vrot.slane %v1880_v45, 2  ;;  %v2193_v54 = vrot.slane %v2192_v2, 2  ;;  %2466 = vset.pattern.permute.xlu1 %v5249_v7  ;;  %v2040_v7 = vmul.f32 %v4606_v24, %v2671_v42 }
 0x3cd   : > { %v1882_v6 = vadd.f32 %v1881_v36, %v1880_v45  ;;  %v2194_v51 = vadd.f32 %v2193_v54, %v2192_v2  ;;  %v4618_v45 = vld [vmem:[%s4925_s10 + $0x10] sm:$0xff]  ;;  %v1315_v36 = vmul.f32 %v4624_v17, %v1035_v61 }
 0x3ce   : > { %v2041_v2 = vmul.f32 %v4618_v45, %v2673_v15  ;;  %v4636_v15 = vld [vmem:[%s4925_s10] sm:$0xff] }
 0x3cf   : > { %v1883_v13 = vrot.slane %v1882_v6, 1  ;;  %v2195_v26 = vrot.slane %v2194_v51, 1 }
 0x3d0   : > { %v2675_v50 = vpop.eup %2674 }
 0x3d1   : > { %v1884_v54 = vadd.f32 %v1883_v13, %v1882_v6  ;;  %v2196_v42 = vadd.f32 %v2195_v26, %v2194_v51  ;;  %v1727_v11 = vmul.f32 %v4630_v30, %v2675_v50  ;;  %v2039_v40 = vmul.f32 %v4636_v15, %v2675_v50  ;;  %v4652_v26 = vld [vmem:[%s4924_s9 + $0x20] sm:$0xff] }
 0x3d2   : > { %1149 = vperm.xlu2 %2467, %v5309_v28   ;;  %v1459_v50 = vsub.f32 %v1315_v36, %v4652_v26 }
 0x3d3   : > { %v4642_v6 = vsel %vm311_vm4, %v1884_v54, %v4478_v29  ;;  %v4646_v51 = vsel %vm311_vm4, %v2196_v42, %v4482_v25  ;;  %v1885_v61 = vadd.f32 %v1728_v43, %v1727_v11  ;;  %v2197_v13 = vadd.f32 %v2040_v7, %v2039_v40  ;;  %1143 = vperm.xlu1 %2466, %v5309_v28   ;;  %v4658_v29 = vld [vmem:[%s4923_s8 + $0x18] sm:$0xff]  ;;  %v1047_v43 = vpop.permute.xlu2 %1046  ;;  %v4679_v54 = vld [vmem:[%s4923_s8 + $0x30] sm:$0xff] }
 0x3d4   : > { %5328 = vst [vmem:[#allocation37_spill] sm:$0xff] %v4642_v6  ;;  %v4664_v40 = vld [vmem:[%s4924_s9 + $0x18] sm:$0xff]  ;;  %2676 = vtanh.f32 %v1459_v50  ;;  %v4697_v50 = vld [vmem:[%s4926_s11 + $0x20] sm:$0xff] }
 0x3d5   : > { %5329 = vst [vmem:[#allocation20_spill] sm:$0xff] %v4646_v51  ;;  %v1029_v33 = vpop.permute.xlu1 %1028  ;;  %v1886_v62 = vadd.f32 %v1885_v61, %v1729_v3  ;;  %v2198_v44 = vadd.f32 %v2197_v13, %v2041_v2  ;;  %v5330_v2 = vld [vmem:[#allocation30_spill] sm:$0xff]  ;;  %v4691_v61 = vld [vmem:[%s4925_s10 + $0x18] sm:$0xff] }
 0x3d6   : > { %v1314_v25 = vmul.f32 %v4658_v29, %v1029_v33  ;;  %v4672_v33 = vld [vmem:[%s4923_s8 + $0x38] sm:$0xff] }
 0x3d7   : > { %v1318_v36 = vmul.f32 %v4672_v33, %v5330_v2 }
 0x3d8   : > { %v1458_v11 = vsub.f32 %v1314_v25, %v4664_v40 }
 0x3da   : > { %2678 = vtanh.f32 %v1458_v11  ;;  %2470 = vset.pattern.permute.xlu2 %v5220_v9  ;;  %v2677_v7 = vpop.eup %2676  ;;  %v1317_v9 = vmul.f32 %v4679_v54, %v1047_v43  ;;  %v4703_v11 = vld [vmem:[%s4925_s10 + $0x20] sm:$0xff] }
 0x3db   : > { %2469 = vset.pattern.permute.xlu1 %v5256_v10  ;;  %v4685_v10 = vld [vmem:[%s4926_s11 + $0x18] sm:$0xff]  ;;  %v1731_v25 = vmul.f32 %v4697_v50, %v2677_v7  ;;  %v2043_v43 = vmul.f32 %v4703_v11, %v2677_v7  ;;  %v1462_v7 = vsub.f32 %v1318_v36, %v4717_v59 }
 0x3dc   : > { %v5331_v36 = vld [vmem:[#allocation17_spill] sm:$0xff] }
 0x3e0   : > { %v2679_v3 = vpop.eup %2678 }
 0x3e1   : > { %v1730_v42 = vmul.f32 %v4685_v10, %v2679_v3  ;;  %v2042_v13 = vmul.f32 %v4691_v61, %v2679_v3  ;;  %v4711_v3 = vld [vmem:[%s4924_s9 + $0x30] sm:$0xff] }
 0x3e2   : > { %1167 = vperm.xlu2 %2470, %v5309_v28   ;;  %v1461_v6 = vsub.f32 %v1317_v9, %v4711_v3  ;;  %v4729_v9 = vld [vmem:[%s4924_s9 + $0x28] sm:$0xff] }
 0x3e3   : > { %v1887_v2 = vadd.f32 %v1886_v62, %v1730_v42  ;;  %v2199_v51 = vadd.f32 %v2198_v44, %v2042_v13  ;;  %1161 = vperm.xlu1 %2469, %v5309_v28   ;;  %v4723_v44 = vld [vmem:[%s4923_s8 + $0x28] sm:$0xff] }
 0x3e4   : > { %2680 = vtanh.f32 %v1461_v6  ;;  %v4743_v6 = vld [vmem:[%s4925_s10 + $0x28] sm:$0xff] }
 0x3e5   : > { %v1888_v53 = vadd.f32 %v1887_v2, %v1731_v25  ;;  %v2200_v38 = vadd.f32 %v2199_v51, %v2043_v43  ;;  %v1041_v62 = vpop.permute.xlu1 %1040  ;;  %2682 = vtanh.f32 %v1462_v7  ;;  %v4737_v2 = vld [vmem:[%s4926_s11 + $0x28] sm:$0xff] }
 0x3e6   : > { %v1316_v42 = vmul.f32 %v4723_v44, %v1041_v62 }
 0x3e8   : > { %v1460_v13 = vsub.f32 %v1316_v42, %v4729_v9 }
 0x3ea   : > { %2684 = vtanh.f32 %v1460_v13  ;;  %2472 = vset.pattern.permute.xlu2 %v5331_v36  ;;  %v2681_v51 = vpop.eup %2680  ;;  %v4755_v13 = vld [vmem:[%s4925_s10 + $0x30] sm:$0xff] }
 0x3eb   : > { %2471 = vset.pattern.permute.xlu1 %v5262_v35  ;;  %v2683_v25 = vpop.eup %2682  ;;  %v4749_v35 = vld [vmem:[%s4926_s11 + $0x30] sm:$0xff]  ;;  %v2045_v36 = vmul.f32 %v4755_v13, %v2681_v51 }
 0x3ec   : > { %v1733_v42 = vmul.f32 %v4749_v35, %v2681_v51  ;;  %v2046_v63 = vmul.f32 %v4768_v39, %v2683_v25 }
 0x3f0   : > { %v2685_v43 = vpop.eup %2684 }
 0x3f1   : > { %v1732_v62 = vmul.f32 %v4737_v2, %v2685_v43  ;;  %v2044_v7 = vmul.f32 %v4743_v6, %v2685_v43  ;;  %v4762_v43 = vld [vmem:[%s4926_s11 + $0x38] sm:$0xff] }
 0x3f2   : > { %1179 = vperm.xlu2 %2472, %v5309_v28   ;;  %v1734_v5 = vmul.f32 %v4762_v43, %v2683_v25 }
 0x3f3   : > { %v1889_v52 = vadd.f32 %v1888_v53, %v1732_v62  ;;  %v2201_v18 = vadd.f32 %v2200_v38, %v2044_v7  ;;  %1173 = vperm.xlu1 %2471, %v5309_v28  }
 0x3f5   : > { %v1890_v51 = vadd.f32 %v1889_v52, %v1733_v42  ;;  %v2202_v21 = vadd.f32 %v2201_v18, %v2045_v36  ;;  %v4784_v18 = vpop.permute.xlu2 %1064  ;;  %v4786_v38 = vpop.permute.xlu1 %1058 }
 0x3f7   : > { %v4772_v23 = vadd.f32 %v1890_v51, %v1734_v5  ;;  %v4774_v1 = vadd.f32 %v2202_v21, %v2046_v63  ;;  %v5337_v51 = vld [vmem:[#allocation23_spill] sm:$0xff] }
 0x3f9   : > { %5332 = vst [vmem:[#allocation16_spill] sm:$0xff] %v4772_v23 }
 0x3fa   : > { %5333 = vst [vmem:[#allocation46_spill] sm:$0xff] %v4774_v1  ;;  %2474 = vset.pattern.permute.xlu2 %v5334_v46  ;;  %v1330_v1 = vmul.f32 %v4658_v29, %v5337_v51 }
 0x3fb   : > { %2473 = vset.pattern.permute.xlu1 %v5334_v46 }
 0x3fd   : > { %v4788_v63 = vpop.permute.xlu2 %1076 }
 0x402   : > { %1191 = vperm.xlu2 %2474, %v5309_v28  }
 0x403   : > { %1094 = vperm.xlu1 %2473, %v5286_v37  }
 0x405   : > { %v4790_v53 = vpop.permute.xlu1 %1070  ;;  %v1108_v46 = vpop.permute.xlu2 %1107 }
 0x40a   : > { %2476 = vset.pattern.permute.xlu2 %v5335_v34 }
 0x40b   : > { %2475 = vset.pattern.permute.xlu1 %v5335_v34 }
 0x40d   : > { %v1120_v5 = vpop.permute.xlu2 %1119 }
 0x40e   : > { %v1329_v62 = vmul.f32 %v4561_v31, %v1120_v5 }
 0x410   : > { %v1473_v23 = vsub.f32 %v1329_v62, %v4579_v19 }
 0x412   : > { %1197 = vperm.xlu2 %2476, %v5309_v28   ;;  %v1327_v28 = vmul.f32 %v4586_v14, %v1108_v46 }
 0x413   : > { %1100 = vperm.xlu1 %2475, %v5286_v37  }
 0x414   : > { %v1471_v42 = vsub.f32 %v1327_v28, %v4592_v22 }
 0x415   : > { %v4792_v52 = vpop.permute.xlu1 %1088 }
 0x416   : > { %5336 = vst [vmem:[#allocation59_spill] sm:$0xff] %v4792_v52 }
 0x41c   : > { %v1138_v25 = vpop.permute.xlu2 %1137 }
 0x41d   : > { %v1332_v46 = vmul.f32 %v4723_v44, %v1138_v25 }
 0x425   : > { %v1114_v21 = vpop.permute.xlu1 %1113 }
 0x426   : > { %v1328_v34 = vmul.f32 %v4555_v20, %v1114_v21  ;;  %v1474_v20 = vsub.f32 %v1330_v1, %v4664_v40 }
 0x428   : > { %v1472_v37 = vsub.f32 %v1328_v34, %v4573_v32 }
 0x42a   : > { %2686 = vtanh.f32 %v1472_v37 }
 0x42b   : > { %2688 = vtanh.f32 %v1471_v42 }
 0x42c   : > { %v1150_v36 = vpop.permute.xlu2 %1149  ;;  %2690 = vtanh.f32 %v1473_v23 }
 0x42d   : > { %2692 = vtanh.f32 %v1474_v20  ;;  %v1334_v40 = vmul.f32 %v4672_v33, %v1150_v36 }
 0x430   : > { %v2687_v32 = vpop.eup %2686 }
 0x431   : > { %v2689_v5 = vpop.eup %2688  ;;  %v2056_v21 = vmul.f32 %v4606_v24, %v2687_v32  ;;  %v1744_v28 = vmul.f32 %v4600_v41, %v2687_v32 }
 0x432   : > { %v2691_v19 = vpop.eup %2690  ;;  %v2055_v1 = vmul.f32 %v4636_v15, %v2689_v5  ;;  %v1743_v33 = vmul.f32 %v4630_v30, %v2689_v5 }
 0x433   : > { %v2057_v44 = vmul.f32 %v4618_v45, %v2691_v19  ;;  %v1745_v51 = vmul.f32 %v4612_v48, %v2691_v19 }
 0x434   : > { %v1906_v36 = vadd.f32 %v1744_v28, %v1743_v33  ;;  %v1320_v28 = vmul.f32 %v5298_v55, %v4784_v18  ;;  %v5340_v33 = vld [vmem:[#allocation54_spill] sm:$0xff] }
 0x435   : > { %v1132_v7 = vpop.permute.xlu1 %1131 }
 0x436   : > { %v1331_v52 = vmul.f32 %v4624_v17, %v1132_v7  ;;  %v1476_v17 = vsub.f32 %v1332_v46, %v4729_v9  ;;  %v1478_v9 = vsub.f32 %v1334_v40, %v4717_v59  ;;  %v1464_v18 = vsub.f32 %v1320_v28, %v5299_v60 }
 0x438   : > { %v1475_v31 = vsub.f32 %v1331_v52, %v4652_v26  ;;  %v2218_v26 = vadd.f32 %v2056_v21, %v2055_v1  ;;  %v2693_v52 = vpop.eup %2692 }
 0x439   : > { %v2058_v15 = vmul.f32 %v4691_v61, %v2693_v52  ;;  %v1746_v32 = vmul.f32 %v4685_v10, %v2693_v52 }
 0x43a   : > { %2694 = vtanh.f32 %v1475_v31 }
 0x43b   : > { %2696 = vtanh.f32 %v1476_v17 }
 0x43c   : > { %v1168_v22 = vpop.permute.xlu2 %1167 }
 0x43d   : > { %v1337_v59 = vmul.f32 %v4318_v0, %v1168_v22 }
 0x43f   : > { %v1481_v48 = vsub.f32 %v1337_v59, %v4324_v47  ;;  %v5343_v59 = vld [vmem:[#allocation45_spill] sm:$0xff] }
 0x440   : > { %v2695_v34 = vpop.eup %2694 }
 0x441   : > { %v2059_v62 = vmul.f32 %v4703_v11, %v2695_v34  ;;  %v2697_v7 = vpop.eup %2696  ;;  %v1907_v11 = vadd.f32 %v1906_v36, %v1745_v51  ;;  %v1747_v5 = vmul.f32 %v4697_v50, %v2695_v34 }
 0x442   : > { %v2060_v30 = vmul.f32 %v4743_v6, %v2697_v7  ;;  %v1748_v50 = vmul.f32 %v4737_v2, %v2697_v7 }
 0x443   : > { %v1908_v17 = vadd.f32 %v1907_v11, %v1746_v32 }
 0x445   : > { %v1144_v14 = vpop.permute.xlu1 %1143 }
 0x446   : > { %v1333_v29 = vmul.f32 %v4679_v54, %v1144_v14  ;;  %v5338_v54 = vld [vmem:[#allocation27_spill] sm:$0xff] }
 0x447   : > { %v1335_v24 = vmul.f32 %v4250_v4, %v5338_v54 }
 0x448   : > { %v1477_v23 = vsub.f32 %v1333_v29, %v4711_v3  ;;  %v2219_v3 = vadd.f32 %v2218_v26, %v2057_v44  ;;  %v1909_v26 = vadd.f32 %v1908_v17, %v1747_v5  ;;  %v1319_v44 = vmul.f32 %v4250_v4, %v4786_v38  ;;  %v5347_v5 = vld [vmem:[#allocation52_spill] sm:$0xff] }
 0x449   : > { %v1479_v42 = vsub.f32 %v1335_v24, %v4262_v56 }
 0x44a   : > { %2698 = vtanh.f32 %v1477_v23  ;;  %v2220_v41 = vadd.f32 %v2219_v3, %v2058_v15  ;;  %v1463_v2 = vsub.f32 %v1319_v44, %v4262_v56  ;;  %v5339_v3 = vld [vmem:[#allocation36_spill] sm:$0xff]  ;;  %v5341_v56 = vld [vmem:[#allocation29_spill] sm:$0xff] }
 0x44b   : > { %2700 = vtanh.f32 %v1478_v9  ;;  %v1910_v9 = vadd.f32 %v1909_v26, %v1748_v50 }
 0x44c   : > { %v1180_v37 = vpop.permute.xlu2 %1179  ;;  %v2221_v14 = vadd.f32 %v2220_v41, %v2059_v62  ;;  %2702 = vtanh.f32 %v1479_v42  ;;  %v1321_v62 = vmul.f32 %v4318_v0, %v4790_v53  ;;  %v1322_v0 = vmul.f32 %v5311_v49, %v4788_v63  ;;  %v5345_v53 = vld [vmem:[#allocation8_spill] sm:$0xff] }
 0x44d   : > { %v1339_v6 = vmul.f32 %v5306_v8, %v1180_v37 }
 0x44e   : > { %v2222_v21 = vadd.f32 %v2221_v14, %v2060_v30  ;;  %v5344_v14 = vld [vmem:[#allocation40_spill] sm:$0xff]  ;;  %v1465_v32 = vsub.f32 %v1321_v62, %v4324_v47  ;;  %v1466_v47 = vsub.f32 %v1322_v0, %v5312_v58 }
 0x44f   : > { %v1483_v34 = vsub.f32 %v1339_v6, %v5310_v12  ;;  %v5349_v6 = vld [vmem:[#allocation39_spill] sm:$0xff] }
 0x450   : > { %v2699_v20 = vpop.eup %2698 }
 0x451   : > { %v2061_v31 = vmul.f32 %v4755_v13, %v2699_v20  ;;  %v2701_v46 = vpop.eup %2700  ;;  %v1186_v13 = vpop.permute.xlu0 %1185 }
 0x452   : > { %v2062_v10 = vmul.f32 %v4768_v39, %v2701_v46  ;;  %v2703_v40 = vpop.eup %2702  ;;  %v1340_v54 = vmul.f32 %v5315_v27, %v1186_v13  ;;  %v1750_v15 = vmul.f32 %v4762_v43, %v2701_v46  ;;  %v5342_v43 = vld [vmem:[#allocation25_spill] sm:$0xff] }
 0x453   : > { %v2223_v1 = vadd.f32 %v2222_v21, %v2061_v31  ;;  %v2063_v39 = vmul.f32 %v5303_v57, %v2703_v40  ;;  %v1751_v36 = vmul.f32 %v5341_v56, %v2703_v40  ;;  %v5346_v31 = vld [vmem:[#allocation22_spill] sm:$0xff] }
 0x455   : > { %v1162_v25 = vpop.permute.xlu1 %1161  ;;  %v2224_v24 = vadd.f32 %v2223_v1, %v2062_v10  ;;  %v5350_v10 = vld [vmem:[#allocation31_spill] sm:$0xff] }
 0x456   : > { %v1336_v45 = vmul.f32 %v5298_v55, %v1162_v25  ;;  %v1749_v25 = vmul.f32 %v4749_v35, %v2699_v20 }
 0x457   : > { %v2225_v7 = vadd.f32 %v2224_v24, %v2063_v39  ;;  %v5353_v39 = vld [vmem:[#allocation33_spill] sm:$0xff] }
 0x458   : > { %v1480_v61 = vsub.f32 %v1336_v45, %v5299_v60  ;;  %v1911_v35 = vadd.f32 %v1910_v9, %v1749_v25  ;;  %v1484_v45 = vsub.f32 %v1340_v54, %v5340_v33 }
 0x45a   : > { %2704 = vtanh.f32 %v1480_v61  ;;  %v1912_v20 = vadd.f32 %v1911_v35, %v1750_v15  ;;  %v5355_v35 = vld [vmem:[#allocation46_spill] sm:$0xff] }
 0x45b   : > { %2706 = vtanh.f32 %v1481_v48  ;;  %v1323_v48 = vmul.f32 %v5306_v8, %v5347_v5  ;;  %v5351_v8 = vld [vmem:[#allocation59_spill] sm:$0xff] }
 0x45c   : > { %v1192_v22 = vpop.permute.xlu2 %1191  ;;  %v1913_v21 = vadd.f32 %v1912_v20, %v1751_v36  ;;  %v1324_v50 = vmul.f32 %v5315_v27, %v5351_v8 }
 0x45d   : > { %v1341_v37 = vmul.f32 %v5339_v3, %v1192_v22  ;;  %v5348_v22 = vld [vmem:[#allocation55_spill] sm:$0xff]  ;;  %v1467_v26 = vsub.f32 %v1323_v48, %v5310_v12 }
 0x45f   : > { %v1485_v61 = vsub.f32 %v1341_v37, %v5343_v59 }
 0x460   : > { %v2705_v52 = vpop.eup %2704 }
 0x461   : > { %v2064_v4 = vmul.f32 %v5308_v16, %v2705_v52  ;;  %v2707_v38 = vpop.eup %2706  ;;  %v1752_v46 = vmul.f32 %v5346_v31, %v2705_v52 }
 0x462   : > { %v2065_v51 = vmul.f32 %v5342_v43, %v2707_v38 }
 0x463   : > { %v2226_v41 = vadd.f32 %v2225_v7, %v2064_v4  ;;  %v1914_v13 = vadd.f32 %v1913_v21, %v1752_v46  ;;  %v1468_v4 = vsub.f32 %v1324_v50, %v5340_v33 }
 0x465   : > { %v1174_v29 = vpop.permute.xlu1 %1173 }
 0x466   : > { %v1338_v19 = vmul.f32 %v5311_v49, %v1174_v29  ;;  %v2227_v29 = vadd.f32 %v2226_v41, %v2065_v51 }
 0x468   : > { %v1482_v23 = vsub.f32 %v1338_v19, %v5312_v58 }
 0x46a   : > { %2708 = vtanh.f32 %v1482_v23  ;;  %v1753_v23 = vmul.f32 %v5350_v10, %v2707_v38  ;;  %v5354_v38 = vld [vmem:[#allocation16_spill] sm:$0xff] }
 0x46b   : > { %2710 = vtanh.f32 %v1483_v34  ;;  %v5352_v34 = vld [vmem:[#allocation10_spill] sm:$0xff] }
 0x46c   : > { %v1198_v42 = vpop.permute.xlu2 %1197  ;;  %2712 = vtanh.f32 %v1463_v2  ;;  %v1915_v2 = vadd.f32 %v1914_v13, %v1753_v23 }
 0x46d   : > { %2714 = vtanh.f32 %v1484_v45  ;;  %v1342_v30 = vmul.f32 %v5344_v14, %v1198_v42  ;;  %v5356_v45 = vld [vmem:[#allocation34_spill] sm:$0xff]  ;;  %v5357_v42 = vld [vmem:[#allocation12_spill] sm:$0xff] }
 0x46e   : > { %2716 = vtanh.f32 %v1464_v18 }
 0x46f   : > { %2718 = vtanh.f32 %v1485_v61  ;;  %v1486_v19 = vsub.f32 %v1342_v30, %v5348_v22  ;;  %v5358_v61 = vld [vmem:[#allocation56_spill] sm:$0xff] }
 0x470   : > { %v2709_v55 = vpop.eup %2708  ;;  %2720 = vtanh.f32 %v1465_v32  ;;  %v5359_v32 = vld [vmem:[#allocation61_spill] sm:$0xff] }
 0x471   : > { %v2066_v11 = vmul.f32 %v5345_v53, %v2709_v55  ;;  %v2711_v60 = vpop.eup %2710  ;;  %v1754_v58 = vmul.f32 %v5352_v34, %v2709_v55  ;;  %2722 = vtanh.f32 %v1486_v19 }
 0x472   : > { %v2713_v17 = vpop.eup %2712  ;;  %v2067_v49 = vmul.f32 %v5349_v6, %v2711_v60  ;;  %2724 = vtanh.f32 %v1466_v47  ;;  %v1755_v62 = vmul.f32 %v5356_v45, %v2711_v60 }
 0x473   : > { %v2228_v63 = vadd.f32 %v2227_v29, %v2066_v11  ;;  %v2715_v1 = vpop.eup %2714  ;;  %v1735_v52 = vmul.f32 %v5341_v56, %v2713_v17  ;;  %v2047_v25 = vmul.f32 %v5303_v57, %v2713_v17  ;;  %v1916_v7 = vadd.f32 %v1915_v2, %v1754_v58  ;;  %v5360_v29 = vld [vmem:[#allocation35_spill] sm:$0xff] }
 0x474   : > { %v2717_v44 = vpop.eup %2716  ;;  %v2068_v24 = vmul.f32 %v5353_v39, %v2715_v1  ;;  %2726 = vtanh.f32 %v1467_v26  ;;  %v1756_v30 = vmul.f32 %v5358_v61, %v2715_v1 }
 0x475   : > { %v1095_v40 = vpop.permute.xlu1 %1094  ;;  %v2229_v54 = vadd.f32 %v2228_v63, %v2067_v49  ;;  %v2719_v9 = vpop.eup %2718  ;;  %v1736_v15 = vmul.f32 %v5346_v31, %v2717_v44  ;;  %v2048_v27 = vmul.f32 %v5308_v16, %v2717_v44  ;;  %v1892_v57 = vadd.f32 %v5354_v38, %v1735_v52 }
 0x476   : > { %v1325_v28 = vmul.f32 %v5339_v3, %v1095_v40  ;;  %v2721_v12 = vpop.eup %2720  ;;  %v2204_v37 = vadd.f32 %v5355_v35, %v2047_v25  ;;  %v2069_v55 = vmul.f32 %v5357_v42, %v2719_v9  ;;  %2728 = vtanh.f32 %v1468_v4 }
 0x477   : > { %v2230_v3 = vadd.f32 %v2229_v54, %v2068_v24  ;;  %v2723_v56 = vpop.eup %2722  ;;  %v1737_v36 = vmul.f32 %v5350_v10, %v2721_v12  ;;  %v2049_v16 = vmul.f32 %v5342_v43, %v2721_v12  ;;  %v1893_v33 = vadd.f32 %v1892_v57, %v1736_v15 }
 0x478   : > { %v1469_v18 = vsub.f32 %v1325_v28, %v5343_v59  ;;  %v2725_v51 = vpop.eup %2724  ;;  %v2205_v41 = vadd.f32 %v2204_v37, %v2048_v27  ;;  %v1917_v20 = vadd.f32 %v1916_v7, %v1755_v62  ;;  %v2070_v0 = vmul.f32 %v5359_v32, %v2723_v56 }
 0x479   : > { %v2231_v11 = vadd.f32 %v2230_v3, %v2069_v55  ;;  %v1894_v60 = vadd.f32 %v1893_v33, %v1737_v36  ;;  %v1738_v59 = vmul.f32 %v5352_v34, %v2725_v51  ;;  %v2050_v46 = vmul.f32 %v5345_v53, %v2725_v51 }
 0x47a   : > { %2730 = vtanh.f32 %v1469_v18  ;;  %v2206_v31 = vadd.f32 %v2205_v41, %v2049_v16  ;;  %v2727_v48 = vpop.eup %2726  ;;  %v1757_v21 = vmul.f32 %v5360_v29, %v2719_v9  ;;  %v1918_v19 = vadd.f32 %v1917_v20, %v1756_v30 }
 0x47b   : > { %v2232_v47 = vadd.f32 %v2231_v11, %v2070_v0  ;;  %v1739_v63 = vmul.f32 %v5356_v45, %v2727_v48  ;;  %v2051_v1 = vmul.f32 %v5349_v6, %v2727_v48  ;;  %v1895_v10 = vadd.f32 %v1894_v60, %v1738_v59 }
 0x47c   : > { %v2729_v17 = vpop.eup %2728  ;;  %v2207_v23 = vadd.f32 %v2206_v31, %v2050_v46  ;;  %v1919_v8 = vadd.f32 %v1918_v19, %v1757_v21  ;;  %v5364_v31 = vld [vmem:[#allocation6_spill] sm:$0xff]  ;;  %v5366_v21 = vld [vmem:[#allocation7_spill] sm:$0xff] }
 0x47d   : > { %v1740_v53 = vmul.f32 %v5358_v61, %v2729_v17  ;;  %v2052_v40 = vmul.f32 %v5353_v39, %v2729_v17  ;;  %v2233_v50 = vrot.slane %v2232_v47, 4  ;;  %v1896_v44 = vadd.f32 %v1895_v10, %v1739_v63  ;;  %v5362_v61 = vld [vmem:[#allocation37_spill] sm:$0xff] }
 0x47e   : > { %v2208_v52 = vadd.f32 %v2207_v23, %v2051_v1  ;;  %v5367_v17 = vld [vmem:[#allocation5_spill] sm:$0xff] }
 0x47f   : > { %v1897_v34 = vadd.f32 %v1896_v44, %v1740_v53  ;;  %v2234_v24 = vadd.f32 %v2233_v50, %v2232_v47 }
 0x480   : > { %v2731_v13 = vpop.eup %2730  ;;  %v2209_v6 = vadd.f32 %v2208_v52, %v2052_v40 }
 0x481   : > { %v2053_v25 = vmul.f32 %v5357_v42, %v2731_v13  ;;  %v2235_v4 = vrot.slane %v2234_v24, 2 }
 0x483   : > { %v2210_v9 = vadd.f32 %v2209_v6, %v2053_v25  ;;  %v2236_v62 = vadd.f32 %v2235_v4, %v2234_v24 }
 0x485   : > { %v1101_v5 = vpop.permute.xlu1 %1100 }
 0x486   : > { %v1326_v43 = vmul.f32 %v5344_v14, %v1101_v5  ;;  %v5361_v14 = vld [vmem:[#allocation60_spill] sm:$0xff] }
 0x487   : > { %v1758_v26 = vmul.f32 %v5361_v14, %v2723_v56  ;;  %v2237_v56 = vrot.slane %v2236_v62, 1  ;;  %v5365_v5 = vld [vmem:[#allocation4_spill] sm:$0xff] }
 0x488   : > { %v1470_v49 = vsub.f32 %v1326_v43, %v5348_v22  ;;  %v1741_v22 = vmul.f32 %v5360_v29, %v2731_v13  ;;  %v2278_v48 = vperm.slane %v5365_v5, 0 }
 0x489   : > { %v1920_v58 = vadd.f32 %v1919_v8, %v1758_v26  ;;  %v2238_v20 = vadd.f32 %v2237_v56, %v2236_v62 }
 0x48a   : > { %2732 = vtanh.f32 %v1470_v49  ;;  %v1898_v28 = vadd.f32 %v1897_v34, %v1741_v22  ;;  %v2280_v19 = vmul.f32 %v5366_v21, %v2278_v48 }
 0x48b   : > { %v1921_v12 = vrot.slane %v1920_v58, 4 }
 0x48d   : > { %v1922_v35 = vadd.f32 %v1921_v12, %v1920_v58 }
 0x48f   : > { %v1923_v55 = vrot.slane %v1922_v35, 2 }
 0x490   : > { %v2733_v54 = vpop.eup %2732 }
 0x491   : > { %v1742_v2 = vmul.f32 %v5361_v14, %v2733_v54  ;;  %v2054_v39 = vmul.f32 %v5359_v32, %v2733_v54  ;;  %v1924_v51 = vadd.f32 %v1923_v55, %v1922_v35  ;;  %v5363_v32 = vld [vmem:[#allocation20_spill] sm:$0xff] }
 0x493   : > { %v1899_v15 = vadd.f32 %v1898_v28, %v1742_v2  ;;  %v2211_v27 = vadd.f32 %v2210_v9, %v2054_v39  ;;  %v1925_v60 = vrot.slane %v1924_v51, 1 }
 0x495   : > { %v1900_v38 = vrot.slane %v1899_v15, 4  ;;  %v2212_v57 = vrot.slane %v2211_v27, 4  ;;  %v1926_v46 = vadd.f32 %v1925_v60, %v1924_v51 }
 0x497   : > { %v1901_v37 = vadd.f32 %v1900_v38, %v1899_v15  ;;  %v2213_v45 = vadd.f32 %v2212_v57, %v2211_v27 }
 0x499   : > { %v1902_v7 = vrot.slane %v1901_v37, 2  ;;  %v2214_v42 = vrot.slane %v2213_v45, 2 }
 0x49b   : > { %v1903_v3 = vadd.f32 %v1902_v7, %v1901_v37  ;;  %v2215_v18 = vadd.f32 %v2214_v42, %v2213_v45 }
 0x49d   : > { %v1904_v36 = vrot.slane %v1903_v3, 1  ;;  %v2216_v16 = vrot.slane %v2215_v18, 1 }
 0x49f   : > { %v1905_v33 = vadd.f32 %v1904_v36, %v1903_v3  ;;  %v2217_v41 = vadd.f32 %v2216_v16, %v2215_v18 }
 0x4a1   : > { %v2252_v30 = vsel %vm313_vm5, %v1905_v33, %v5362_v61  ;;  %v2269_v0 = vsel %vm313_vm5, %v2217_v41, %v5363_v32 }
 0x4a2   : > { %v2270_v11 = vsel %vm315_vm6, %v2238_v20, %v2269_v0  ;;  %v2253_v43 = vsel %vm315_vm6, %v1926_v46, %v2252_v30 }
 0x4a3   : > { %v2272_v59 = vadd.f32 %v2270_v11, %v5364_v31  ;;  %v2255_v47 = vadd.f32 %v2253_v43, %v5367_v17 }
 0x4a5   : > { %2734 = vrcp.f32 %v2272_v59  ;;  %v2281_v10 = vadd.f32 %v2280_v19, %v2255_v47 }
 0x4ab   : > { %v2735_v29 = vpop.eup %2734 }
 0x4ac   : > { %v2274_v49 = vmul.f32 %v2735_v29, %v2272_v59 }
 0x4ae   : > { %v2275_v63 = vsub.f32 2.0, %v2274_v49 }
 0x4b0   : > { %v2276_v1 = vmul.f32 %v2735_v29, %v2275_v63  ;;  %420 = sbr.rel (!%p418_p0) target bundleno = 231 (0xe7), region = 87 }
 0x4b2   : > { %v2282_v23 = vmul.f32 %v2281_v10, %v2276_v1  }
 0x4b4   : > { %v5368_v21 = vmov %v2282_v23  ;;  %2283 = vst [vmem:[%s4927_s15] sm:$0xff] (%p418_p0), %v2282_v23 }

</bundles_post_ra>
